<compile_context>
chip_gen: v7x
topology: tpu7x:2x2x1
jax: 0.10.0
libtpu: 0.0.40
codegen_flags: <defaults>
</compile_context>

<pallas_src>
import functools

import jax
import jax.numpy as jnp
from jax import lax
from jax.experimental import pallas as pl
from jax.experimental.pallas import tpu as pltpu

# ---------------------------------------------------------------------------
# Static model dimensions (placeholder conv branches, see TODO above).
# ---------------------------------------------------------------------------
C1_IN, C2_IN, COUT, K = 4, 4, 8, 3
SEQ, SP = 16, 16                       # conv1d length / conv2d spatial size
LP1 = SEQ // 2                         # 8   pooled length   (conv1d branch)
HP = SP // 2                           # 8   pooled height/width (conv2d branch)
NPOS2 = HP * HP                        # 64  pooled positions per image
D1 = COUT * LP1                        # 64  conv1d flatten size
D2 = COUT * NPOS2                      # 512 conv2d flatten size
D = D1 + D2                            # 576 total_flatten_size
DP = ((D + 127) // 128) * 128          # 640 lane-aligned feature width
F1, F2, F3 = 256, 128, 64              # fusion MLP widths

# Layout of the packed small-parameter buffer P: f32, shape (16, DP).
_C1W_LO, _C1W_HI = 0, C1_IN * K            # rows 0:COUT  conv1d weight
_C1B = C1_IN * K                           # rows 0:COUT  conv1d bias (col 12)
_C2W_LO, _C2W_HI = 16, 16 + C2_IN * K * K  # rows 0:COUT  conv2d weight
_C2B = 16 + C2_IN * K * K                  # rows 0:COUT  conv2d bias (col 52)
_R_BSP, _R_BSC = 8, 9                      # spatial / spectral fc biases
_R_GSP, _R_ESP = 10, 11                    # spatial  LayerNorm gamma / beta
_R_GSC, _R_ESC = 12, 13                    # spectral LayerNorm gamma / beta
_R_ATT = 14                                # attention_fc weight
_R_MISC = 15                               # b_f1 | b_f2 | b_f3 | w_out | scalars
_OFF_WOUT = 512
_OFF_BATT, _OFF_BOUT = 608, 609


# ---------------------------------------------------------------------------
# Fused kernel
# ---------------------------------------------------------------------------
def _dual_branch_kernel(cols1_ref, cols2_ref, p_ref, wbig_ref, wmlp_ref,
                        out_ref, *, batch):
    f32 = jnp.float32

    # ---------------- conv branches: one MXU dot each -------------------------
    # cols1 lanes: phase*(batch*LP1)   + b*LP1   + p              (2 pool phases)
    # cols2 lanes: phase*(batch*NPOS2) + b*NPOS2 + i*HP + j       (4 pool phases)
    w1 = p_ref[0:COUT, _C1W_LO:_C1W_HI]                        # (COUT, C1_IN*K)
    b1 = p_ref[0:COUT, _C1B:_C1B + 1]                          # (COUT, 1)
    z1 = jnp.dot(w1, cols1_ref[...], preferred_element_type=f32) + b1
    z1 = jnp.maximum(z1, 0.0)                                  # ReLU (commutes w/ max)
    n1 = batch * LP1
    y1 = jnp.maximum(z1[:, :n1], z1[:, n1:])                   # MaxPool1d(2)

    w2 = p_ref[0:COUT, _C2W_LO:_C2W_HI]                        # (COUT, C2_IN*K*K)
    b2 = p_ref[0:COUT, _C2B:_C2B + 1]
    z2 = jnp.dot(w2, cols2_ref[...], preferred_element_type=f32) + b2
    z2 = jnp.maximum(z2, 0.0)
    n2 = batch * NPOS2                                         # 128-lane aligned blocks
    y2 = jnp.maximum(jnp.maximum(z2[:, 0:n2], z2[:, n2:2 * n2]),
                     jnp.maximum(z2[:, 2 * n2:3 * n2], z2[:, 3 * n2:4 * n2]))

    # -------------- flatten + concat entirely in vregs ------------------------
    # x[b, co*LP1 + p]        = y1[co, b*LP1 + p]
    # x[b, D1 + co*NPOS2 + q] = y2[co, b*NPOS2 + q]     (PyTorch flatten order)
    # Padding lanes D..DP-1 are explicit zeros (keeps masked LayerNorm exact).
    pad = jnp.zeros((1, DP - D), f32)
    rows = []
    for b in range(batch):   # B is tiny here; for big B fold batch into a grid axis.
        pieces = [y1[co:co + 1, b * LP1:(b + 1) * LP1] for co in range(COUT)]
        pieces += [y2[co:co + 1, b * NPOS2:(b + 1) * NPOS2] for co in range(COUT)]
        pieces.append(pad)
        rows.append(jnp.concatenate(pieces, axis=-1))          # (1, DP)
    x = jnp.concatenate(rows, axis=0)                          # (batch, DP)

    # -------------- fused spatial_fc | spectral_fc + LayerNorm + GELU ---------
    xb = x.astype(jnp.bfloat16)
    pre = jnp.dot(xb, wbig_ref[:, 0:2 * DP], preferred_element_type=f32)  # (B, 2*DP)

    lane = lax.broadcasted_iota(jnp.int32, (1, DP), 1)
    mask = (lane < D).astype(f32)
    inv_d = f32(1.0 / D)
    inv_sqrt2 = f32(0.7071067811865476)

    def ln_gelu(v, g, be):
        # LayerNorm over the D real features (padded cols of v / g / be are 0),
        # then exact-erf GELU.
        mu = jnp.sum(v, axis=-1, keepdims=True) * inv_d
        diff = (v - mu) * mask
        var = jnp.sum(diff * diff, axis=-1, keepdims=True) * inv_d
        h = diff * lax.rsqrt(var + f32(1e-5)) * g + be
        return 0.5 * h * (1.0 + lax.erf(h * inv_sqrt2))

    spa = ln_gelu(pre[:, 0:DP] + p_ref[_R_BSP:_R_BSP + 1, :],
                  p_ref[_R_GSP:_R_GSP + 1, :], p_ref[_R_ESP:_R_ESP + 1, :])
    spe = ln_gelu(pre[:, DP:2 * DP] + p_ref[_R_BSC:_R_BSC + 1, :],
                  p_ref[_R_GSC:_R_GSC + 1, :], p_ref[_R_ESC:_R_ESC + 1, :])

    # -------------- attention over the two branches (VPU lane reductions) -----
    watt = p_ref[_R_ATT:_R_ATT + 1, :]
    b_att = p_ref[_R_MISC:_R_MISC + 1, _OFF_BATT:_OFF_BATT + 1]
    a_spa = jnp.sum(spa * watt, axis=-1, keepdims=True) + b_att
    a_spe = jnp.sum(spe * watt, axis=-1, keepdims=True) + b_att
    m = jnp.maximum(a_spa, a_spe)
    e_spa = jnp.exp(a_spa - m)
    e_spe = jnp.exp(a_spe - m)
    inv_den = pl.reciprocal(e_spa + e_spe, approx=True)
    agg = (e_spa * inv_den) * spa + (e_spe * inv_den) * spe    # (batch, DP)

    # -------------- fusion MLP (dropout = identity in eval mode) --------------
    h = jnp.dot(agg.astype(jnp.bfloat16), wbig_ref[:, 2 * DP:2 * DP + F1],
                preferred_element_type=f32) + p_ref[_R_MISC:_R_MISC + 1, 0:F1]
    h = jnp.maximum(h, 0.0)
    h = jnp.dot(h.astype(jnp.bfloat16), wmlp_ref[:, 0:F2],
                preferred_element_type=f32) + p_ref[_R_MISC:_R_MISC + 1, F1:F1 + F2]
    h = jnp.maximum(h, 0.0)
    h = jnp.dot(h.astype(jnp.bfloat16), wmlp_ref[0:F2, F2:F2 + F3],
                preferred_element_type=f32) + p_ref[_R_MISC:_R_MISC + 1,
                                                    F1 + F2:F1 + F2 + F3]
    h = jnp.maximum(h, 0.0)
    wout = p_ref[_R_MISC:_R_MISC + 1, _OFF_WOUT:_OFF_WOUT + F3]
    b_out = p_ref[_R_MISC:_R_MISC + 1, _OFF_BOUT:_OFF_BOUT + 1]
    y = jnp.sum(h * wout, axis=-1, keepdims=True) + b_out
    out_ref[...] = jax.nn.sigmoid(y)


# ---------------------------------------------------------------------------
# Wrapper-side index glue: pooling-phase im2col (pure gathers, no compute).
# ---------------------------------------------------------------------------
def _im2col_pool_1d(x1):
    """(B, C1, L) -> (C1*K, 2*B*(L//2)); columns ordered (pool phase, batch, pos)."""
    b = x1.shape[0]
    xp = jnp.pad(x1, ((0, 0), (0, 0), (1, 1)))
    taps = jnp.stack([xp[:, :, di:di + SEQ] for di in range(K)], axis=0)  # (K,B,C,L)
    taps = taps.reshape(K, b, C1_IN, LP1, 2)                  # conv pos = 2*p + phase
    return taps.transpose(2, 0, 4, 1, 3).reshape(C1_IN * K, 2 * b * LP1)


def _im2col_pool_2d(x2):
    """(B, C2, H, W) -> (C2*K*K, 4*B*(H//2)*(W//2)); phase slowest on lanes."""
    b = x2.shape[0]
    xp = jnp.pad(x2, ((0, 0), (0, 0), (1, 1), (1, 1)))
    taps = jnp.stack([xp[:, :, di:di + SP, dj:dj + SP]
                      for di in range(K) for dj in range(K)], axis=0)     # (9,B,C,H,W)
    taps = taps.reshape(K * K, b, C2_IN, HP, 2, HP, 2)        # h = 2i+pi, w = 2j+pj
    return taps.transpose(2, 0, 4, 6, 1, 3, 5).reshape(C2_IN * K * K, 4 * b * NPOS2)


# ---------------------------------------------------------------------------
# Full model: one pallas_call, 5 input DMAs, no scratch.
# ---------------------------------------------------------------------------
def dual_branch_model_afe(x1, x2, params):
    batch = x1.shape[0]
    cols1 = _im2col_pool_1d(x1)
    cols2 = _im2col_pool_2d(x2)
    vmem = pl.BlockSpec(memory_space=pltpu.MemorySpace.VMEM)
    kernel = functools.partial(_dual_branch_kernel, batch=batch)
    return pl.pallas_call(
        kernel,
        out_shape=jax.ShapeDtypeStruct((batch, 1), jnp.float32),
        in_specs=[vmem] * 5,
        out_specs=vmem,
    )(cols1, cols2, params["p_small"], params["w_big"], params["w_mlp"])


# ---------------------------------------------------------------------------
# Parameter construction: everything pre-packed for the kernel.
#   p_small : (16, 640)  f32   all small tensors
#   w_big   : (640, 1536) bf16 [w_spatial | w_spectral | w_f1]  (in, out) layout
#   w_mlp   : (256, 192)  bf16 [w_f2 | w_f3(rows 0:128)]
# ---------------------------------------------------------------------------
def init_params(key):
    keys = jax.random.split(key, 18)
    sc = 0.12

    def rnd(k, shape):
        return sc * jax.random.normal(k, shape, jnp.float32)

    conv1d_w = rnd(keys[0], (COUT, C1_IN, K))
    conv1d_b = rnd(keys[1], (COUT,))
    conv2d_w = rnd(keys[2], (COUT, C2_IN, K, K))
    conv2d_b = rnd(keys[3], (COUT,))
    w_spatial = rnd(keys[4], (D, D))
    b_spatial = rnd(keys[5], (D,))
    w_spectral = rnd(keys[6], (D, D))
    b_spectral = rnd(keys[7], (D,))
    w_attn = rnd(keys[8], (D,))
    b_attn = rnd(keys[9], ())
    w_f1 = rnd(keys[10], (D, F1))
    b_f1 = rnd(keys[11], (F1,))
    w_f2 = rnd(keys[12], (F1, F2))
    b_f2 = rnd(keys[13], (F2,))
    w_f3 = rnd(keys[14], (F2, F3))
    b_f3 = rnd(keys[15], (F3,))
    w_out = rnd(keys[16], (F3,))
    b_out = rnd(keys[17], ())

    p = jnp.zeros((16, DP), jnp.float32)
    p = p.at[0:COUT, _C1W_LO:_C1W_HI].set(conv1d_w.reshape(COUT, -1))
    p = p.at[0:COUT, _C1B].set(conv1d_b)
    p = p.at[0:COUT, _C2W_LO:_C2W_HI].set(conv2d_w.reshape(COUT, -1))
    p = p.at[0:COUT, _C2B].set(conv2d_b)
    p = p.at[_R_BSP, 0:D].set(b_spatial)
    p = p.at[_R_BSC, 0:D].set(b_spectral)
    p = p.at[_R_GSP, 0:D].set(jnp.ones((D,), jnp.float32))   # LayerNorm gamma = 1
    p = p.at[_R_GSC, 0:D].set(jnp.ones((D,), jnp.float32))   # (betas rows 11/13 = 0)
    p = p.at[_R_ATT, 0:D].set(w_attn)
    p = p.at[_R_MISC, 0:F1].set(b_f1)
    p = p.at[_R_MISC, F1:F1 + F2].set(b_f2)
    p = p.at[_R_MISC, F1 + F2:F1 + F2 + F3].set(b_f3)
    p = p.at[_R_MISC, _OFF_WOUT:_OFF_WOUT + F3].set(w_out)
    p = p.at[_R_MISC, _OFF_BATT].set(b_attn)
    p = p.at[_R_MISC, _OFF_BOUT].set(b_out)

    def pad2(w, r, c):
        return jnp.pad(w, ((0, r - w.shape[0]), (0, c - w.shape[1])))

    w_big = jnp.concatenate(
        [pad2(w_spatial, DP, DP), pad2(w_spectral, DP, DP), pad2(w_f1, DP, F1)],
        axis=1).astype(jnp.bfloat16)                           # (640, 1536)
    w_mlp = jnp.concatenate([w_f2, pad2(w_f3, F1, F3)],
                            axis=1).astype(jnp.bfloat16)       # (256, 192)
    return {"p_small": p, "w_big": w_big, "w_mlp": w_mlp}


# ---------------------------------------------------------------------------
# Pure-JAX reference (f32 math on the same bf16-rounded weights).
# ---------------------------------------------------------------------------
def _reference_forward(x1, x2, params):
    p = params["p_small"]
    wa = params["w_big"].astype(jnp.float32)
    wb = params["w_mlp"].astype(jnp.float32)
    batch = x1.shape[0]

    w1 = p[0:COUT, _C1W_LO:_C1W_HI].reshape(COUT, C1_IN, K)
    b1 = p[0:COUT, _C1B]
    w2 = p[0:COUT, _C2W_LO:_C2W_HI].reshape(COUT, C2_IN, K, K)
    b2 = p[0:COUT, _C2B]

    y1 = lax.conv_general_dilated(x1, w1, (1,), [(1, 1)],
                                  dimension_numbers=("NCH", "OIH", "NCH"))
    y1 = jnp.maximum(y1 + b1[None, :, None], 0.0)
    y1 = lax.reduce_window(y1, -jnp.inf, lax.max, (1, 1, 2), (1, 1, 2), "VALID")
    y2 = lax.conv_general_dilated(x2, w2, (1, 1), [(1, 1), (1, 1)],
                                  dimension_numbers=("NCHW", "OIHW", "NCHW"))
    y2 = jnp.maximum(y2 + b2[None, :, None, None], 0.0)
    y2 = lax.reduce_window(y2, -jnp.inf, lax.max, (1, 1, 2, 2), (1, 1, 2, 2), "VALID")
    comb = jnp.concatenate([y1.reshape(batch, -1), y2.reshape(batch, -1)], axis=1)

    def bf16(v):  # kernel feeds the MXU bf16 activations
        return v.astype(jnp.bfloat16).astype(jnp.float32)

    def ln(v, g, be):
        mu = jnp.mean(v, axis=-1, keepdims=True)
        var = jnp.mean((v - mu) ** 2, axis=-1, keepdims=True)
        return (v - mu) * lax.rsqrt(var + 1e-5) * g + be

    def gelu(v):
        return 0.5 * v * (1.0 + lax.erf(v * 0.7071067811865476))

    spa = gelu(ln(bf16(comb) @ wa[0:D, 0:D] + p[_R_BSP, 0:D],
                  p[_R_GSP, 0:D], p[_R_ESP, 0:D]))
    spe = gelu(ln(bf16(comb) @ wa[0:D, DP:DP + D] + p[_R_BSC, 0:D],
                  p[_R_GSC, 0:D], p[_R_ESC, 0:D]))

    watt = p[_R_ATT, 0:D]
    att = jnp.stack([spa @ watt, spe @ watt], axis=1) + p[_R_MISC, _OFF_BATT]
    aw = jax.nn.softmax(att, axis=1)
    agg = aw[:, 0:1] * spa + aw[:, 1:2] * spe

    h = jnp.maximum(bf16(agg) @ wa[0:D, 2 * DP:2 * DP + F1] + p[_R_MISC, 0:F1], 0.0)
    h = jnp.maximum(bf16(h) @ wb[:, 0:F2] + p[_R_MISC, F1:F1 + F2], 0.0)
    h = jnp.maximum(bf16(h) @ wb[0:F2, F2:F2 + F3]
                    + p[_R_MISC, F1 + F2:F1 + F2 + F3], 0.0)
    logit = h @ p[_R_MISC, _OFF_WOUT:_OFF_WOUT + F3] + p[_R_MISC, _OFF_BOUT]
    return jax.nn.sigmoid(logit)[:, None]


if __name__ == "__main__":
    root = jax.random.PRNGKey(0)
    k_x1, k_x2, k_p = jax.random.split(root, 3)

    batch = 2
    x1 = jax.random.normal(k_x1, (batch, C1_IN, SEQ), jnp.float32)
    x2 = jax.random.normal(k_x2, (batch, C2_IN, SP, SP), jnp.float32)
    params = init_params(k_p)

    fwd = jax.jit(dual_branch_model_afe)
    out = jax.block_until_ready(fwd(x1, x2, params))
    ref = jax.block_until_ready(_reference_forward(x1, x2, params))

    assert out.shape == (batch, 1)
    assert bool(jnp.all(jnp.isfinite(out)))
    assert bool(jnp.max(jnp.abs(out - ref)) < 5e-3)
    print("KERNEL_OK")
</pallas_src>

<mosaic_0001>
module attributes {stable_mosaic.version = 11 : i64} {
  func.func @_dual_branch_kernel(%arg0: memref<12x32xf32, #tpu.memory_space<vmem>>, %arg1: memref<36x512xf32, #tpu.memory_space<vmem>>, %arg2: memref<16x640xf32, #tpu.memory_space<vmem>>, %arg3: memref<640x1536xbf16, #tpu.memory_space<vmem>>, %arg4: memref<256x192xbf16, #tpu.memory_space<vmem>>, %arg5: memref<2x1xf32, #tpu.memory_space<vmem>>) attributes {dimension_semantics = [], scalar_prefetch = 0 : i64, scratch_operands = 0 : i64, tpu.core_type = #tpu.core_type<tc>} {
    %c0 = arith.constant 0 : index
    %c0_0 = arith.constant 0 : index
    %0 = vector.load %arg2[%c0, %c0_0] : memref<16x640xf32, #tpu.memory_space<vmem>>, vector<8x12xf32>
    %c0_1 = arith.constant 0 : index
    %c12 = arith.constant 12 : index
    %1 = vector.load %arg2[%c0_1, %c12] : memref<16x640xf32, #tpu.memory_space<vmem>>, vector<8x1xf32>
    %c0_2 = arith.constant 0 : index
    %c0_3 = arith.constant 0 : index
    %2 = vector.load %arg0[%c0_2, %c0_3] : memref<12x32xf32, #tpu.memory_space<vmem>>, vector<12x32xf32>
    %cst = arith.constant dense<0.000000e+00> : vector<8x32xf32>
    %3 = tpu.matmul %0, %2, %cst {dimension_numbers = #tpu.dot_dimension_numbers<[1], [0], [0], [1], [0, 0, 1, 1], [], []>} : vector<8x12xf32>, vector<12x32xf32>, vector<8x32xf32> -> vector<8x32xf32>
    %4 = vector.broadcast %1 : vector<8x1xf32> to vector<8x32xf32>
    %5 = arith.addf %3, %4 : vector<8x32xf32>
    %cst_4 = arith.constant 0.000000e+00 : f32
    %6 = vector.broadcast %cst_4 : f32 to vector<8x32xf32>
    %7 = arith.maximumf %5, %6 : vector<8x32xf32>
    %8 = vector.extract_strided_slice %7 {offsets = [0, 0], sizes = [8, 16], strides = [1, 1]} : vector<8x32xf32> to vector<8x16xf32>
    %9 = vector.extract_strided_slice %7 {offsets = [0, 16], sizes = [8, 16], strides = [1, 1]} : vector<8x32xf32> to vector<8x16xf32>
    %10 = arith.maximumf %8, %9 : vector<8x16xf32>
    %c0_5 = arith.constant 0 : index
    %c16 = arith.constant 16 : index
    %11 = vector.load %arg2[%c0_5, %c16] : memref<16x640xf32, #tpu.memory_space<vmem>>, vector<8x36xf32>
    %c0_6 = arith.constant 0 : index
    %c52 = arith.constant 52 : index
    %12 = vector.load %arg2[%c0_6, %c52] : memref<16x640xf32, #tpu.memory_space<vmem>>, vector<8x1xf32>
    %c0_7 = arith.constant 0 : index
    %c0_8 = arith.constant 0 : index
    %13 = vector.load %arg1[%c0_7, %c0_8] : memref<36x512xf32, #tpu.memory_space<vmem>>, vector<36x512xf32>
    %cst_9 = arith.constant dense<0.000000e+00> : vector<8x512xf32>
    %14 = tpu.matmul %11, %13, %cst_9 {dimension_numbers = #tpu.dot_dimension_numbers<[1], [0], [0], [1], [0, 0, 1, 1], [], []>} : vector<8x36xf32>, vector<36x512xf32>, vector<8x512xf32> -> vector<8x512xf32>
    %15 = vector.broadcast %12 : vector<8x1xf32> to vector<8x512xf32>
    %16 = arith.addf %14, %15 : vector<8x512xf32>
    %cst_10 = arith.constant 0.000000e+00 : f32
    %17 = vector.broadcast %cst_10 : f32 to vector<8x512xf32>
    %18 = arith.maximumf %16, %17 : vector<8x512xf32>
    %19 = vector.extract_strided_slice %18 {offsets = [0, 0], sizes = [8, 128], strides = [1, 1]} : vector<8x512xf32> to vector<8x128xf32>
    %20 = vector.extract_strided_slice %18 {offsets = [0, 128], sizes = [8, 128], strides = [1, 1]} : vector<8x512xf32> to vector<8x128xf32>
    %21 = arith.maximumf %19, %20 : vector<8x128xf32>
    %22 = vector.extract_strided_slice %18 {offsets = [0, 256], sizes = [8, 128], strides = [1, 1]} : vector<8x512xf32> to vector<8x128xf32>
    %23 = vector.extract_strided_slice %18 {offsets = [0, 384], sizes = [8, 128], strides = [1, 1]} : vector<8x512xf32> to vector<8x128xf32>
    %24 = arith.maximumf %22, %23 : vector<8x128xf32>
    %25 = arith.maximumf %21, %24 : vector<8x128xf32>
    %cst_11 = arith.constant 0.000000e+00 : f32
    %26 = vector.broadcast %cst_11 : f32 to vector<1x64xf32>
    %27 = vector.extract_strided_slice %10 {offsets = [0, 0], sizes = [1, 8], strides = [1, 1]} : vector<8x16xf32> to vector<1x8xf32>
    %28 = vector.extract_strided_slice %10 {offsets = [1, 0], sizes = [1, 8], strides = [1, 1]} : vector<8x16xf32> to vector<1x8xf32>
    %29 = vector.extract_strided_slice %10 {offsets = [2, 0], sizes = [1, 8], strides = [1, 1]} : vector<8x16xf32> to vector<1x8xf32>
    %30 = vector.extract_strided_slice %10 {offsets = [3, 0], sizes = [1, 8], strides = [1, 1]} : vector<8x16xf32> to vector<1x8xf32>
    %31 = vector.extract_strided_slice %10 {offsets = [4, 0], sizes = [1, 8], strides = [1, 1]} : vector<8x16xf32> to vector<1x8xf32>
    %32 = vector.extract_strided_slice %10 {offsets = [5, 0], sizes = [1, 8], strides = [1, 1]} : vector<8x16xf32> to vector<1x8xf32>
    %33 = vector.extract_strided_slice %10 {offsets = [6, 0], sizes = [1, 8], strides = [1, 1]} : vector<8x16xf32> to vector<1x8xf32>
    %34 = vector.extract_strided_slice %10 {offsets = [7, 0], sizes = [1, 8], strides = [1, 1]} : vector<8x16xf32> to vector<1x8xf32>
    %35 = vector.extract_strided_slice %25 {offsets = [0, 0], sizes = [1, 64], strides = [1, 1]} : vector<8x128xf32> to vector<1x64xf32>
    %36 = vector.extract_strided_slice %25 {offsets = [1, 0], sizes = [1, 64], strides = [1, 1]} : vector<8x128xf32> to vector<1x64xf32>
    %37 = vector.extract_strided_slice %25 {offsets = [2, 0], sizes = [1, 64], strides = [1, 1]} : vector<8x128xf32> to vector<1x64xf32>
    %38 = vector.extract_strided_slice %25 {offsets = [3, 0], sizes = [1, 64], strides = [1, 1]} : vector<8x128xf32> to vector<1x64xf32>
    %39 = vector.extract_strided_slice %25 {offsets = [4, 0], sizes = [1, 64], strides = [1, 1]} : vector<8x128xf32> to vector<1x64xf32>
    %40 = vector.extract_strided_slice %25 {offsets = [5, 0], sizes = [1, 64], strides = [1, 1]} : vector<8x128xf32> to vector<1x64xf32>
    %41 = vector.extract_strided_slice %25 {offsets = [6, 0], sizes = [1, 64], strides = [1, 1]} : vector<8x128xf32> to vector<1x64xf32>
    %42 = vector.extract_strided_slice %25 {offsets = [7, 0], sizes = [1, 64], strides = [1, 1]} : vector<8x128xf32> to vector<1x64xf32>
    %43 = tpu.concatenate %27, %28, %29, %30, %31, %32, %33, %34, %35, %36, %37, %38, %39, %40, %41, %42 in 1 : vector<1x8xf32>, vector<1x8xf32>, vector<1x8xf32>, vector<1x8xf32>, vector<1x8xf32>, vector<1x8xf32>, vector<1x8xf32>, vector<1x8xf32>, vector<1x64xf32>, vector<1x64xf32>, vector<1x64xf32>, vector<1x64xf32>, vector<1x64xf32>, vector<1x64xf32>, vector<1x64xf32>, vector<1x64xf32> -> vector<1x576xf32>
    %44 = tpu.concatenate %43, %26 in 1 : vector<1x576xf32>, vector<1x64xf32> -> vector<1x640xf32>
    %45 = vector.extract_strided_slice %10 {offsets = [0, 8], sizes = [1, 8], strides = [1, 1]} : vector<8x16xf32> to vector<1x8xf32>
    %46 = vector.extract_strided_slice %10 {offsets = [1, 8], sizes = [1, 8], strides = [1, 1]} : vector<8x16xf32> to vector<1x8xf32>
    %47 = vector.extract_strided_slice %10 {offsets = [2, 8], sizes = [1, 8], strides = [1, 1]} : vector<8x16xf32> to vector<1x8xf32>
    %48 = vector.extract_strided_slice %10 {offsets = [3, 8], sizes = [1, 8], strides = [1, 1]} : vector<8x16xf32> to vector<1x8xf32>
    %49 = vector.extract_strided_slice %10 {offsets = [4, 8], sizes = [1, 8], strides = [1, 1]} : vector<8x16xf32> to vector<1x8xf32>
    %50 = vector.extract_strided_slice %10 {offsets = [5, 8], sizes = [1, 8], strides = [1, 1]} : vector<8x16xf32> to vector<1x8xf32>
    %51 = vector.extract_strided_slice %10 {offsets = [6, 8], sizes = [1, 8], strides = [1, 1]} : vector<8x16xf32> to vector<1x8xf32>
    %52 = vector.extract_strided_slice %10 {offsets = [7, 8], sizes = [1, 8], strides = [1, 1]} : vector<8x16xf32> to vector<1x8xf32>
    %53 = vector.extract_strided_slice %25 {offsets = [0, 64], sizes = [1, 64], strides = [1, 1]} : vector<8x128xf32> to vector<1x64xf32>
    %54 = vector.extract_strided_slice %25 {offsets = [1, 64], sizes = [1, 64], strides = [1, 1]} : vector<8x128xf32> to vector<1x64xf32>
    %55 = vector.extract_strided_slice %25 {offsets = [2, 64], sizes = [1, 64], strides = [1, 1]} : vector<8x128xf32> to vector<1x64xf32>
    %56 = vector.extract_strided_slice %25 {offsets = [3, 64], sizes = [1, 64], strides = [1, 1]} : vector<8x128xf32> to vector<1x64xf32>
    %57 = vector.extract_strided_slice %25 {offsets = [4, 64], sizes = [1, 64], strides = [1, 1]} : vector<8x128xf32> to vector<1x64xf32>
    %58 = vector.extract_strided_slice %25 {offsets = [5, 64], sizes = [1, 64], strides = [1, 1]} : vector<8x128xf32> to vector<1x64xf32>
    %59 = vector.extract_strided_slice %25 {offsets = [6, 64], sizes = [1, 64], strides = [1, 1]} : vector<8x128xf32> to vector<1x64xf32>
    %60 = vector.extract_strided_slice %25 {offsets = [7, 64], sizes = [1, 64], strides = [1, 1]} : vector<8x128xf32> to vector<1x64xf32>
    %61 = tpu.concatenate %45, %46, %47, %48, %49, %50, %51, %52, %53, %54, %55, %56, %57, %58, %59, %60 in 1 : vector<1x8xf32>, vector<1x8xf32>, vector<1x8xf32>, vector<1x8xf32>, vector<1x8xf32>, vector<1x8xf32>, vector<1x8xf32>, vector<1x8xf32>, vector<1x64xf32>, vector<1x64xf32>, vector<1x64xf32>, vector<1x64xf32>, vector<1x64xf32>, vector<1x64xf32>, vector<1x64xf32>, vector<1x64xf32> -> vector<1x576xf32>
    %62 = tpu.concatenate %61, %26 in 1 : vector<1x576xf32>, vector<1x64xf32> -> vector<1x640xf32>
    %63 = tpu.concatenate %44, %62 in 0 : vector<1x640xf32>, vector<1x640xf32> -> vector<2x640xf32>
    %64 = arith.truncf %63 : vector<2x640xf32> to vector<2x640xbf16>
    %c0_12 = arith.constant 0 : index
    %c0_13 = arith.constant 0 : index
    %65 = vector.load %arg3[%c0_12, %c0_13] : memref<640x1536xbf16, #tpu.memory_space<vmem>>, vector<640x1280xbf16>
    %cst_14 = arith.constant dense<0.000000e+00> : vector<2x1280xf32>
    %66 = tpu.matmul %64, %65, %cst_14 {dimension_numbers = #tpu.dot_dimension_numbers<[1], [0], [0], [1], [0, 0, 1, 1], [], []>} : vector<2x640xbf16>, vector<640x1280xbf16>, vector<2x1280xf32> -> vector<2x1280xf32>
    %67 = tpu.iota {dimensions = array<i32: 1>} : vector<1x640xi32>
    %c576_i32 = arith.constant 576 : i32
    %68 = vector.broadcast %c576_i32 : i32 to vector<1x640xi32>
    %69 = arith.cmpi slt, %67, %68 : vector<1x640xi32>
    %70 = arith.extui %69 : vector<1x640xi1> to vector<1x640xi32>
    %71 = arith.sitofp %70 : vector<1x640xi32> to vector<1x640xf32>
    %72 = vector.extract_strided_slice %66 {offsets = [0, 0], sizes = [2, 640], strides = [1, 1]} : vector<2x1280xf32> to vector<2x640xf32>
    %c8 = arith.constant 8 : index
    %c0_15 = arith.constant 0 : index
    %73 = vector.load %arg2[%c8, %c0_15] : memref<16x640xf32, #tpu.memory_space<vmem>>, vector<1x640xf32>
    %74 = vector.broadcast %73 : vector<1x640xf32> to vector<2x640xf32>
    %75 = arith.addf %72, %74 : vector<2x640xf32>
    %c10 = arith.constant 10 : index
    %c0_16 = arith.constant 0 : index
    %76 = vector.load %arg2[%c10, %c0_16] : memref<16x640xf32, #tpu.memory_space<vmem>>, vector<1x640xf32>
    %c11 = arith.constant 11 : index
    %c0_17 = arith.constant 0 : index
    %77 = vector.load %arg2[%c11, %c0_17] : memref<16x640xf32, #tpu.memory_space<vmem>>, vector<1x640xf32>
    %cst_18 = arith.constant dense<0.000000e+00> : vector<2xf32>
    %78 = vector.multi_reduction <add>, %75, %cst_18 [1] : vector<2x640xf32> to vector<2xf32>
    %79 = vector.shape_cast %78 : vector<2xf32> to vector<2x1xf32>
    %cst_19 = arith.constant 0.00173611112 : f32
    %80 = vector.broadcast %cst_19 : f32 to vector<2x1xf32>
    %81 = arith.mulf %79, %80 : vector<2x1xf32>
    %82 = vector.broadcast %81 : vector<2x1xf32> to vector<2x640xf32>
    %83 = arith.subf %75, %82 : vector<2x640xf32>
    %84 = vector.broadcast %71 : vector<1x640xf32> to vector<2x640xf32>
    %85 = arith.mulf %83, %84 : vector<2x640xf32>
    %86 = arith.mulf %85, %85 : vector<2x640xf32>
    %cst_20 = arith.constant dense<0.000000e+00> : vector<2xf32>
    %87 = vector.multi_reduction <add>, %86, %cst_20 [1] : vector<2x640xf32> to vector<2xf32>
    %88 = vector.shape_cast %87 : vector<2xf32> to vector<2x1xf32>
    %cst_21 = arith.constant 0.00173611112 : f32
    %89 = vector.broadcast %cst_21 : f32 to vector<2x1xf32>
    %90 = arith.mulf %88, %89 : vector<2x1xf32>
    %cst_22 = arith.constant 9.99999974E-6 : f32
    %91 = vector.broadcast %cst_22 : f32 to vector<2x1xf32>
    %92 = arith.addf %90, %91 : vector<2x1xf32>
    %93 = math.rsqrt %92 : vector<2x1xf32>
    %94 = vector.broadcast %93 : vector<2x1xf32> to vector<2x640xf32>
    %95 = arith.mulf %85, %94 : vector<2x640xf32>
    %96 = vector.broadcast %76 : vector<1x640xf32> to vector<2x640xf32>
    %97 = arith.mulf %95, %96 : vector<2x640xf32>
    %98 = vector.broadcast %77 : vector<1x640xf32> to vector<2x640xf32>
    %99 = arith.addf %97, %98 : vector<2x640xf32>
    %cst_23 = arith.constant 5.000000e-01 : f32
    %100 = vector.broadcast %cst_23 : f32 to vector<2x640xf32>
    %101 = arith.mulf %100, %99 : vector<2x640xf32>
    %cst_24 = arith.constant 0.707106769 : f32
    %102 = vector.broadcast %cst_24 : f32 to vector<2x640xf32>
    %103 = arith.mulf %99, %102 : vector<2x640xf32>
    %104 = math.erf %103 : vector<2x640xf32>
    %cst_25 = arith.constant 1.000000e+00 : f32
    %105 = vector.broadcast %cst_25 : f32 to vector<2x640xf32>
    %106 = arith.addf %105, %104 : vector<2x640xf32>
    %107 = arith.mulf %101, %106 : vector<2x640xf32>
    %108 = vector.extract_strided_slice %66 {offsets = [0, 640], sizes = [2, 640], strides = [1, 1]} : vector<2x1280xf32> to vector<2x640xf32>
    %c9 = arith.constant 9 : index
    %c0_26 = arith.constant 0 : index
    %109 = vector.load %arg2[%c9, %c0_26] : memref<16x640xf32, #tpu.memory_space<vmem>>, vector<1x640xf32>
    %110 = vector.broadcast %109 : vector<1x640xf32> to vector<2x640xf32>
    %111 = arith.addf %108, %110 : vector<2x640xf32>
    %c12_27 = arith.constant 12 : index
    %c0_28 = arith.constant 0 : index
    %112 = vector.load %arg2[%c12_27, %c0_28] : memref<16x640xf32, #tpu.memory_space<vmem>>, vector<1x640xf32>
    %c13 = arith.constant 13 : index
    %c0_29 = arith.constant 0 : index
    %113 = vector.load %arg2[%c13, %c0_29] : memref<16x640xf32, #tpu.memory_space<vmem>>, vector<1x640xf32>
    %cst_30 = arith.constant dense<0.000000e+00> : vector<2xf32>
    %114 = vector.multi_reduction <add>, %111, %cst_30 [1] : vector<2x640xf32> to vector<2xf32>
    %115 = vector.shape_cast %114 : vector<2xf32> to vector<2x1xf32>
    %cst_31 = arith.constant 0.00173611112 : f32
    %116 = vector.broadcast %cst_31 : f32 to vector<2x1xf32>
    %117 = arith.mulf %115, %116 : vector<2x1xf32>
    %118 = vector.broadcast %117 : vector<2x1xf32> to vector<2x640xf32>
    %119 = arith.subf %111, %118 : vector<2x640xf32>
    %120 = vector.broadcast %71 : vector<1x640xf32> to vector<2x640xf32>
    %121 = arith.mulf %119, %120 : vector<2x640xf32>
    %122 = arith.mulf %121, %121 : vector<2x640xf32>
    %cst_32 = arith.constant dense<0.000000e+00> : vector<2xf32>
    %123 = vector.multi_reduction <add>, %122, %cst_32 [1] : vector<2x640xf32> to vector<2xf32>
    %124 = vector.shape_cast %123 : vector<2xf32> to vector<2x1xf32>
    %cst_33 = arith.constant 0.00173611112 : f32
    %125 = vector.broadcast %cst_33 : f32 to vector<2x1xf32>
    %126 = arith.mulf %124, %125 : vector<2x1xf32>
    %cst_34 = arith.constant 9.99999974E-6 : f32
    %127 = vector.broadcast %cst_34 : f32 to vector<2x1xf32>
    %128 = arith.addf %126, %127 : vector<2x1xf32>
    %129 = math.rsqrt %128 : vector<2x1xf32>
    %130 = vector.broadcast %129 : vector<2x1xf32> to vector<2x640xf32>
    %131 = arith.mulf %121, %130 : vector<2x640xf32>
    %132 = vector.broadcast %112 : vector<1x640xf32> to vector<2x640xf32>
    %133 = arith.mulf %131, %132 : vector<2x640xf32>
    %134 = vector.broadcast %113 : vector<1x640xf32> to vector<2x640xf32>
    %135 = arith.addf %133, %134 : vector<2x640xf32>
    %cst_35 = arith.constant 5.000000e-01 : f32
    %136 = vector.broadcast %cst_35 : f32 to vector<2x640xf32>
    %137 = arith.mulf %136, %135 : vector<2x640xf32>
    %cst_36 = arith.constant 0.707106769 : f32
    %138 = vector.broadcast %cst_36 : f32 to vector<2x640xf32>
    %139 = arith.mulf %135, %138 : vector<2x640xf32>
    %140 = math.erf %139 : vector<2x640xf32>
    %cst_37 = arith.constant 1.000000e+00 : f32
    %141 = vector.broadcast %cst_37 : f32 to vector<2x640xf32>
    %142 = arith.addf %141, %140 : vector<2x640xf32>
    %143 = arith.mulf %137, %142 : vector<2x640xf32>
    %c14 = arith.constant 14 : index
    %c0_38 = arith.constant 0 : index
    %144 = vector.load %arg2[%c14, %c0_38] : memref<16x640xf32, #tpu.memory_space<vmem>>, vector<1x640xf32>
    %c15 = arith.constant 15 : index
    %c608 = arith.constant 608 : index
    %145 = vector.load %arg2[%c15, %c608] : memref<16x640xf32, #tpu.memory_space<vmem>>, vector<1x1xf32>
    %146 = vector.broadcast %144 : vector<1x640xf32> to vector<2x640xf32>
    %147 = arith.mulf %107, %146 : vector<2x640xf32>
    %cst_39 = arith.constant dense<0.000000e+00> : vector<2xf32>
    %148 = vector.multi_reduction <add>, %147, %cst_39 [1] : vector<2x640xf32> to vector<2xf32>
    %149 = vector.shape_cast %148 : vector<2xf32> to vector<2x1xf32>
    %150 = vector.broadcast %145 : vector<1x1xf32> to vector<2x1xf32>
    %151 = arith.addf %149, %150 : vector<2x1xf32>
    %152 = vector.broadcast %144 : vector<1x640xf32> to vector<2x640xf32>
    %153 = arith.mulf %143, %152 : vector<2x640xf32>
    %cst_40 = arith.constant dense<0.000000e+00> : vector<2xf32>
    %154 = vector.multi_reduction <add>, %153, %cst_40 [1] : vector<2x640xf32> to vector<2xf32>
    %155 = vector.shape_cast %154 : vector<2xf32> to vector<2x1xf32>
    %156 = vector.broadcast %145 : vector<1x1xf32> to vector<2x1xf32>
    %157 = arith.addf %155, %156 : vector<2x1xf32>
    %158 = arith.maximumf %151, %157 : vector<2x1xf32>
    %159 = arith.subf %151, %158 : vector<2x1xf32>
    %160 = math.exp %159 : vector<2x1xf32>
    %161 = arith.subf %157, %158 : vector<2x1xf32>
    %162 = math.exp %161 : vector<2x1xf32>
    %163 = arith.addf %160, %162 : vector<2x1xf32>
    %164 = tpu.reciprocal %163 {approx = true} : vector<2x1xf32> -> vector<2x1xf32>
    %165 = arith.mulf %160, %164 : vector<2x1xf32>
    %166 = vector.broadcast %165 : vector<2x1xf32> to vector<2x640xf32>
    %167 = arith.mulf %166, %107 : vector<2x640xf32>
    %168 = arith.mulf %162, %164 : vector<2x1xf32>
    %169 = vector.broadcast %168 : vector<2x1xf32> to vector<2x640xf32>
    %170 = arith.mulf %169, %143 : vector<2x640xf32>
    %171 = arith.addf %167, %170 : vector<2x640xf32>
    %172 = arith.truncf %171 : vector<2x640xf32> to vector<2x640xbf16>
    %c0_41 = arith.constant 0 : index
    %c1280 = arith.constant 1280 : index
    %173 = vector.load %arg3[%c0_41, %c1280] : memref<640x1536xbf16, #tpu.memory_space<vmem>>, vector<640x256xbf16>
    %cst_42 = arith.constant dense<0.000000e+00> : vector<2x256xf32>
    %174 = tpu.matmul %172, %173, %cst_42 {dimension_numbers = #tpu.dot_dimension_numbers<[1], [0], [0], [1], [0, 0, 1, 1], [], []>} : vector<2x640xbf16>, vector<640x256xbf16>, vector<2x256xf32> -> vector<2x256xf32>
    %c15_43 = arith.constant 15 : index
    %c0_44 = arith.constant 0 : index
    %175 = vector.load %arg2[%c15_43, %c0_44] : memref<16x640xf32, #tpu.memory_space<vmem>>, vector<1x256xf32>
    %176 = vector.broadcast %175 : vector<1x256xf32> to vector<2x256xf32>
    %177 = arith.addf %174, %176 : vector<2x256xf32>
    %cst_45 = arith.constant 0.000000e+00 : f32
    %178 = vector.broadcast %cst_45 : f32 to vector<2x256xf32>
    %179 = arith.maximumf %177, %178 : vector<2x256xf32>
    %180 = arith.truncf %179 : vector<2x256xf32> to vector<2x256xbf16>
    %c0_46 = arith.constant 0 : index
    %c0_47 = arith.constant 0 : index
    %181 = vector.load %arg4[%c0_46, %c0_47] : memref<256x192xbf16, #tpu.memory_space<vmem>>, vector<256x128xbf16>
    %cst_48 = arith.constant dense<0.000000e+00> : vector<2x128xf32>
    %182 = tpu.matmul %180, %181, %cst_48 {dimension_numbers = #tpu.dot_dimension_numbers<[1], [0], [0], [1], [0, 0, 1, 1], [], []>} : vector<2x256xbf16>, vector<256x128xbf16>, vector<2x128xf32> -> vector<2x128xf32>
    %c15_49 = arith.constant 15 : index
    %c256 = arith.constant 256 : index
    %183 = vector.load %arg2[%c15_49, %c256] : memref<16x640xf32, #tpu.memory_space<vmem>>, vector<1x128xf32>
    %184 = vector.broadcast %183 : vector<1x128xf32> to vector<2x128xf32>
    %185 = arith.addf %182, %184 : vector<2x128xf32>
    %cst_50 = arith.constant 0.000000e+00 : f32
    %186 = vector.broadcast %cst_50 : f32 to vector<2x128xf32>
    %187 = arith.maximumf %185, %186 : vector<2x128xf32>
    %188 = arith.truncf %187 : vector<2x128xf32> to vector<2x128xbf16>
    %c0_51 = arith.constant 0 : index
    %c128 = arith.constant 128 : index
    %189 = vector.load %arg4[%c0_51, %c128] : memref<256x192xbf16, #tpu.memory_space<vmem>>, vector<128x64xbf16>
    %cst_52 = arith.constant dense<0.000000e+00> : vector<2x64xf32>
    %190 = tpu.matmul %188, %189, %cst_52 {dimension_numbers = #tpu.dot_dimension_numbers<[1], [0], [0], [1], [0, 0, 1, 1], [], []>} : vector<2x128xbf16>, vector<128x64xbf16>, vector<2x64xf32> -> vector<2x64xf32>
    %c15_53 = arith.constant 15 : index
    %c384 = arith.constant 384 : index
    %191 = vector.load %arg2[%c15_53, %c384] : memref<16x640xf32, #tpu.memory_space<vmem>>, vector<1x64xf32>
    %192 = vector.broadcast %191 : vector<1x64xf32> to vector<2x64xf32>
    %193 = arith.addf %190, %192 : vector<2x64xf32>
    %cst_54 = arith.constant 0.000000e+00 : f32
    %194 = vector.broadcast %cst_54 : f32 to vector<2x64xf32>
    %195 = arith.maximumf %193, %194 : vector<2x64xf32>
    %c15_55 = arith.constant 15 : index
    %c512 = arith.constant 512 : index
    %196 = vector.load %arg2[%c15_55, %c512] : memref<16x640xf32, #tpu.memory_space<vmem>>, vector<1x64xf32>
    %c15_56 = arith.constant 15 : index
    %c609 = arith.constant 609 : index
    %197 = vector.load %arg2[%c15_56, %c609] : memref<16x640xf32, #tpu.memory_space<vmem>>, vector<1x1xf32>
    %198 = vector.broadcast %196 : vector<1x64xf32> to vector<2x64xf32>
    %199 = arith.mulf %195, %198 : vector<2x64xf32>
    %cst_57 = arith.constant dense<0.000000e+00> : vector<2xf32>
    %200 = vector.multi_reduction <add>, %199, %cst_57 [1] : vector<2x64xf32> to vector<2xf32>
    %201 = vector.shape_cast %200 : vector<2xf32> to vector<2x1xf32>
    %202 = vector.broadcast %197 : vector<1x1xf32> to vector<2x1xf32>
    %203 = arith.addf %201, %202 : vector<2x1xf32>
    %204 = arith.negf %203 : vector<2x1xf32>
    %205 = math.exp %204 : vector<2x1xf32>
    %cst_58 = arith.constant 1.000000e+00 : f32
    %206 = vector.broadcast %cst_58 : f32 to vector<2x1xf32>
    %207 = arith.addf %206, %205 : vector<2x1xf32>
    %208 = arith.divf %206, %207 : vector<2x1xf32>
    %c0_59 = arith.constant 0 : index
    %c0_60 = arith.constant 0 : index
    %209 = vector.load %arg5[%c0_59, %c0_60] : memref<2x1xf32, #tpu.memory_space<vmem>>, vector<2x1xf32>
    tpu.vector_store %arg5[%c0_59, %c0_60], %208 {strides = array<i32>} : memref<2x1xf32, #tpu.memory_space<vmem>>, vector<2x1xf32>,
    return
  }
}

</mosaic_0001>

<bundles_post_ra>
// kernel: dual_branch_model_afe.1
= control target key start
LH: loop header
LB: loop body
LE: loop exit
PB: predicated region body
PF: predicated region fallthrough
CT: control target
= control target key end

     0   :  { %vm32_vm0 = vcmask 1043456   ;;  %v6330_v1 = vmov 0.0|0.0   ;;  %s6331_s24 = smov 112   ;;  %vm6332_vm1 = vmmov 1   ;;  %vm6333_vm3 = vmmov 0   ;;  %s6337_s29 = smov 120   ;;  %s8389_s2 = inlined_call_operand.vmem [shape: f32[16,640], index: 2, kind: input, shape index: {}]   ;;  %s8390_s0 = inlined_call_operand.vmem [shape: f32[12,32], index: 0, kind: input, shape index: {}]   ;;  %s8391_s1 = inlined_call_operand.vmem [shape: f32[36,512], index: 1, kind: input, shape index: {}]   ;;  %s8392_s3 = inlined_call_operand.vmem [shape: bf16[640,1536], index: 3, kind: input, shape index: {}]   ;;  %s8393_s4 = inlined_call_operand.vmem [shape: bf16[256,192], index: 4, kind: input, shape index: {}]   ;;  %s8394_s5 = inlined_call_operand.vmem [shape: f32[2,1], index: 5, kind: output, shape index: {}]  }
   0x1   :  { %v21_v0 = vld [vmem:[%s8389_s2] sm:$0xff]  ;;  %5454 = vmatprep.subr.bf16.mxu0 %v6330_v1  ;;  %v23_v3 = vld [vmem:[%s8390_s0 + $0x8] sm:$0xf]  ;;  %vm5456_vm2 = vmpackc.low %vm32_vm0, %vm6332_vm1  ;;  %v6334_v5 = vmov 0.0   ;;  %v6335_v8 = vmov 12   ;;  %vm29_vm4 = vcmask 97280  }
   0x2   :  { %v22_v2 = vld [vmem:[%s8390_s0] sm:$0xff]  ;;  %136 = vrot.lane.b32.xlu0 %v21_v0, %s6331_s24  ;;  %5431 = vmatprep.mubr.msk.f32.mxu0 %vm6333_vm3, %v6334_v5  ;;  %v113_v6 = vld [vmem:[%s8391_s1 + $0x8] sm:$0xff]  ;;  %v115_v10 = vld [vmem:[%s8391_s1 + $0x18] sm:$0xff]  ;;  %v6336_v17 = vmov 52   ;;  %vm138_vm5 = vcmask 293888   ;;  %s6338_s9 = smov 64  }
   0x3   :  { %v5455_v4 = vpack.c.bf16 %v23_v3, %v22_v2  ;;  %v117_v7 = vld [vmem:[%s8391_s1 + $0x28] sm:$0xff]  ;;  %5503 = vset.pattern.permute.xlu0 %v6335_v8  ;;  %v119_v11 = vld [vmem:[%s8391_s1 + $0x38] sm:$0xff]  ;;  %v112_v12 = vld [vmem:[%s8391_s1] sm:$0xff]  ;;  %217 = vmatprep.mubr.f32.mxu1 %v6334_v5  ;;  %s6339_s15 = smov 16   ;;  %s6340_s20 = smov 8   ;;  %vm369_vm6 = vcmask 523264  }
   0x4   :  { %v5458_v9 = vpack.c.bf16 %v117_v7, %v113_v6  ;;  %v5466_v13 = vpack.c.bf16 %v119_v11, %v115_v10  ;;  %v116_v14 = vld [vmem:[%s8391_s1 + $0x20] sm:$0xff]  ;;  %v114_v15 = vld [vmem:[%s8391_s1 + $0x10] sm:$0xff]  ;;  %5504 = vset.pattern.permute.xlu1 %v6336_v17  ;;  %v121_v20 = vld [vmem:[%s8391_s1 + $0x48] sm:$0xff]  ;;  %s6343_s7 = smov 48   ;;  %s6344_s13 = smov 40   ;;  %vm355_vm7 = vcmask 64512  }
   0x5   :  { %5457 = vmatpush3.bf16.msk.msra.mxu0 %vm5456_vm2, %v5455_v4  ;;  %v118_v16 = vld [vmem:[%s8391_s1 + $0x30] sm:$0xff]  ;;  %v5460_v18 = vpack.c.bf16 %v116_v14, %v112_v12  ;;  %v125_v21 = vld [vmem:[%s8391_s1 + $0x68] sm:$0xff]  ;;  %v123_v22 = vld [vmem:[%s8391_s1 + $0x58] sm:$0xff]  ;;  %133 = vperm.xlu1 %5504, %v21_v0   ;;  %vm439_vm8 = vcmask 1040384   ;;  %vm357_vm9 = vcmask 130048   ;;  %vm359_vm10 = vcmask 195584  }
   0x6   :  { %5459 = vmatprep.subr.bf16.mxu1 %v5458_v9  ;;  %v5468_v19 = vpack.c.bf16 %v118_v16, %v114_v15  ;;  %26 = vperm.xlu0 %5503, %v21_v0   ;;  %v5462_v23 = vpack.c.bf16 %v125_v21, %v121_v20  ;;  %v127_v24 = vld [vmem:[%s8391_s1 + $0x78] sm:$0xff]  ;;  %v120_v25 = vld [vmem:[%s8391_s1 + $0x40] sm:$0xff]  ;;  %v122_v29 = vld [vmem:[%s8391_s1 + $0x50] sm:$0xff]  ;;  %vm361_vm11 = vcmask 261120   ;;  %vm363_vm12 = vcmask 326656  }
   0x7   :  { %5467 = vmatprep.subr.bf16.mxu0 %v5466_v13  ;;  %v124_v26 = vld [vmem:[%s8391_s1 + $0x60] sm:$0xff]  ;;  %5461 = vmatpush1.bf16.msra.mxu1 %v5460_v18  ;;  %v5470_v27 = vpack.c.bf16 %v127_v24, %v123_v22  ;;  %v126_v30 = vld [vmem:[%s8391_s1 + $0x70] sm:$0xff]  ;;  %v129_v32 = vld [vmem:[%s8391_s1 + $0x88] sm:$0xf]  ;;  %vm365_vm13 = vcmask 392192   ;;  %vm367_vm14 = vcmask 457728  }
   0x8   :  { %5432 = vmatmul.mubr.msk.f32.vlgmr.msra.gmra.mrb[0].mxu0 %vm29_vm4, %v21_v0  ;;  %v5464_v28 = vpack.c.bf16 %v124_v26, %v120_v25  ;;  %5463 = vmatprep.subr.bf16.mxu1 %v5462_v23  ;;  %v5472_v31 = vpack.c.bf16 %v126_v30, %v122_v29  ;;  %v131_v33 = vld [vmem:[%s8391_s1 + $0x98] sm:$0xf]  ;;  %v128_v34 = vld [vmem:[%s8391_s1 + $0x80] sm:$0xf]  ;;  %v130_v35 = vld [vmem:[%s8391_s1 + $0x90] sm:$0xf] }
   0x9   :  { %5469 = vmatpush1.bf16.msra.mxu0 %v5468_v19  ;;  %288 = vmatprep.mubr.f32.mxu0 %v6334_v5  ;;  %v5552_v42 = vld [vmem:[%s8392_s3] ss:$48 sps:$4 sm:$0xff]   ;;  %v5554_v43 = vld [vmem:[%s8392_s3 + $0x4] ss:$48 sps:$4 sm:$0xff]   ;;  %vm3529_vm15 = vcmask 1041408   ;;  %vm4843_vm1 = vcmask 517120  }
   0xa   :  { %5471 = vmatprep.subr.bf16.mxu0 %v5470_v27  ;;  %v5557_v44 = vld [vmem:[%s8392_s3 + $0x64] ss:$48 sps:$4 sm:$0xff]   ;;  %v5558_v45 = vld [vmem:[%s8392_s3 + $0x600] ss:$48 sps:$4 sm:$0xff]   ;;  %vm4858_vm2 = vcmask 1024  }
   0xb   :  { %5465 = vmatpush1.bf16.msra.mxu1 %v5464_v28  ;;  %v5560_v46 = vld [vmem:[%s8392_s3 + $0x604] ss:$48 sps:$4 sm:$0xff]   ;;  %v5555_v47 = vld [vmem:[%s8392_s3 + $0x60] ss:$48 sps:$4 sm:$0xff]  }
   0xc   :  { %4866 = vmatprep.subr.msk.mxu1 %vm32_vm0, %v129_v32  ;;  %v5563_v48 = vld [vmem:[%s8392_s3 + $0xc4] ss:$48 sps:$4 sm:$0xff]   ;;  %v5564_v49 = vld [vmem:[%s8392_s3 + $0x660] ss:$48 sps:$4 sm:$0xff]  }
   0xd   :  { %5473 = vmatpush1.bf16.msra.mxu0 %v5472_v31  ;;  %v5566_v50 = vld [vmem:[%s8392_s3 + $0x664] ss:$48 sps:$4 sm:$0xff]   ;;  %v5561_v51 = vld [vmem:[%s8392_s3 + $0xc0] ss:$48 sps:$4 sm:$0xff]  }
   0xe   :  { %4869 = vmatprep.subr.msk.mxu0 %vm32_vm0, %v131_v33  ;;  %v5569_v52 = vld [vmem:[%s8392_s3 + $0x124] ss:$48 sps:$4 sm:$0xff]   ;;  %v5570_v54 = vld [vmem:[%s8392_s3 + $0x6c0] ss:$48 sps:$4 sm:$0xff]  }
   0xf   :  { %4867 = vmatpush1.msk.msra.mxu1 %vm32_vm0, %v128_v34  ;;  %v5572_v53 = vld [vmem:[%s8392_s3 + $0x6c4] ss:$48 sps:$4 sm:$0xff]   ;;  %v5567_v56 = vld [vmem:[%s8392_s3 + $0x120] ss:$48 sps:$4 sm:$0xff]  }
  0x10   :  { %2850 = vmatprep.subr.bf16.mxu1 %v5554_v43  ;;  %v5578_v55 = vld [vmem:[%s8392_s3 + $0x724] ss:$48 sps:$4 sm:$0xff]   ;;  %v5576_v58 = vld [vmem:[%s8392_s3 + $0x720] ss:$48 sps:$4 sm:$0xff]  }
  0x11   :  { %4870 = vmatpush1.msk.msra.mxu0 %vm32_vm0, %v130_v35  ;;  %v5575_v57 = vld [vmem:[%s8392_s3 + $0x184] ss:$48 sps:$4 sm:$0xff]   ;;  %v5573_v60 = vld [vmem:[%s8392_s3 + $0x180] ss:$48 sps:$4 sm:$0xff]  }
  0x12   :  { %2891 = vmatprep.subr.bf16.mxu0 %v5560_v46  ;;  %v5584_v59 = vld [vmem:[%s8392_s3 + $0x784] ss:$48 sps:$4 sm:$0xff]   ;;  %v5582_v62 = vld [vmem:[%s8392_s3 + $0x780] ss:$48 sps:$4 sm:$0xff]  }
  0x13   :  { %v5581_v61 = vld [vmem:[%s8392_s3 + $0x1e4] ss:$48 sps:$4 sm:$0xff]   ;;  %v5579_v0 = vld [vmem:[%s8392_s3 + $0x1e0] ss:$48 sps:$4 sm:$0xff]  }
  0x14   :  { %v5590_v63 = vld [vmem:[%s8392_s3 + $0x7e4] ss:$48 sps:$4 sm:$0xff]   ;;  %v5588_v2 = vld [vmem:[%s8392_s3 + $0x7e0] ss:$48 sps:$4 sm:$0xff]  }
  0x15   :  { %v5587_v1 = vld [vmem:[%s8392_s3 + $0x244] ss:$48 sps:$4 sm:$0xff]   ;;  %v5585_v4 = vld [vmem:[%s8392_s3 + $0x240] ss:$48 sps:$4 sm:$0xff]  }
  0x16   :  { %v5596_v3 = vld [vmem:[%s8392_s3 + $0x844] ss:$48 sps:$4 sm:$0xff]   ;;  %v5591_v7 = vld [vmem:[%s8392_s3 + $0x2a0] ss:$48 sps:$4 sm:$0xff]  }
  0x17   :  { %v5593_v6 = vld [vmem:[%s8392_s3 + $0x2a4] ss:$48 sps:$4 sm:$0xff]   ;;  %v5594_v8 = vld [vmem:[%s8392_s3 + $0x840] ss:$48 sps:$4 sm:$0xff]  }
  0x18   :  { %v5602_v9 = vld [vmem:[%s8392_s3 + $0x8a4] ss:$48 sps:$4 sm:$0xff]   ;;  %v5600_v11 = vld [vmem:[%s8392_s3 + $0x8a0] ss:$48 sps:$4 sm:$0xff]  }
  0x19   :  { %v5599_v10 = vld [vmem:[%s8392_s3 + $0x304] ss:$48 sps:$4 sm:$0xff]   ;;  %v5597_v13 = vld [vmem:[%s8392_s3 + $0x300] ss:$48 sps:$4 sm:$0xff]  }
  0x1a   :  { %v5608_v12 = vld [vmem:[%s8392_s3 + $0x904] ss:$48 sps:$4 sm:$0xff]   ;;  %v5606_v15 = vld [vmem:[%s8392_s3 + $0x900] ss:$48 sps:$4 sm:$0xff]  }
  0x1b   :  { %v5605_v14 = vld [vmem:[%s8392_s3 + $0x364] ss:$48 sps:$4 sm:$0xff]   ;;  %v5603_v16 = vld [vmem:[%s8392_s3 + $0x360] ss:$48 sps:$4 sm:$0xff]  }
  0x1c   :  { %v5611_v17 = vld [vmem:[%s8392_s3 + $0x3c4] ss:$48 sps:$4 sm:$0xff]   ;;  %v5609_v18 = vld [vmem:[%s8392_s3 + $0x3c0] ss:$48 sps:$4 sm:$0xff]  }
  0x1d   :  { %v5614_v30 = vld [vmem:[%s8392_s3 + $0x964] ss:$48 sps:$4 sm:$0xff]   ;;  %v5612_v33 = vld [vmem:[%s8392_s3 + $0x960] ss:$48 sps:$4 sm:$0xff]  }
  0x1e   :  { %v5617_v34 = vld [vmem:[%s8392_s3 + $0x424] ss:$48 sps:$4 sm:$0xff]   ;;  %v5615_v35 = vld [vmem:[%s8392_s3 + $0x420] ss:$48 sps:$4 sm:$0xff]  }
  0x1f   :  { %v5621_v43 = vld [vmem:[%s8392_s3 + $0x480] ss:$48 sps:$4 sm:$0xff]  }
  0x74   :  { %v137_v36 = vpop.permute.xlu0 %136 }
  0x75   :  { %4868 = vmatmul.mubr.msk.f32.vlgmr.msra.gmra.mrb[0].mxu1 %vm138_vm5, %v137_v36  ;;  %4871 = vmatmul.mubr.msk.f32.vlgmr.msra.gmra.mrb[2].mxu0 %vm138_vm5, %v137_v36 }
  0x76   :  { %2851 = vmatpush1.bf16.msra.mxu1 %v5552_v42  ;;  %2892 = vmatpush1.bf16.msra.mxu0 %v5558_v45 }
  0x77   :  { %2852 = vmatprep.subr.bf16.mxu1 %v5557_v44  ;;  %2893 = vmatprep.subr.bf16.mxu0 %v5566_v50  ;;  %v5623_v44 = vld [vmem:[%s8392_s3 + $0x484] ss:$48 sps:$4 sm:$0xff]  }
  0x7a   :  { %2853 = vmatpush1.bf16.msra.mxu1 %v5555_v47  ;;  %2894 = vmatpush1.bf16.msra.mxu0 %v5564_v49  ;;  %v5624_v49 = vld [vmem:[%s8392_s3 + $0xa20] ss:$48 sps:$4 sm:$0xff]  }
  0x7b   :  { %2854 = vmatprep.subr.bf16.mxu1 %v5563_v48  ;;  %2895 = vmatprep.subr.bf16.mxu0 %v5572_v53  ;;  %v5627_v53 = vld [vmem:[%s8392_s3 + $0x4e0] ss:$48 sps:$4 sm:$0xff]  }
  0x7e   :  { %2855 = vmatpush1.bf16.msra.mxu1 %v5561_v51  ;;  %2896 = vmatpush1.bf16.msra.mxu0 %v5570_v54 }
  0x7f   :  { %2856 = vmatprep.subr.bf16.mxu1 %v5569_v52  ;;  %2897 = vmatprep.subr.bf16.mxu0 %v5578_v55  ;;  %v5626_v52 = vld [vmem:[%s8392_s3 + $0xa24] ss:$48 sps:$4 sm:$0xff]  }
  0x82   :  { %2857 = vmatpush1.bf16.msra.mxu1 %v5567_v56  ;;  %2898 = vmatpush1.bf16.msra.mxu0 %v5576_v58  ;;  %v5630_v58 = vld [vmem:[%s8392_s3 + $0xa80] ss:$48 sps:$4 sm:$0xff]  }
  0x83   :  { %2858 = vmatprep.subr.bf16.mxu1 %v5575_v57  ;;  %2899 = vmatprep.subr.bf16.mxu0 %v5584_v59  ;;  %v5629_v57 = vld [vmem:[%s8392_s3 + $0x4e4] ss:$48 sps:$4 sm:$0xff]  }
  0x84   :  { %v134_v19 = vpop.permute.xlu1 %133  ;;  %v5632_v59 = vld [vmem:[%s8392_s3 + $0xa84] ss:$48 sps:$4 sm:$0xff]  }
  0x85   :  { %v27_v37 = vpop.permute.xlu0 %26 }
  0x86   :  { %2859 = vmatpush1.bf16.msra.mxu1 %v5573_v60  ;;  %2900 = vmatpush1.bf16.msra.mxu0 %v5582_v62  ;;  %v5635_v62 = vld [vmem:[%s8392_s3 + $0x544] ss:$48 sps:$4 sm:$0xff]  }
  0x87   :  { %2860 = vmatprep.subr.bf16.mxu1 %v5581_v61  ;;  %2901 = vmatprep.subr.bf16.mxu0 %v5590_v63  ;;  %v5633_v61 = vld [vmem:[%s8392_s3 + $0x540] ss:$48 sps:$4 sm:$0xff]  }
  0x8a   :  { %2861 = vmatpush1.bf16.msra.mxu1 %v5579_v0  ;;  %2902 = vmatpush1.bf16.msra.mxu0 %v5588_v2  ;;  %v5638_v2 = vld [vmem:[%s8392_s3 + $0xae4] ss:$48 sps:$4 sm:$0xff]  }
  0x8b   :  { %2862 = vmatprep.subr.bf16.mxu1 %v5587_v1  ;;  %2903 = vmatprep.subr.bf16.mxu0 %v5596_v3 }
  0x8e   :  { %2863 = vmatpush1.bf16.msra.mxu1 %v5585_v4  ;;  %2904 = vmatpush1.bf16.msra.mxu0 %v5594_v8  ;;  %v5636_v4 = vld [vmem:[%s8392_s3 + $0xae0] ss:$48 sps:$4 sm:$0xff]  }
  0x8f   :  { %2864 = vmatprep.subr.bf16.mxu1 %v5593_v6  ;;  %2905 = vmatprep.subr.bf16.mxu0 %v5602_v9  ;;  %v5641_v6 = vld [vmem:[%s8392_s3 + $0x5a4] ss:$48 sps:$4 sm:$0xff]  }
  0x90   :  { %v5644_v9 = vld [vmem:[%s8392_s3 + $0xb44] ss:$48 sps:$4 sm:$0xff]  }
  0x92   :  { %2865 = vmatpush1.bf16.msra.mxu1 %v5591_v7  ;;  %2906 = vmatpush1.bf16.msra.mxu0 %v5600_v11  ;;  %v5639_v7 = vld [vmem:[%s8392_s3 + $0x5a0] ss:$48 sps:$4 sm:$0xff]  }
  0x93   :  { %2866 = vmatprep.subr.bf16.mxu1 %v5599_v10  ;;  %2907 = vmatprep.subr.bf16.mxu0 %v5608_v12  ;;  %v5642_v11 = vld [vmem:[%s8392_s3 + $0xb40] ss:$48 sps:$4 sm:$0xff]   ;;  %v5647_v12 = vld [vmem:[%s8392_s3 + $0xc04] ss:$48 sps:$4 sm:$0xff]  }
  0x96   :  { %2867 = vmatpush1.bf16.msra.mxu1 %v5597_v13  ;;  %2908 = vmatpush1.bf16.msra.mxu0 %v5606_v15  ;;  %v5650_v13 = vld [vmem:[%s8392_s3 + $0xba4] ss:$48 sps:$4 sm:$0xff]  }
  0x97   :  { %2868 = vmatprep.subr.bf16.mxu1 %v5605_v14  ;;  %2909 = vmatprep.subr.bf16.mxu0 %v5614_v30 }
  0x9a   :  { %2869 = vmatpush1.bf16.msra.mxu1 %v5603_v16  ;;  %2910 = vmatpush1.bf16.msra.mxu0 %v5612_v33  ;;  %v5648_v16 = vld [vmem:[%s8392_s3 + $0xba0] ss:$48 sps:$4 sm:$0xff]  }
  0x9b   :  { %2870 = vmatprep.subr.bf16.mxu1 %v5611_v17 }
  0x9e   :  { %2871 = vmatpush1.bf16.msra.mxu1 %v5609_v18 }
  0x9f   :  { %2872 = vmatprep.subr.bf16.mxu1 %v5617_v34 }
  0xa2   :  { %2873 = vmatpush1.bf16.msra.mxu1 %v5615_v35 }
  0xa3   :  { %2874 = vmatprep.subr.bf16.mxu1 %v5623_v44 }
  0xa6   :  { %2875 = vmatpush1.bf16.msra.mxu1 %v5621_v43 }
  0xa7   :  { %2876 = vmatprep.subr.bf16.mxu1 %v5629_v57 }
  0xaa   :  { %2877 = vmatpush1.bf16.msra.mxu1 %v5627_v53 }
  0xab   :  { %2878 = vmatprep.subr.bf16.mxu1 %v5635_v62 }
  0xae   :  { %2879 = vmatpush1.bf16.msra.mxu1 %v5633_v61 }
  0xaf   :  { %2880 = vmatprep.subr.bf16.mxu1 %v5641_v6 }
  0xb2   :  { %2881 = vmatpush1.bf16.msra.mxu1 %v5639_v7 }
  0xb3   :  { %2932 = vmatprep.subr.bf16.mxu1 %v5647_v12 }
  0xdb   :  { %v102_v38 = vpop.f32.mrb[0].mxu0 }
  0xdc   :  { %v6459_v39 = vadd.f32 %v102_v38, %v27_v37  ;;  %v5433_v40 = vpop.f32.mrb[1].mxu0  ;;  %v5618_v38 = vld [vmem:[%s8392_s3 + $0x9c0] ss:$48 sps:$4 sm:$0xff]  }
  0xdd   :  { %v5620_v40 = vld [vmem:[%s8392_s3 + $0x9c4] ss:$48 sps:$4 sm:$0xff]  }
  0xde   :  { %v106_v41 = vmax.f32 %v6459_v39, 0.0  ;;  %2911 = vmatprep.subr.bf16.mxu0 %v5620_v40 }
  0xdf   :  { %2912 = vmatpush1.bf16.msra.mxu0 %v5618_v38 }
  0xe0   :  { %108 = vrot.lane.b32.xlu1 %v106_v41, %s6331_s24  ;;  %2913 = vmatprep.subr.bf16.mxu0 %v5626_v52  ;;  %s6341_s24 = smov 32  }
  0xe3   :  { %2914 = vmatpush1.bf16.msra.mxu0 %v5624_v49 }
  0xe4   :  { %2915 = vmatprep.subr.bf16.mxu0 %v5632_v59 }
  0xe7   :  { %2916 = vmatpush1.bf16.msra.mxu0 %v5630_v58 }
  0xe8   :  { %2917 = vmatprep.subr.bf16.mxu0 %v5638_v2 }
  0xeb   :  { %2918 = vmatpush1.bf16.msra.mxu0 %v5636_v4 }
  0xec   :  { %2919 = vmatprep.subr.bf16.mxu0 %v5644_v9 }
  0xef   :  { %2920 = vmatpush1.bf16.msra.mxu0 %v5642_v11 }
  0xf0   :  { %2921 = vmatprep.subr.bf16.mxu0 %v5650_v13 }
  0xf3   :  { %2922 = vmatpush1.bf16.msra.mxu0 %v5648_v16  ;;  %v5653_v16 = vld [vmem:[%s8392_s3 + $0xc64] ss:$48 sps:$4 sm:$0xff]  }
 0x148   :  { %v219_v20 = vpop.f32.mrb[0].mxu1  ;;  %v290_v21 = vpop.f32.mrb[2].mxu0 }
 0x149   :  { %v220_v22 = vadd.f32 %v219_v20, %v134_v19  ;;  %v291_v23 = vadd.f32 %v290_v21, %v134_v19  ;;  %v221_v24 = vpop.f32.mrb[1].mxu1  ;;  %v292_v25 = vpop.f32.mrb[3].mxu0  ;;  %v5656_v20 = vld [vmem:[%s8392_s3 + $0xc] ss:$48 sps:$4 sm:$0xff]  }
 0x14a   :  { %v222_v26 = vadd.f32 %v221_v24, %v134_v19  ;;  %v293_v27 = vadd.f32 %v292_v25, %v134_v19  ;;  %2973 = vmatprep.subr.bf16.mxu0 %v5656_v20 }
 0x14b   :  { %v295_v28 = vmax.f32 %v220_v22, 0.0  ;;  %v297_v29 = vmax.f32 %v291_v23, 0.0 }
 0x14c   :  { %v296_v31 = vmax.f32 %v222_v26, 0.0  ;;  %v298_v32 = vmax.f32 %v293_v27, 0.0 }
 0x14e   :  { %v299_v36 = vmax.f32 %v295_v28, %v296_v31  ;;  %v300_v37 = vmax.f32 %v297_v29, %v298_v32 }
 0x150   :  { %v6603_v42 = vmax.f32 %v299_v36, %v300_v37 }
 0x152   :  { %v109_v45 = vpop.permute.xlu1 %108  ;;  %v335_v47 = vrot.slane %v6603_v42, 1  ;;  %v337_v48 = vrot.slane %v6603_v42, 2  ;;  %v341_v14 = vrot.slane %v6603_v42, 3  ;;  %v347_v15 = vrot.slane %v6603_v42, 5 }
 0x153   :  { %v6613_v46 = vmax.f32 %v106_v41, %v109_v45  ;;  %v353_v17 = vrot.slane %v6603_v42, 7  ;;  %v343_v18 = vrot.slane %v6603_v42, 4  ;;  %v349_v19 = vrot.slane %v6603_v42, 6 }
 0x154   :  { %v5505_v39 = vpack.i.bf16 %v337_v48, %v335_v47  ;;  %v5540_v21 = vpack.i.bf16 %v341_v14, %v347_v15 }
 0x155   :  { %375 = vrot.lane.b32.xlu1 %v6613_v46, %s6337_s29  ;;  %v307_v41 = vrot.slane %v6613_v46, 2  ;;  %v311_v50 = vrot.slane %v6613_v46, 3  ;;  %v303_v51 = vrot.slane %v6613_v46, 1  ;;  %v315_v55 = vrot.slane %v6613_v46, 4  ;;  %s6342_s29 = smov 24  }
 0x156   :  { %5506 = vrot.lane.b32.xlu0 %v5505_v39, %s6338_s9  ;;  %v319_v56 = vrot.slane %v6613_v46, 5  ;;  %v323_v0 = vrot.slane %v6613_v46, 6  ;;  %v327_v1 = vrot.slane %v6613_v46, 7  ;;  %v5545_v22 = vpack.i.bf16 %v343_v18, %v349_v19 }
 0x157   :  { %v5515_v54 = vpack.i.bf16 %v307_v41, %v311_v50  ;;  %v5510_v60 = vpack.i.bf16 %v303_v51, %v307_v41  ;;  %v5520_v3 = vpack.i.bf16 %v311_v50, %v315_v55 }
 0x158   :  { %v5525_v63 = vpack.i.bf16 %v315_v55, %v319_v56  ;;  %v5535_v8 = vpack.i.bf16 %v323_v0, %v327_v1  ;;  %v5530_v10 = vpack.i.bf16 %v319_v56, %v323_v0 }
 0x159   :  { %5516 = vrot.lane.b32.xlu1 %v5515_v54, %s6339_s15  ;;  %s6345_s15 = smov 56  }
 0x15a   :  { %5511 = vrot.lane.b32.xlu0 %v5510_v60, %s6340_s20 }
 0x15d   :  { %5526 = vrot.lane.b32.xlu1 %v5525_v63, %s6341_s24 }
 0x15e   :  { %5521 = vrot.lane.b32.xlu0 %v5520_v3, %s6342_s29 }
 0x161   :  { %5536 = vrot.lane.b32.xlu1 %v5535_v8, %s6343_s7 }
 0x162   :  { %5531 = vrot.lane.b32.xlu0 %v5530_v10, %s6344_s13  ;;  %v5645_v10 = vld [vmem:[%s8392_s3 + $0xc00] ss:$48 sps:$4 sm:$0xff]  }
 0x165   :  { %328 = vrot.lane.b32.xlu1 %v327_v1, %s6345_s15 }
 0x166   :  { %332 = vrot.lane.b32.xlu0 %v6603_v42, %s6338_s9 }
 0x169   :  { %409 = vrot.lane.b32.xlu1 %v353_v17, %s6338_s9 }
 0x16a   :  { %5541 = vrot.lane.b32.xlu0 %v5540_v21, %s6338_s9 }
 0x16d   :  { %5546 = vrot.lane.b32.xlu1 %v5545_v22, %s6338_s9 }
 0x1c7   :  { %v376_v23 = vpop.permute.xlu1 %375 }
 0x1c8   :  { %v5507_v24 = vpop.permute.xlu0 %5506  ;;  %v412_v34 = vsel %vm355_vm7, %v376_v23, %v303_v51 }
 0x1c9   :  { %v5509_v25 = vunpack.i.h.bf16 %v5507_v24  ;;  %v5508_v26 = vunpack.i.l.bf16 %v5507_v24 }
 0x1cb   :  { %v5517_v27 = vpop.permute.xlu1 %5516  ;;  %v420_v28 = vsel %vm369_vm6, %v5508_v26, %v337_v48  ;;  %v371_v31 = vsel %vm369_vm6, %v335_v47, %v5509_v25 }
 0x1cc   :  { %v430_v29 = vrot.slane %v420_v28, 7  ;;  %v5512_v30 = vpop.permute.xlu0 %5511  ;;  %v5519_v43 = vunpack.i.h.bf16 %v5517_v27  ;;  %v5518_v44 = vunpack.i.l.bf16 %v5517_v27  ;;  %v5651_v27 = vld [vmem:[%s8392_s3 + $0xc60] ss:$48 sps:$4 sm:$0xff]   ;;  %v6346_v28 = vmov 0  }
 0x1cd   :  { %v5514_v32 = vunpack.i.h.bf16 %v5512_v30  ;;  %v5513_v33 = vunpack.i.l.bf16 %v5512_v30 }
 0x1ce   :  { %v441_v35 = vsel %vm439_vm8, %v371_v31, %v430_v29 }
 0x1cf   :  { %v5527_v36 = vpop.permute.xlu1 %5526  ;;  %v6715_v37 = vpack.c.bf16 %v441_v35, %v441_v35  ;;  %v356_v38 = vsel %vm355_vm7, %v6613_v46, %v5514_v32  ;;  %v413_v40 = vsel %vm357_vm9, %v412_v34, %v5513_v33  ;;  %v5657_v34 = vld [vmem:[%s8392_s3 + $0xcc0] ss:$48 sps:$4 sm:$0xff]   ;;  %v5665_v35 = vld [vmem:[%s8392_s3 + $0xd24] ss:$48 sps:$4 sm:$0xff]  }
 0x1d0   :  { %v5522_v45 = vpop.permute.xlu0 %5521  ;;  %v358_v49 = vsel %vm357_vm9, %v356_v38, %v5519_v43  ;;  %v414_v39 = vsel %vm359_vm10, %v413_v40, %v5518_v44  ;;  %v5529_v46 = vunpack.i.h.bf16 %v5527_v36  ;;  %v5528_v52 = vunpack.i.l.bf16 %v5527_v36  ;;  %v5660_v36 = vld [vmem:[%s8392_s3 + $0x68] ss:$48 sps:$4 sm:$0xff]   ;;  %v5663_v38 = vld [vmem:[%s8392_s3 + $0xd20] ss:$48 sps:$4 sm:$0xff]   ;;  %v5668_v40 = vld [vmem:[%s8392_s3 + $0xcc] ss:$48 sps:$4 sm:$0xff]  }
 0x1d1   :  { %v5524_v47 = vunpack.i.h.bf16 %v5522_v45  ;;  %v5523_v48 = vunpack.i.l.bf16 %v5522_v45  ;;  %2882 = vmatprep.mubr.bf16.mxu1 %v6715_v37  ;;  %v5671_v43 = vld [vmem:[%s8392_s3 + $0xd84] ss:$48 sps:$4 sm:$0xff]   ;;  %v5666_v44 = vld [vmem:[%s8392_s3 + $0xc8] ss:$48 sps:$4 sm:$0xff]   ;;  %v5669_v45 = vld [vmem:[%s8392_s3 + $0xd80] ss:$48 sps:$4 sm:$0xff]  }
 0x1d3   :  { %v5537_v41 = vpop.permute.xlu1 %5536  ;;  %v360_v50 = vsel %vm359_vm10, %v358_v49, %v5524_v47  ;;  %v415_v51 = vsel %vm361_vm11, %v414_v39, %v5523_v48  ;;  %v5674_v47 = vld [vmem:[%s8392_s3 + $0x12c] ss:$48 sps:$4 sm:$0xff]   ;;  %v5677_v48 = vld [vmem:[%s8392_s3 + $0xde4] ss:$48 sps:$4 sm:$0xff]   ;;  %v5672_v49 = vld [vmem:[%s8392_s3 + $0x128] ss:$48 sps:$4 sm:$0xff]  }
 0x1d4   :  { %v5532_v53 = vpop.permute.xlu0 %5531  ;;  %v5539_v56 = vunpack.i.h.bf16 %v5537_v41  ;;  %v5538_v57 = vunpack.i.l.bf16 %v5537_v41  ;;  %v416_v58 = vsel %vm363_vm12, %v415_v51, %v5528_v52  ;;  %v362_v60 = vsel %vm361_vm11, %v360_v50, %v5529_v46  ;;  %v5675_v39 = vld [vmem:[%s8392_s3 + $0xde0] ss:$48 sps:$4 sm:$0xff]   ;;  %v5680_v41 = vld [vmem:[%s8392_s3 + $0x18c] ss:$48 sps:$4 sm:$0xff]   ;;  %v5683_v50 = vld [vmem:[%s8392_s3 + $0xe44] ss:$48 sps:$4 sm:$0xff]  }
 0x1d5   :  { %v5534_v54 = vunpack.i.h.bf16 %v5532_v53  ;;  %v5533_v55 = vunpack.i.l.bf16 %v5532_v53  ;;  %v5678_v46 = vld [vmem:[%s8392_s3 + $0x188] ss:$48 sps:$4 sm:$0xff]   ;;  %v5681_v52 = vld [vmem:[%s8392_s3 + $0xe40] ss:$48 sps:$4 sm:$0xff]   ;;  %v5686_v53 = vld [vmem:[%s8392_s3 + $0x1ec] ss:$48 sps:$4 sm:$0xff]  }
 0x1d7   :  { %v329_v59 = vpop.permute.xlu1 %328  ;;  %v417_v61 = vsel %vm365_vm13, %v416_v58, %v5533_v55  ;;  %v364_v62 = vsel %vm363_vm12, %v362_v60, %v5534_v54  ;;  %v5689_v54 = vld [vmem:[%s8392_s3 + $0xea4] ss:$48 sps:$4 sm:$0xff]   ;;  %v374_v58 = vsel %vm369_vm6, %v353_v17, 0.0  ;;  %v5695_v60 = vld [vmem:[%s8392_s3 + $0x60c] ss:$48 sps:$4 sm:$0xff]  }
 0x1d8   :  { %v366_v63 = vsel %vm365_vm13, %v364_v62, %v5539_v56  ;;  %v418_v0 = vsel %vm367_vm14, %v417_v61, %v5538_v57  ;;  %v333_v1 = vpop.permute.xlu0 %332  ;;  %v5684_v56 = vld [vmem:[%s8392_s3 + $0x1e8] ss:$48 sps:$4 sm:$0xff]   ;;  %v5687_v57 = vld [vmem:[%s8392_s3 + $0xea0] ss:$48 sps:$4 sm:$0xff]  }
 0x1d9   :  { %v368_v2 = vsel %vm367_vm14, %v366_v63, %v329_v59  ;;  %v419_v3 = vsel %vm369_vm6, %v418_v0, %v6603_v42  ;;  %v5692_v59 = vld [vmem:[%s8392_s3 + $0x24c] ss:$48 sps:$4 sm:$0xff]   ;;  %v5690_v42 = vld [vmem:[%s8392_s3 + $0x248] ss:$48 sps:$4 sm:$0xff]  }
 0x1da   :  { %v370_v4 = vsel %vm369_vm6, %v368_v2, %v333_v1  ;;  %v429_v6 = vrot.slane %v419_v3, 7  ;;  %v5693_v17 = vld [vmem:[%s8392_s3 + $0x608] ss:$48 sps:$4 sm:$0xff]   ;;  %v5698_v63 = vld [vmem:[%s8392_s3 + $0x2ac] ss:$48 sps:$4 sm:$0xff]  }
 0x1db   :  { %v410_v7 = vpop.permute.xlu1 %409  ;;  %v5701_v0 = vld [vmem:[%s8392_s3 + $0x66c] ss:$48 sps:$4 sm:$0xff]   ;;  %v5696_v1 = vld [vmem:[%s8392_s3 + $0x2a8] ss:$48 sps:$4 sm:$0xff]  }
 0x1dc   :  { %v440_v8 = vsel %vm439_vm8, %v370_v4, %v429_v6  ;;  %v5542_v9 = vpop.permute.xlu0 %5541  ;;  %v423_v51 = vsel %vm369_vm6, %v410_v7, 0.0  ;;  %v5699_v2 = vld [vmem:[%s8392_s3 + $0x668] ss:$48 sps:$4 sm:$0xff]   ;;  %v5704_v3 = vld [vmem:[%s8392_s3 + $0x30c] ss:$48 sps:$4 sm:$0xff]  }
 0x1dd   :  { %v6730_v11 = vpack.c.bf16 %v440_v8, %v440_v8  ;;  %v5544_v12 = vunpack.i.h.bf16 %v5542_v9  ;;  %v5543_v13 = vunpack.i.l.bf16 %v5542_v9  ;;  %v433_v55 = vrot.slane %v423_v51, 7  ;;  %v5707_v4 = vld [vmem:[%s8392_s3 + $0x6cc] ss:$48 sps:$4 sm:$0xff]   ;;  %v5702_v6 = vld [vmem:[%s8392_s3 + $0x308] ss:$48 sps:$4 sm:$0xff]  }
 0x1de   :  { %v5705_v7 = vld [vmem:[%s8392_s3 + $0x6c8] ss:$48 sps:$4 sm:$0xff]   ;;  %v5710_v8 = vld [vmem:[%s8392_s3 + $0x36c] ss:$48 sps:$4 sm:$0xff]  }
 0x1df   :  { %v5547_v20 = vpop.permute.xlu1 %5546  ;;  %v421_v21 = vsel %vm369_vm6, %v5544_v12, %v343_v18  ;;  %v422_v22 = vsel %vm369_vm6, %v5543_v13, %v349_v19  ;;  %2883 = vmatmul.mubr.bf16.vlgmr.msra.gmra.mrb[4].mxu1 %v6730_v11  ;;  %v5659_v19 = vld [vmem:[%s8392_s3 + $0xcc4] ss:$48 sps:$4 sm:$0xff]   ;;  %v444_v61 = vsel %vm439_vm8, %v374_v58, %v433_v55  ;;  %v5713_v9 = vld [vmem:[%s8392_s3 + $0x72c] ss:$48 sps:$4 sm:$0xff]   ;;  %v5711_v12 = vld [vmem:[%s8392_s3 + $0x728] ss:$48 sps:$4 sm:$0xff]  }
 0x1e0   :  { %v5549_v23 = vunpack.i.h.bf16 %v5547_v20  ;;  %v431_v24 = vrot.slane %v421_v21, 7  ;;  %v432_v25 = vrot.slane %v422_v22, 7  ;;  %v5548_v26 = vunpack.i.l.bf16 %v5547_v20  ;;  %2933 = vmatpush1.bf16.msra.mxu1 %v5645_v10  ;;  %2964 = vmatprep.mubr.bf16.mxu1 %v6346_v28  ;;  %v5708_v10 = vld [vmem:[%s8392_s3 + $0x368] ss:$48 sps:$4 sm:$0xff]   ;;  %v5716_v13 = vld [vmem:[%s8392_s3 + $0x3cc] ss:$48 sps:$4 sm:$0xff]  }
 0x1e1   :  { %2934 = vmatprep.subr.bf16.mxu1 %v5653_v16  ;;  %v6847_v62 = vpack.c.bf16 %v444_v61, %v444_v61  ;;  %v5719_v16 = vld [vmem:[%s8392_s3 + $0x78c] ss:$48 sps:$4 sm:$0xff]   ;;  %v5714_v20 = vld [vmem:[%s8392_s3 + $0x3c8] ss:$48 sps:$4 sm:$0xff]   ;;  %v5770_v55 = vld [vmem:[%s8392_s3 + $0x734] ss:$48 sps:$4 sm:$0xff]  }
 0x1e2   :  { %v372_v18 = vsel %vm369_vm6, %v341_v14, %v5549_v23  ;;  %v373_v29 = vsel %vm369_vm6, %v347_v15, %v5548_v26  ;;  %v5654_v14 = vld [vmem:[%s8392_s3 + $0x8] ss:$48 sps:$4 sm:$0xff]   ;;  %v5662_v15 = vld [vmem:[%s8392_s3 + $0x6c] ss:$48 sps:$4 sm:$0xff]   ;;  %v5774_v61 = vld [vmem:[%s8392_s3 + $0x790] ss:$48 sps:$4 sm:$0xff]  }
 0x1e3   :  { %v442_v30 = vsel %vm439_vm8, %v372_v18, %v431_v24  ;;  %v443_v31 = vsel %vm439_vm8, %v373_v29, %v432_v25  ;;  %v5717_v21 = vld [vmem:[%s8392_s3 + $0x788] ss:$48 sps:$4 sm:$0xff]   ;;  %v5722_v22 = vld [vmem:[%s8392_s3 + $0x42c] ss:$48 sps:$4 sm:$0xff]  }
 0x1e4   :  { %v6757_v32 = vpack.c.bf16 %v442_v30, %v442_v30  ;;  %v6759_v33 = vpack.c.bf16 %v443_v31, %v443_v31  ;;  %2935 = vmatpush1.bf16.msra.mxu1 %v5651_v27  ;;  %v5725_v23 = vld [vmem:[%s8392_s3 + $0x7ec] ss:$48 sps:$4 sm:$0xff]   ;;  %v5720_v24 = vld [vmem:[%s8392_s3 + $0x428] ss:$48 sps:$4 sm:$0xff]  }
 0x1e5   :  { %2936 = vmatprep.subr.bf16.mxu1 %v5659_v19  ;;  %v5723_v25 = vld [vmem:[%s8392_s3 + $0x7e8] ss:$48 sps:$4 sm:$0xff]   ;;  %v5728_v26 = vld [vmem:[%s8392_s3 + $0x48c] ss:$48 sps:$4 sm:$0xff]  }
 0x1e6   :  { %2923 = vmatprep.mubr.bf16.mxu0 %v6759_v33  ;;  %v5731_v27 = vld [vmem:[%s8392_s3 + $0x84c] ss:$48 sps:$4 sm:$0xff]   ;;  %v5726_v18 = vld [vmem:[%s8392_s3 + $0x488] ss:$48 sps:$4 sm:$0xff]  }
 0x1e7   :  { %2924 = vmatmul.mubr.bf16.vlgmr.msra.gmra.mrb[4].mxu0 %v6757_v32  ;;  %v5729_v19 = vld [vmem:[%s8392_s3 + $0x848] ss:$48 sps:$4 sm:$0xff]   ;;  %v5734_v29 = vld [vmem:[%s8392_s3 + $0x4ec] ss:$48 sps:$4 sm:$0xff]  }
 0x1e8   :  { %2974 = vmatpush1.bf16.msra.mxu0 %v5654_v14  ;;  %2937 = vmatpush1.bf16.msra.mxu1 %v5657_v34  ;;  %v5737_v30 = vld [vmem:[%s8392_s3 + $0x8ac] ss:$48 sps:$4 sm:$0xff]   ;;  %v5732_v31 = vld [vmem:[%s8392_s3 + $0x4e8] ss:$48 sps:$4 sm:$0xff]  }
 0x1e9   :  { %3005 = vmatprep.mubr.bf16.mxu0 %v6715_v37  ;;  %2975 = vmatprep.subr.bf16.mxu0 %v5662_v15  ;;  %v5735_v14 = vld [vmem:[%s8392_s3 + $0x8a8] ss:$48 sps:$4 sm:$0xff]   ;;  %v5740_v34 = vld [vmem:[%s8392_s3 + $0x54c] ss:$48 sps:$4 sm:$0xff]  }
 0x1ea   :  { %2938 = vmatprep.subr.bf16.mxu1 %v5665_v35  ;;  %v5743_v15 = vld [vmem:[%s8392_s3 + $0x90c] ss:$48 sps:$4 sm:$0xff]   ;;  %v5738_v35 = vld [vmem:[%s8392_s3 + $0x548] ss:$48 sps:$4 sm:$0xff]  }
 0x1eb   :  { %v5759_v51 = vld [vmem:[%s8392_s3 + $0xa28] ss:$48 sps:$4 sm:$0xff]  }
 0x1ec   :  { %2976 = vmatpush1.bf16.msra.mxu0 %v5660_v36  ;;  %2939 = vmatpush1.bf16.msra.mxu1 %v5663_v38  ;;  %v5741_v36 = vld [vmem:[%s8392_s3 + $0x908] ss:$48 sps:$4 sm:$0xff]   ;;  %v5746_v38 = vld [vmem:[%s8392_s3 + $0x5ac] ss:$48 sps:$4 sm:$0xff]  }
 0x1ed   :  { %2977 = vmatprep.subr.bf16.mxu0 %v5668_v40  ;;  %2940 = vmatprep.subr.bf16.mxu1 %v5671_v43  ;;  %v5749_v40 = vld [vmem:[%s8392_s3 + $0x96c] ss:$48 sps:$4 sm:$0xff]   ;;  %v5744_v43 = vld [vmem:[%s8392_s3 + $0x5a8] ss:$48 sps:$4 sm:$0xff]  }
 0x1ee   :  { %v5771_v58 = vld [vmem:[%s8392_s3 + $0xae8] ss:$48 sps:$4 sm:$0xff]  }
 0x1f0   :  { %2978 = vmatpush1.bf16.msra.mxu0 %v5666_v44  ;;  %2941 = vmatpush1.bf16.msra.mxu1 %v5669_v45  ;;  %v5747_v44 = vld [vmem:[%s8392_s3 + $0x968] ss:$48 sps:$4 sm:$0xff]   ;;  %v5752_v45 = vld [vmem:[%s8392_s3 + $0x614] ss:$48 sps:$4 sm:$0xff]  }
 0x1f1   :  { %2979 = vmatprep.subr.bf16.mxu0 %v5674_v47  ;;  %2942 = vmatprep.subr.bf16.mxu1 %v5677_v48  ;;  %v5755_v47 = vld [vmem:[%s8392_s3 + $0x9cc] ss:$48 sps:$4 sm:$0xff]   ;;  %v5750_v48 = vld [vmem:[%s8392_s3 + $0x610] ss:$48 sps:$4 sm:$0xff]  }
 0x1f4   :  { %2980 = vmatpush1.bf16.msra.mxu0 %v5672_v49  ;;  %2943 = vmatpush1.bf16.msra.mxu1 %v5675_v39  ;;  %v5753_v49 = vld [vmem:[%s8392_s3 + $0x9c8] ss:$48 sps:$4 sm:$0xff]   ;;  %v5758_v39 = vld [vmem:[%s8392_s3 + $0x674] ss:$48 sps:$4 sm:$0xff]  }
 0x1f5   :  { %2981 = vmatprep.subr.bf16.mxu0 %v5680_v41  ;;  %2944 = vmatprep.subr.bf16.mxu1 %v5683_v50  ;;  %v5761_v41 = vld [vmem:[%s8392_s3 + $0xa2c] ss:$48 sps:$4 sm:$0xff]   ;;  %v5756_v50 = vld [vmem:[%s8392_s3 + $0x670] ss:$48 sps:$4 sm:$0xff]  }
 0x1f8   :  { %2982 = vmatpush1.bf16.msra.mxu0 %v5678_v46  ;;  %2945 = vmatpush1.bf16.msra.mxu1 %v5681_v52  ;;  %v5764_v46 = vld [vmem:[%s8392_s3 + $0x6d4] ss:$48 sps:$4 sm:$0xff]   ;;  %v5767_v52 = vld [vmem:[%s8392_s3 + $0xa8c] ss:$48 sps:$4 sm:$0xff]  }
 0x1f9   :  { %2983 = vmatprep.subr.bf16.mxu0 %v5686_v53  ;;  %2946 = vmatprep.subr.bf16.mxu1 %v5689_v54  ;;  %v5762_v53 = vld [vmem:[%s8392_s3 + $0x6d0] ss:$48 sps:$4 sm:$0xff]   ;;  %v5765_v54 = vld [vmem:[%s8392_s3 + $0xa88] ss:$48 sps:$4 sm:$0xff]  }
 0x1fc   :  { %2984 = vmatpush1.bf16.msra.mxu0 %v5684_v56  ;;  %2947 = vmatpush1.bf16.msra.mxu1 %v5687_v57  ;;  %v5773_v56 = vld [vmem:[%s8392_s3 + $0xaec] ss:$48 sps:$4 sm:$0xff]   ;;  %v5768_v57 = vld [vmem:[%s8392_s3 + $0x730] ss:$48 sps:$4 sm:$0xff]  }
 0x1fd   :  { %2985 = vmatprep.subr.bf16.mxu0 %v5692_v59  ;;  %3014 = vmatprep.subr.bf16.mxu1 %v5695_v60  ;;  %v5776_v59 = vld [vmem:[%s8392_s3 + $0x794] ss:$48 sps:$4 sm:$0xff]   ;;  %v5779_v60 = vld [vmem:[%s8392_s3 + $0xb4c] ss:$48 sps:$4 sm:$0xff]  }
 0x1ff   :  { %2965 = vmatmul.mubr.bf16.vlgmr.msra.gmra.mrb[8].mxu1 %v6847_v62 }
 0x200   :  { %2986 = vmatpush1.bf16.msra.mxu0 %v5690_v42  ;;  %3015 = vmatpush1.bf16.msra.mxu1 %v5693_v17  ;;  %v5777_v42 = vld [vmem:[%s8392_s3 + $0xb48] ss:$48 sps:$4 sm:$0xff]   ;;  %v5782_v17 = vld [vmem:[%s8392_s3 + $0x7f4] ss:$48 sps:$4 sm:$0xff]  }
 0x201   :  { %3046 = vmatprep.mubr.bf16.mxu1 %v6759_v33  ;;  %2987 = vmatprep.subr.bf16.mxu0 %v5698_v63  ;;  %v5785_v63 = vld [vmem:[%s8392_s3 + $0xbac] ss:$48 sps:$4 sm:$0xff]  }
 0x202   :  { %3016 = vmatprep.subr.bf16.mxu1 %v5701_v0  ;;  %v5780_v0 = vld [vmem:[%s8392_s3 + $0x7f0] ss:$48 sps:$4 sm:$0xff]  }
 0x204   :  { %2988 = vmatpush1.bf16.msra.mxu0 %v5696_v1  ;;  %3017 = vmatpush1.bf16.msra.mxu1 %v5699_v2  ;;  %v5783_v1 = vld [vmem:[%s8392_s3 + $0xba8] ss:$48 sps:$4 sm:$0xff]   ;;  %v5788_v2 = vld [vmem:[%s8392_s3 + $0x854] ss:$48 sps:$4 sm:$0xff]  }
 0x205   :  { %2989 = vmatprep.subr.bf16.mxu0 %v5704_v3  ;;  %3018 = vmatprep.subr.bf16.mxu1 %v5707_v4  ;;  %v5791_v3 = vld [vmem:[%s8392_s3 + $0xc0c] ss:$48 sps:$4 sm:$0xff]   ;;  %v5786_v4 = vld [vmem:[%s8392_s3 + $0x850] ss:$48 sps:$4 sm:$0xff]  }
 0x208   :  { %2990 = vmatpush1.bf16.msra.mxu0 %v5702_v6  ;;  %3019 = vmatpush1.bf16.msra.mxu1 %v5705_v7  ;;  %v5789_v6 = vld [vmem:[%s8392_s3 + $0xc08] ss:$48 sps:$4 sm:$0xff]   ;;  %v5794_v7 = vld [vmem:[%s8392_s3 + $0x8b4] ss:$48 sps:$4 sm:$0xff]  }
 0x209   :  { %2991 = vmatprep.subr.bf16.mxu0 %v5710_v8  ;;  %3020 = vmatprep.subr.bf16.mxu1 %v5713_v9  ;;  %v5797_v8 = vld [vmem:[%s8392_s3 + $0xc6c] ss:$48 sps:$4 sm:$0xff]   ;;  %v5792_v9 = vld [vmem:[%s8392_s3 + $0x8b0] ss:$48 sps:$4 sm:$0xff]  }
 0x20c   :  { %2992 = vmatpush1.bf16.msra.mxu0 %v5708_v10  ;;  %3021 = vmatpush1.bf16.msra.mxu1 %v5711_v12  ;;  %v5795_v10 = vld [vmem:[%s8392_s3 + $0xc68] ss:$48 sps:$4 sm:$0xff]   ;;  %v5800_v12 = vld [vmem:[%s8392_s3 + $0x914] ss:$48 sps:$4 sm:$0xff]  }
 0x20d   :  { %2993 = vmatprep.subr.bf16.mxu0 %v5716_v13  ;;  %3022 = vmatprep.subr.bf16.mxu1 %v5719_v16  ;;  %v5803_v13 = vld [vmem:[%s8392_s3 + $0xccc] ss:$48 sps:$4 sm:$0xff]   ;;  %v5798_v16 = vld [vmem:[%s8392_s3 + $0x910] ss:$48 sps:$4 sm:$0xff]  }
 0x210   :  { %2994 = vmatpush1.bf16.msra.mxu0 %v5714_v20  ;;  %3023 = vmatpush1.bf16.msra.mxu1 %v5717_v21  ;;  %v5801_v20 = vld [vmem:[%s8392_s3 + $0xcc8] ss:$48 sps:$4 sm:$0xff]   ;;  %v5806_v21 = vld [vmem:[%s8392_s3 + $0x974] ss:$48 sps:$4 sm:$0xff]  }
 0x211   :  { %2995 = vmatprep.subr.bf16.mxu0 %v5722_v22  ;;  %3024 = vmatprep.subr.bf16.mxu1 %v5725_v23  ;;  %v5809_v22 = vld [vmem:[%s8392_s3 + $0xd2c] ss:$48 sps:$4 sm:$0xff]   ;;  %v5804_v23 = vld [vmem:[%s8392_s3 + $0x970] ss:$48 sps:$4 sm:$0xff]  }
 0x214   :  { %2996 = vmatpush1.bf16.msra.mxu0 %v5720_v24  ;;  %3025 = vmatpush1.bf16.msra.mxu1 %v5723_v25  ;;  %v5807_v24 = vld [vmem:[%s8392_s3 + $0xd28] ss:$48 sps:$4 sm:$0xff]   ;;  %v5812_v25 = vld [vmem:[%s8392_s3 + $0x9d4] ss:$48 sps:$4 sm:$0xff]  }
 0x215   :  { %2997 = vmatprep.subr.bf16.mxu0 %v5728_v26  ;;  %3026 = vmatprep.subr.bf16.mxu1 %v5731_v27  ;;  %v5815_v26 = vld [vmem:[%s8392_s3 + $0xd8c] ss:$48 sps:$4 sm:$0xff]   ;;  %v5810_v27 = vld [vmem:[%s8392_s3 + $0x9d0] ss:$48 sps:$4 sm:$0xff]  }
 0x218   :  { %2998 = vmatpush1.bf16.msra.mxu0 %v5726_v18  ;;  %3027 = vmatpush1.bf16.msra.mxu1 %v5729_v19  ;;  %v5813_v18 = vld [vmem:[%s8392_s3 + $0xd88] ss:$48 sps:$4 sm:$0xff]   ;;  %v5818_v19 = vld [vmem:[%s8392_s3 + $0xa34] ss:$48 sps:$4 sm:$0xff]  }
 0x219   :  { %2999 = vmatprep.subr.bf16.mxu0 %v5734_v29  ;;  %3028 = vmatprep.subr.bf16.mxu1 %v5737_v30  ;;  %v5821_v29 = vld [vmem:[%s8392_s3 + $0xdec] ss:$48 sps:$4 sm:$0xff]   ;;  %v5816_v30 = vld [vmem:[%s8392_s3 + $0xa30] ss:$48 sps:$4 sm:$0xff]  }
 0x21c   :  { %3000 = vmatpush1.bf16.msra.mxu0 %v5732_v31  ;;  %3029 = vmatpush1.bf16.msra.mxu1 %v5735_v14  ;;  %v5819_v31 = vld [vmem:[%s8392_s3 + $0xde8] ss:$48 sps:$4 sm:$0xff]   ;;  %v5824_v14 = vld [vmem:[%s8392_s3 + $0xa94] ss:$48 sps:$4 sm:$0xff]  }
 0x21d   :  { %3001 = vmatprep.subr.bf16.mxu0 %v5740_v34  ;;  %3030 = vmatprep.subr.bf16.mxu1 %v5743_v15  ;;  %v5827_v34 = vld [vmem:[%s8392_s3 + $0xe4c] ss:$48 sps:$4 sm:$0xff]   ;;  %v5822_v15 = vld [vmem:[%s8392_s3 + $0xa90] ss:$48 sps:$4 sm:$0xff]  }
 0x220   :  { %3002 = vmatpush1.bf16.msra.mxu0 %v5738_v35  ;;  %3031 = vmatpush1.bf16.msra.mxu1 %v5741_v36  ;;  %v5825_v35 = vld [vmem:[%s8392_s3 + $0xe48] ss:$48 sps:$4 sm:$0xff]   ;;  %v5830_v36 = vld [vmem:[%s8392_s3 + $0xaf4] ss:$48 sps:$4 sm:$0xff]  }
 0x221   :  { %3003 = vmatprep.subr.bf16.mxu0 %v5746_v38  ;;  %3032 = vmatprep.subr.bf16.mxu1 %v5749_v40  ;;  %v5833_v38 = vld [vmem:[%s8392_s3 + $0xeac] ss:$48 sps:$4 sm:$0xff]   ;;  %v5828_v40 = vld [vmem:[%s8392_s3 + $0xaf0] ss:$48 sps:$4 sm:$0xff]  }
 0x224   :  { %3004 = vmatpush1.bf16.msra.mxu0 %v5744_v43  ;;  %3033 = vmatpush1.bf16.msra.mxu1 %v5747_v44  ;;  %v5831_v43 = vld [vmem:[%s8392_s3 + $0xea8] ss:$48 sps:$4 sm:$0xff]   ;;  %v5836_v44 = vld [vmem:[%s8392_s3 + $0xb54] ss:$48 sps:$4 sm:$0xff]  }
 0x225   :  { %3137 = vmatprep.subr.bf16.mxu0 %v5752_v45  ;;  %3034 = vmatprep.subr.bf16.mxu1 %v5755_v47  ;;  %v5839_v45 = vld [vmem:[%s8392_s3 + $0x14] ss:$48 sps:$4 sm:$0xff]   ;;  %v5834_v47 = vld [vmem:[%s8392_s3 + $0xb50] ss:$48 sps:$4 sm:$0xff]  }
 0x227   :  { %3006 = vmatmul.mubr.bf16.vlgmr.msra.gmra.mrb[8].mxu0 %v6730_v11 }
 0x228   :  { %3138 = vmatpush1.bf16.msra.mxu0 %v5750_v48  ;;  %3169 = vmatprep.mubr.bf16.mxu0 %v6759_v33  ;;  %v5837_v48 = vld [vmem:[%s8392_s3 + $0x10] ss:$48 sps:$4 sm:$0xff]  }
 0x229   :  { %3035 = vmatpush1.bf16.msra.mxu1 %v5753_v49  ;;  %3139 = vmatprep.subr.bf16.mxu0 %v5758_v39  ;;  %v5842_v49 = vld [vmem:[%s8392_s3 + $0xbb4] ss:$48 sps:$4 sm:$0xff]  }
 0x22a   :  { %3036 = vmatprep.subr.bf16.mxu1 %v5761_v41  ;;  %v5845_v39 = vld [vmem:[%s8392_s3 + $0x74] ss:$48 sps:$4 sm:$0xff]   ;;  %v5840_v41 = vld [vmem:[%s8392_s3 + $0xbb0] ss:$48 sps:$4 sm:$0xff]  }
 0x22c   :  { %3140 = vmatpush1.bf16.msra.mxu0 %v5756_v50  ;;  %v5843_v50 = vld [vmem:[%s8392_s3 + $0x70] ss:$48 sps:$4 sm:$0xff]  }
 0x22d   :  { %3037 = vmatpush1.bf16.msra.mxu1 %v5759_v51  ;;  %3141 = vmatprep.subr.bf16.mxu0 %v5764_v46  ;;  %v5848_v51 = vld [vmem:[%s8392_s3 + $0x1c] ss:$48 sps:$4 sm:$0xff]   ;;  %v5851_v46 = vld [vmem:[%s8392_s3 + $0xd4] ss:$48 sps:$4 sm:$0xff]  }
 0x22e   :  { %3038 = vmatprep.subr.bf16.mxu1 %v5767_v52  ;;  %v5846_v52 = vld [vmem:[%s8392_s3 + $0x18] ss:$48 sps:$4 sm:$0xff]  }
 0x230   :  { %3142 = vmatpush1.bf16.msra.mxu0 %v5762_v53  ;;  %v5849_v53 = vld [vmem:[%s8392_s3 + $0xd0] ss:$48 sps:$4 sm:$0xff]  }
 0x231   :  { %3039 = vmatpush1.bf16.msra.mxu1 %v5765_v54  ;;  %3143 = vmatprep.subr.bf16.mxu0 %v5770_v55  ;;  %v5854_v54 = vld [vmem:[%s8392_s3 + $0x7c] ss:$48 sps:$4 sm:$0xff]   ;;  %v5857_v55 = vld [vmem:[%s8392_s3 + $0x134] ss:$48 sps:$4 sm:$0xff]  }
 0x232   :  { %3040 = vmatprep.subr.bf16.mxu1 %v5773_v56  ;;  %v5852_v56 = vld [vmem:[%s8392_s3 + $0x78] ss:$48 sps:$4 sm:$0xff]  }
 0x234   :  { %3144 = vmatpush1.bf16.msra.mxu0 %v5768_v57  ;;  %v5855_v57 = vld [vmem:[%s8392_s3 + $0x130] ss:$48 sps:$4 sm:$0xff]  }
 0x235   :  { %3041 = vmatpush1.bf16.msra.mxu1 %v5771_v58  ;;  %3145 = vmatprep.subr.bf16.mxu0 %v5776_v59  ;;  %v5860_v58 = vld [vmem:[%s8392_s3 + $0xdc] ss:$48 sps:$4 sm:$0xff]   ;;  %v5863_v59 = vld [vmem:[%s8392_s3 + $0x194] ss:$48 sps:$4 sm:$0xff]  }
 0x236   :  { %3042 = vmatprep.subr.bf16.mxu1 %v5779_v60  ;;  %v5858_v60 = vld [vmem:[%s8392_s3 + $0xd8] ss:$48 sps:$4 sm:$0xff]  }
 0x238   :  { %3146 = vmatpush1.bf16.msra.mxu0 %v5774_v61  ;;  %v5861_v61 = vld [vmem:[%s8392_s3 + $0x190] ss:$48 sps:$4 sm:$0xff]  }
 0x239   :  { %3043 = vmatpush1.bf16.msra.mxu1 %v5777_v42  ;;  %3147 = vmatprep.subr.bf16.mxu0 %v5782_v17  ;;  %v5866_v42 = vld [vmem:[%s8392_s3 + $0x13c] ss:$48 sps:$4 sm:$0xff]   ;;  %v5869_v17 = vld [vmem:[%s8392_s3 + $0x1f4] ss:$48 sps:$4 sm:$0xff]  }
 0x23a   :  { %3044 = vmatprep.subr.bf16.mxu1 %v5785_v63  ;;  %v5864_v63 = vld [vmem:[%s8392_s3 + $0x138] ss:$48 sps:$4 sm:$0xff]  }
 0x23c   :  { %3148 = vmatpush1.bf16.msra.mxu0 %v5780_v0  ;;  %v5867_v0 = vld [vmem:[%s8392_s3 + $0x1f0] ss:$48 sps:$4 sm:$0xff]  }
 0x23d   :  { %3045 = vmatpush1.bf16.msra.mxu1 %v5783_v1  ;;  %3149 = vmatprep.subr.bf16.mxu0 %v5788_v2  ;;  %v5872_v1 = vld [vmem:[%s8392_s3 + $0x19c] ss:$48 sps:$4 sm:$0xff]   ;;  %v5875_v2 = vld [vmem:[%s8392_s3 + $0x254] ss:$48 sps:$4 sm:$0xff]  }
 0x23e   :  { %3055 = vmatprep.subr.bf16.mxu1 %v5791_v3  ;;  %v5870_v3 = vld [vmem:[%s8392_s3 + $0x198] ss:$48 sps:$4 sm:$0xff]  }
 0x240   :  { %3047 = vmatmul.mubr.bf16.vlgmr.msra.gmra.mrb[12].mxu1 %v6757_v32  ;;  %3150 = vmatpush1.bf16.msra.mxu0 %v5786_v4  ;;  %v5873_v4 = vld [vmem:[%s8392_s3 + $0x250] ss:$48 sps:$4 sm:$0xff]  }
 0x241   :  { %3056 = vmatpush1.bf16.msra.mxu1 %v5789_v6  ;;  %3151 = vmatprep.subr.bf16.mxu0 %v5794_v7  ;;  %v5878_v6 = vld [vmem:[%s8392_s3 + $0x1fc] ss:$48 sps:$4 sm:$0xff]   ;;  %v5881_v7 = vld [vmem:[%s8392_s3 + $0x2b4] ss:$48 sps:$4 sm:$0xff]  }
 0x242   :  { %3057 = vmatprep.subr.bf16.mxu1 %v5797_v8  ;;  %3087 = vmatprep.mubr.bf16.mxu1 %v6346_v28  ;;  %v5876_v8 = vld [vmem:[%s8392_s3 + $0x1f8] ss:$48 sps:$4 sm:$0xff]  }
 0x244   :  { %3152 = vmatpush1.bf16.msra.mxu0 %v5792_v9  ;;  %v5879_v9 = vld [vmem:[%s8392_s3 + $0x2b0] ss:$48 sps:$4 sm:$0xff]  }
 0x245   :  { %3058 = vmatpush1.bf16.msra.mxu1 %v5795_v10  ;;  %3153 = vmatprep.subr.bf16.mxu0 %v5800_v12  ;;  %v5884_v10 = vld [vmem:[%s8392_s3 + $0x25c] ss:$48 sps:$4 sm:$0xff]   ;;  %v5887_v12 = vld [vmem:[%s8392_s3 + $0x314] ss:$48 sps:$4 sm:$0xff]  }
 0x246   :  { %3059 = vmatprep.subr.bf16.mxu1 %v5803_v13  ;;  %v5882_v13 = vld [vmem:[%s8392_s3 + $0x258] ss:$48 sps:$4 sm:$0xff]  }
 0x248   :  { %3154 = vmatpush1.bf16.msra.mxu0 %v5798_v16  ;;  %v5885_v16 = vld [vmem:[%s8392_s3 + $0x310] ss:$48 sps:$4 sm:$0xff]  }
 0x249   :  { %3060 = vmatpush1.bf16.msra.mxu1 %v5801_v20  ;;  %3155 = vmatprep.subr.bf16.mxu0 %v5806_v21  ;;  %v5890_v20 = vld [vmem:[%s8392_s3 + $0x2bc] ss:$48 sps:$4 sm:$0xff]   ;;  %v5893_v21 = vld [vmem:[%s8392_s3 + $0x374] ss:$48 sps:$4 sm:$0xff]  }
 0x24a   :  { %3061 = vmatprep.subr.bf16.mxu1 %v5809_v22  ;;  %v5888_v22 = vld [vmem:[%s8392_s3 + $0x2b8] ss:$48 sps:$4 sm:$0xff]  }
 0x24c   :  { %3156 = vmatpush1.bf16.msra.mxu0 %v5804_v23  ;;  %v5891_v23 = vld [vmem:[%s8392_s3 + $0x370] ss:$48 sps:$4 sm:$0xff]  }
 0x24d   :  { %3062 = vmatpush1.bf16.msra.mxu1 %v5807_v24  ;;  %3157 = vmatprep.subr.bf16.mxu0 %v5812_v25  ;;  %v5896_v24 = vld [vmem:[%s8392_s3 + $0x31c] ss:$48 sps:$4 sm:$0xff]   ;;  %v5899_v25 = vld [vmem:[%s8392_s3 + $0x3d4] ss:$48 sps:$4 sm:$0xff]  }
 0x24e   :  { %3063 = vmatprep.subr.bf16.mxu1 %v5815_v26  ;;  %v5894_v26 = vld [vmem:[%s8392_s3 + $0x318] ss:$48 sps:$4 sm:$0xff]  }
 0x250   :  { %3158 = vmatpush1.bf16.msra.mxu0 %v5810_v27  ;;  %v5897_v27 = vld [vmem:[%s8392_s3 + $0x3d0] ss:$48 sps:$4 sm:$0xff]  }
 0x251   :  { %3064 = vmatpush1.bf16.msra.mxu1 %v5813_v18  ;;  %3159 = vmatprep.subr.bf16.mxu0 %v5818_v19  ;;  %v5902_v18 = vld [vmem:[%s8392_s3 + $0x37c] ss:$48 sps:$4 sm:$0xff]   ;;  %v5905_v19 = vld [vmem:[%s8392_s3 + $0x434] ss:$48 sps:$4 sm:$0xff]  }
 0x252   :  { %3065 = vmatprep.subr.bf16.mxu1 %v5821_v29  ;;  %v5900_v29 = vld [vmem:[%s8392_s3 + $0x378] ss:$48 sps:$4 sm:$0xff]  }
 0x254   :  { %3160 = vmatpush1.bf16.msra.mxu0 %v5816_v30  ;;  %v5903_v30 = vld [vmem:[%s8392_s3 + $0x430] ss:$48 sps:$4 sm:$0xff]  }
 0x255   :  { %3066 = vmatpush1.bf16.msra.mxu1 %v5819_v31  ;;  %3161 = vmatprep.subr.bf16.mxu0 %v5824_v14  ;;  %v5908_v31 = vld [vmem:[%s8392_s3 + $0x3dc] ss:$48 sps:$4 sm:$0xff]   ;;  %v5911_v14 = vld [vmem:[%s8392_s3 + $0x494] ss:$48 sps:$4 sm:$0xff]  }
 0x256   :  { %3067 = vmatprep.subr.bf16.mxu1 %v5827_v34  ;;  %v5906_v34 = vld [vmem:[%s8392_s3 + $0x3d8] ss:$48 sps:$4 sm:$0xff]  }
 0x258   :  { %3162 = vmatpush1.bf16.msra.mxu0 %v5822_v15  ;;  %v5909_v15 = vld [vmem:[%s8392_s3 + $0x490] ss:$48 sps:$4 sm:$0xff]  }
 0x259   :  { %3068 = vmatpush1.bf16.msra.mxu1 %v5825_v35  ;;  %3163 = vmatprep.subr.bf16.mxu0 %v5830_v36  ;;  %v5914_v35 = vld [vmem:[%s8392_s3 + $0x43c] ss:$48 sps:$4 sm:$0xff]   ;;  %v5917_v36 = vld [vmem:[%s8392_s3 + $0x4f4] ss:$48 sps:$4 sm:$0xff]  }
 0x25a   :  { %3069 = vmatprep.subr.bf16.mxu1 %v5833_v38  ;;  %v5912_v38 = vld [vmem:[%s8392_s3 + $0x438] ss:$48 sps:$4 sm:$0xff]  }
 0x25c   :  { %3164 = vmatpush1.bf16.msra.mxu0 %v5828_v40  ;;  %v5915_v40 = vld [vmem:[%s8392_s3 + $0x4f0] ss:$48 sps:$4 sm:$0xff]  }
 0x25d   :  { %3070 = vmatpush1.bf16.msra.mxu1 %v5831_v43  ;;  %3165 = vmatprep.subr.bf16.mxu0 %v5836_v44  ;;  %v5920_v43 = vld [vmem:[%s8392_s3 + $0x49c] ss:$48 sps:$4 sm:$0xff]   ;;  %v5923_v44 = vld [vmem:[%s8392_s3 + $0x554] ss:$48 sps:$4 sm:$0xff]  }
 0x25e   :  { %3096 = vmatprep.subr.bf16.mxu1 %v5839_v45  ;;  %v5918_v45 = vld [vmem:[%s8392_s3 + $0x498] ss:$48 sps:$4 sm:$0xff]  }
 0x260   :  { %3088 = vmatmul.mubr.bf16.vlgmr.msra.gmra.mrb[16].mxu1 %v6847_v62  ;;  %3166 = vmatpush1.bf16.msra.mxu0 %v5834_v47  ;;  %v5921_v47 = vld [vmem:[%s8392_s3 + $0x550] ss:$48 sps:$4 sm:$0xff]  }
 0x261   :  { %3097 = vmatpush1.bf16.msra.mxu1 %v5837_v48  ;;  %3128 = vmatprep.mubr.bf16.mxu1 %v6715_v37  ;;  %v5926_v48 = vld [vmem:[%s8392_s3 + $0x4fc] ss:$48 sps:$4 sm:$0xff]  }
 0x262   :  { %3167 = vmatprep.subr.bf16.mxu0 %v5842_v49  ;;  %3098 = vmatprep.subr.bf16.mxu1 %v5845_v39  ;;  %v5929_v49 = vld [vmem:[%s8392_s3 + $0x5b4] ss:$48 sps:$4 sm:$0xff]   ;;  %v5924_v39 = vld [vmem:[%s8392_s3 + $0x4f8] ss:$48 sps:$4 sm:$0xff]  }
 0x264   :  { %3168 = vmatpush1.bf16.msra.mxu0 %v5840_v41  ;;  %v5927_v41 = vld [vmem:[%s8392_s3 + $0x5b0] ss:$48 sps:$4 sm:$0xff]  }
 0x265   :  { %3099 = vmatpush1.bf16.msra.mxu1 %v5843_v50  ;;  %3219 = vmatprep.subr.bf16.mxu0 %v5848_v51  ;;  %v5932_v50 = vld [vmem:[%s8392_s3 + $0x55c] ss:$48 sps:$4 sm:$0xff]   ;;  %v5935_v51 = vld [vmem:[%s8392_s3 + $0xc14] ss:$48 sps:$4 sm:$0xff]  }
 0x266   :  { %3100 = vmatprep.subr.bf16.mxu1 %v5851_v46  ;;  %v5930_v46 = vld [vmem:[%s8392_s3 + $0x558] ss:$48 sps:$4 sm:$0xff]  }
 0x267   :  { %3170 = vmatmul.mubr.bf16.vlgmr.msra.gmra.mrb[12].mxu0 %v6757_v32 }
 0x268   :  { %3220 = vmatpush1.bf16.msra.mxu0 %v5846_v52  ;;  %3251 = vmatprep.mubr.bf16.mxu0 %v6715_v37  ;;  %v5933_v52 = vld [vmem:[%s8392_s3 + $0xc10] ss:$48 sps:$4 sm:$0xff]  }
 0x269   :  { %3101 = vmatpush1.bf16.msra.mxu1 %v5849_v53  ;;  %3221 = vmatprep.subr.bf16.mxu0 %v5854_v54  ;;  %v5938_v53 = vld [vmem:[%s8392_s3 + $0x5bc] ss:$48 sps:$4 sm:$0xff]   ;;  %v5941_v54 = vld [vmem:[%s8392_s3 + $0xc74] ss:$48 sps:$4 sm:$0xff]  }
 0x26a   :  { %3102 = vmatprep.subr.bf16.mxu1 %v5857_v55  ;;  %v5936_v55 = vld [vmem:[%s8392_s3 + $0x5b8] ss:$48 sps:$4 sm:$0xff]  }
 0x26c   :  { %3222 = vmatpush1.bf16.msra.mxu0 %v5852_v56  ;;  %v5939_v56 = vld [vmem:[%s8392_s3 + $0xc70] ss:$48 sps:$4 sm:$0xff]  }
 0x26d   :  { %3103 = vmatpush1.bf16.msra.mxu1 %v5855_v57  ;;  %3223 = vmatprep.subr.bf16.mxu0 %v5860_v58  ;;  %v5944_v57 = vld [vmem:[%s8392_s3 + $0xc1c] ss:$48 sps:$4 sm:$0xff]   ;;  %v5947_v58 = vld [vmem:[%s8392_s3 + $0xcd4] ss:$48 sps:$4 sm:$0xff]  }
 0x26e   :  { %3104 = vmatprep.subr.bf16.mxu1 %v5863_v59  ;;  %v5942_v59 = vld [vmem:[%s8392_s3 + $0xc18] ss:$48 sps:$4 sm:$0xff]  }
 0x270   :  { %3224 = vmatpush1.bf16.msra.mxu0 %v5858_v60  ;;  %v5945_v60 = vld [vmem:[%s8392_s3 + $0xcd0] ss:$48 sps:$4 sm:$0xff]  }
 0x271   :  { %3105 = vmatpush1.bf16.msra.mxu1 %v5861_v61  ;;  %3225 = vmatprep.subr.bf16.mxu0 %v5866_v42  ;;  %v5950_v61 = vld [vmem:[%s8392_s3 + $0xc7c] ss:$48 sps:$4 sm:$0xff]   ;;  %v5953_v42 = vld [vmem:[%s8392_s3 + $0xd34] ss:$48 sps:$4 sm:$0xff]  }
 0x272   :  { %3106 = vmatprep.subr.bf16.mxu1 %v5869_v17  ;;  %v5948_v17 = vld [vmem:[%s8392_s3 + $0xc78] ss:$48 sps:$4 sm:$0xff]  }
 0x274   :  { %3226 = vmatpush1.bf16.msra.mxu0 %v5864_v63  ;;  %v5951_v63 = vld [vmem:[%s8392_s3 + $0xd30] ss:$48 sps:$4 sm:$0xff]  }
 0x275   :  { %3107 = vmatpush1.bf16.msra.mxu1 %v5867_v0  ;;  %3227 = vmatprep.subr.bf16.mxu0 %v5872_v1  ;;  %v5956_v0 = vld [vmem:[%s8392_s3 + $0xcdc] ss:$48 sps:$4 sm:$0xff]   ;;  %v5959_v1 = vld [vmem:[%s8392_s3 + $0xd94] ss:$48 sps:$4 sm:$0xff]  }
 0x276   :  { %3108 = vmatprep.subr.bf16.mxu1 %v5875_v2  ;;  %v5954_v2 = vld [vmem:[%s8392_s3 + $0xcd8] ss:$48 sps:$4 sm:$0xff]  }
 0x278   :  { %3228 = vmatpush1.bf16.msra.mxu0 %v5870_v3  ;;  %v5957_v3 = vld [vmem:[%s8392_s3 + $0xd90] ss:$48 sps:$4 sm:$0xff]  }
 0x279   :  { %3109 = vmatpush1.bf16.msra.mxu1 %v5873_v4  ;;  %3229 = vmatprep.subr.bf16.mxu0 %v5878_v6  ;;  %v5962_v4 = vld [vmem:[%s8392_s3 + $0xd3c] ss:$48 sps:$4 sm:$0xff]   ;;  %v5965_v6 = vld [vmem:[%s8392_s3 + $0xdf4] ss:$48 sps:$4 sm:$0xff]  }
 0x27a   :  { %3110 = vmatprep.subr.bf16.mxu1 %v5881_v7  ;;  %v5960_v7 = vld [vmem:[%s8392_s3 + $0xd38] ss:$48 sps:$4 sm:$0xff]  }
 0x27c   :  { %3230 = vmatpush1.bf16.msra.mxu0 %v5876_v8  ;;  %v5963_v8 = vld [vmem:[%s8392_s3 + $0xdf0] ss:$48 sps:$4 sm:$0xff]  }
 0x27d   :  { %3111 = vmatpush1.bf16.msra.mxu1 %v5879_v9  ;;  %3231 = vmatprep.subr.bf16.mxu0 %v5884_v10  ;;  %v5968_v9 = vld [vmem:[%s8392_s3 + $0xd9c] ss:$48 sps:$4 sm:$0xff]  }
 0x27e   :  { %3112 = vmatprep.subr.bf16.mxu1 %v5887_v12  ;;  %v5971_v12 = vld [vmem:[%s8392_s3 + $0xe54] ss:$48 sps:$4 sm:$0xff]  }
 0x280   :  { %3232 = vmatpush1.bf16.msra.mxu0 %v5882_v13 }
 0x281   :  { %3113 = vmatpush1.bf16.msra.mxu1 %v5885_v16  ;;  %3233 = vmatprep.subr.bf16.mxu0 %v5890_v20  ;;  %v5966_v20 = vld [vmem:[%s8392_s3 + $0xd98] ss:$48 sps:$4 sm:$0xff]  }
 0x282   :  { %3114 = vmatprep.subr.bf16.mxu1 %v5893_v21 }
 0x284   :  { %3234 = vmatpush1.bf16.msra.mxu0 %v5888_v22  ;;  %v5969_v22 = vld [vmem:[%s8392_s3 + $0xe50] ss:$48 sps:$4 sm:$0xff]  }
 0x285   :  { %3115 = vmatpush1.bf16.msra.mxu1 %v5891_v23  ;;  %3235 = vmatprep.subr.bf16.mxu0 %v5896_v24  ;;  %v5974_v23 = vld [vmem:[%s8392_s3 + $0xdfc] ss:$48 sps:$4 sm:$0xff]   ;;  %v5977_v24 = vld [vmem:[%s8392_s3 + $0xeb4] ss:$48 sps:$4 sm:$0xff]  }
 0x286   :  { %3116 = vmatprep.subr.bf16.mxu1 %v5899_v25  ;;  %v5972_v25 = vld [vmem:[%s8392_s3 + $0xdf8] ss:$48 sps:$4 sm:$0xff]  }
 0x288   :  { %3236 = vmatpush1.bf16.msra.mxu0 %v5894_v26  ;;  %v5975_v26 = vld [vmem:[%s8392_s3 + $0xeb0] ss:$48 sps:$4 sm:$0xff]  }
 0x289   :  { %3117 = vmatpush1.bf16.msra.mxu1 %v5897_v27  ;;  %3237 = vmatprep.subr.bf16.mxu0 %v5902_v18  ;;  %v5980_v27 = vld [vmem:[%s8392_s3 + $0xe5c] ss:$48 sps:$4 sm:$0xff]  }
 0x28a   :  { %3118 = vmatprep.subr.bf16.mxu1 %v5905_v19  ;;  %v5983_v19 = vld [vmem:[%s8392_s3 + $0x61c] ss:$48 sps:$4 sm:$0xff]  }
 0x28c   :  { %3238 = vmatpush1.bf16.msra.mxu0 %v5900_v29 }
 0x28d   :  { %3119 = vmatpush1.bf16.msra.mxu1 %v5903_v30  ;;  %3239 = vmatprep.subr.bf16.mxu0 %v5908_v31 }
 0x28e   :  { %3120 = vmatprep.subr.bf16.mxu1 %v5911_v14 }
 0x290   :  { %3240 = vmatpush1.bf16.msra.mxu0 %v5906_v34  ;;  %v5978_v34 = vld [vmem:[%s8392_s3 + $0xe58] ss:$48 sps:$4 sm:$0xff]  }
 0x291   :  { %3121 = vmatpush1.bf16.msra.mxu1 %v5909_v15  ;;  %3241 = vmatprep.subr.bf16.mxu0 %v5914_v35  ;;  %v5981_v35 = vld [vmem:[%s8392_s3 + $0x618] ss:$48 sps:$4 sm:$0xff]  }
 0x292   :  { %3122 = vmatprep.subr.bf16.mxu1 %v5917_v36  ;;  %v5986_v36 = vld [vmem:[%s8392_s3 + $0xebc] ss:$48 sps:$4 sm:$0xff]  }
 0x294   :  { %3242 = vmatpush1.bf16.msra.mxu0 %v5912_v38  ;;  %v5989_v38 = vld [vmem:[%s8392_s3 + $0x67c] ss:$48 sps:$4 sm:$0xff]  }
 0x295   :  { %3123 = vmatpush1.bf16.msra.mxu1 %v5915_v40  ;;  %3243 = vmatprep.subr.bf16.mxu0 %v5920_v43  ;;  %v5984_v40 = vld [vmem:[%s8392_s3 + $0xeb8] ss:$48 sps:$4 sm:$0xff]  }
 0x296   :  { %3124 = vmatprep.subr.bf16.mxu1 %v5923_v44  ;;  %v5987_v43 = vld [vmem:[%s8392_s3 + $0x678] ss:$48 sps:$4 sm:$0xff]   ;;  %v5992_v44 = vld [vmem:[%s8392_s3 + $0x624] ss:$48 sps:$4 sm:$0xff]  }
 0x298   :  { %3244 = vmatpush1.bf16.msra.mxu0 %v5918_v45  ;;  %v5995_v45 = vld [vmem:[%s8392_s3 + $0x6dc] ss:$48 sps:$4 sm:$0xff]  }
 0x299   :  { %3125 = vmatpush1.bf16.msra.mxu1 %v5921_v47  ;;  %3245 = vmatprep.subr.bf16.mxu0 %v5926_v48  ;;  %v5990_v47 = vld [vmem:[%s8392_s3 + $0x620] ss:$48 sps:$4 sm:$0xff]   ;;  %v5993_v48 = vld [vmem:[%s8392_s3 + $0x6d8] ss:$48 sps:$4 sm:$0xff]  }
 0x29a   :  { %3126 = vmatprep.subr.bf16.mxu1 %v5929_v49  ;;  %v5998_v49 = vld [vmem:[%s8392_s3 + $0x684] ss:$48 sps:$4 sm:$0xff]  }
 0x29c   :  { %3246 = vmatpush1.bf16.msra.mxu0 %v5924_v39  ;;  %v6001_v39 = vld [vmem:[%s8392_s3 + $0x73c] ss:$48 sps:$4 sm:$0xff]  }
 0x29d   :  { %3127 = vmatpush1.bf16.msra.mxu1 %v5927_v41  ;;  %3247 = vmatprep.subr.bf16.mxu0 %v5932_v50  ;;  %v5996_v41 = vld [vmem:[%s8392_s3 + $0x680] ss:$48 sps:$4 sm:$0xff]   ;;  %v5999_v50 = vld [vmem:[%s8392_s3 + $0x738] ss:$48 sps:$4 sm:$0xff]  }
 0x29e   :  { %3178 = vmatprep.subr.bf16.mxu1 %v5935_v51  ;;  %v6004_v51 = vld [vmem:[%s8392_s3 + $0x6e4] ss:$48 sps:$4 sm:$0xff]  }
 0x2a0   :  { %3129 = vmatmul.mubr.bf16.vlgmr.msra.gmra.mrb[20].mxu1 %v6730_v11  ;;  %3248 = vmatpush1.bf16.msra.mxu0 %v5930_v46  ;;  %v6007_v46 = vld [vmem:[%s8392_s3 + $0x79c] ss:$48 sps:$4 sm:$0xff]  }
 0x2a1   :  { %3179 = vmatpush1.bf16.msra.mxu1 %v5933_v52  ;;  %3249 = vmatprep.subr.bf16.mxu0 %v5938_v53  ;;  %v6005_v52 = vld [vmem:[%s8392_s3 + $0x798] ss:$48 sps:$4 sm:$0xff]   ;;  %v6010_v53 = vld [vmem:[%s8392_s3 + $0x744] ss:$48 sps:$4 sm:$0xff]  }
 0x2a2   :  { %3180 = vmatprep.subr.bf16.mxu1 %v5941_v54  ;;  %3210 = vmatprep.mubr.bf16.mxu1 %v6346_v28  ;;  %v6013_v54 = vld [vmem:[%s8392_s3 + $0x7fc] ss:$48 sps:$4 sm:$0xff]  }
 0x2a4   :  { %3250 = vmatpush1.bf16.msra.mxu0 %v5936_v55  ;;  %v6008_v55 = vld [vmem:[%s8392_s3 + $0x740] ss:$48 sps:$4 sm:$0xff]  }
 0x2a5   :  { %3181 = vmatpush1.bf16.msra.mxu1 %v5939_v56  ;;  %3301 = vmatprep.subr.bf16.mxu0 %v5944_v57  ;;  %v6011_v56 = vld [vmem:[%s8392_s3 + $0x7f8] ss:$48 sps:$4 sm:$0xff]   ;;  %v6016_v57 = vld [vmem:[%s8392_s3 + $0x7a4] ss:$48 sps:$4 sm:$0xff]  }
 0x2a6   :  { %3182 = vmatprep.subr.bf16.mxu1 %v5947_v58 }
 0x2a7   :  { %3252 = vmatmul.mubr.bf16.vlgmr.msra.gmra.mrb[16].mxu0 %v6730_v11 }
 0x2a8   :  { %3302 = vmatpush1.bf16.msra.mxu0 %v5942_v59  ;;  %3333 = vmatprep.mubr.bf16.mxu0 %v6346_v28  ;;  %v6019_v59 = vld [vmem:[%s8392_s3 + $0x85c] ss:$48 sps:$4 sm:$0xff]  }
 0x2a9   :  { %3183 = vmatpush1.bf16.msra.mxu1 %v5945_v60  ;;  %3303 = vmatprep.subr.bf16.mxu0 %v5950_v61 }
 0x2aa   :  { %3184 = vmatprep.subr.bf16.mxu1 %v5953_v42 }
 0x2ac   :  { %3304 = vmatpush1.bf16.msra.mxu0 %v5948_v17 }
 0x2ad   :  { %3185 = vmatpush1.bf16.msra.mxu1 %v5951_v63  ;;  %3305 = vmatprep.subr.bf16.mxu0 %v5956_v0  ;;  %v6014_v63 = vld [vmem:[%s8392_s3 + $0x7a0] ss:$48 sps:$4 sm:$0xff]  }
 0x2ae   :  { %3186 = vmatprep.subr.bf16.mxu1 %v5959_v1  ;;  %v6017_v1 = vld [vmem:[%s8392_s3 + $0x858] ss:$48 sps:$4 sm:$0xff]  }
 0x2b0   :  { %3306 = vmatpush1.bf16.msra.mxu0 %v5954_v2  ;;  %v6022_v2 = vld [vmem:[%s8392_s3 + $0x804] ss:$48 sps:$4 sm:$0xff]  }
 0x2b1   :  { %3187 = vmatpush1.bf16.msra.mxu1 %v5957_v3  ;;  %3307 = vmatprep.subr.bf16.mxu0 %v5962_v4  ;;  %v6025_v3 = vld [vmem:[%s8392_s3 + $0x8bc] ss:$48 sps:$4 sm:$0xff]   ;;  %v6020_v4 = vld [vmem:[%s8392_s3 + $0x800] ss:$48 sps:$4 sm:$0xff]  }
 0x2b2   :  { %v2884_v10 = vpop.f32.mrb[4].mxu1  ;;  %3188 = vmatprep.subr.bf16.mxu1 %v5965_v6  ;;  %v6023_v6 = vld [vmem:[%s8392_s3 + $0x8b8] ss:$48 sps:$4 sm:$0xff]  }
 0x2b3   :  { %v2886_v13 = vpop.f32.mrb[5].mxu1 }
 0x2b4   :  { %3308 = vmatpush1.bf16.msra.mxu0 %v5960_v7  ;;  %v2888_v16 = vpop.f32.mrb[6].mxu1  ;;  %v6028_v7 = vld [vmem:[%s8392_s3 + $0x864] ss:$48 sps:$4 sm:$0xff]  }
 0x2b5   :  { %3189 = vmatpush1.bf16.msra.mxu1 %v5963_v8  ;;  %v2889_v21 = vpop.f32.mrb[7].mxu1  ;;  %3309 = vmatprep.subr.bf16.mxu0 %v5968_v9  ;;  %v6031_v8 = vld [vmem:[%s8392_s3 + $0x91c] ss:$48 sps:$4 sm:$0xff]   ;;  %v6026_v9 = vld [vmem:[%s8392_s3 + $0x860] ss:$48 sps:$4 sm:$0xff]  }
 0x2b6   :  { %3190 = vmatprep.subr.bf16.mxu1 %v5971_v12  ;;  %v6034_v12 = vld [vmem:[%s8392_s3 + $0x8c4] ss:$48 sps:$4 sm:$0xff]   ;;  %v6032_v16 = vld [vmem:[%s8392_s3 + $0x8c0] ss:$48 sps:$4 sm:$0xff]  }
 0x2b7   :  { %v6040_v21 = vld [vmem:[%s8392_s3 + $0x924] ss:$48 sps:$4 sm:$0xff]  }
 0x2b8   :  { %3310 = vmatpush1.bf16.msra.mxu0 %v5966_v20  ;;  %v6035_v20 = vld [vmem:[%s8392_s3 + $0x978] ss:$48 sps:$4 sm:$0xff]  }
 0x2b9   :  { %3191 = vmatpush1.bf16.msra.mxu1 %v5969_v22  ;;  %3311 = vmatprep.subr.bf16.mxu0 %v5974_v23  ;;  %v6043_v22 = vld [vmem:[%s8392_s3 + $0x9dc] ss:$48 sps:$4 sm:$0xff]   ;;  %v6038_v23 = vld [vmem:[%s8392_s3 + $0x920] ss:$48 sps:$4 sm:$0xff]  }
 0x2ba   :  { %v2925_v18 = vpop.f32.mrb[4].mxu0  ;;  %3192 = vmatprep.subr.bf16.mxu1 %v5977_v24  ;;  %v6041_v24 = vld [vmem:[%s8392_s3 + $0x9d8] ss:$48 sps:$4 sm:$0xff]  }
 0x2bb   :  { %v2926_v29 = vadd.f32 %v2925_v18, %v2884_v10  ;;  %v2927_v30 = vpop.f32.mrb[5].mxu0  ;;  %v6029_v10 = vld [vmem:[%s8392_s3 + $0x918] ss:$48 sps:$4 sm:$0xff]  }
 0x2bc   :  { %v2928_v31 = vadd.f32 %v2927_v30, %v2886_v13  ;;  %3312 = vmatpush1.bf16.msra.mxu0 %v5972_v25  ;;  %v2929_v14 = vpop.f32.mrb[6].mxu0  ;;  %v6037_v13 = vld [vmem:[%s8392_s3 + $0x97c] ss:$48 sps:$4 sm:$0xff]   ;;  %v6046_v25 = vld [vmem:[%s8392_s3 + $0x984] ss:$48 sps:$4 sm:$0xff]  }
 0x2bd   :  { %3193 = vmatpush1.bf16.msra.mxu1 %v5975_v26  ;;  %v2930_v15 = vpop.f32.mrb[7].mxu0  ;;  %3313 = vmatprep.subr.bf16.mxu0 %v5980_v27  ;;  %v6049_v26 = vld [vmem:[%s8392_s3 + $0xa3c] ss:$48 sps:$4 sm:$0xff]   ;;  %v6044_v27 = vld [vmem:[%s8392_s3 + $0x980] ss:$48 sps:$4 sm:$0xff]  }
 0x2be   :  { %3260 = vmatprep.subr.bf16.mxu1 %v5983_v19  ;;  %v6047_v18 = vld [vmem:[%s8392_s3 + $0xa38] ss:$48 sps:$4 sm:$0xff]   ;;  %v6052_v19 = vld [vmem:[%s8392_s3 + $0x9e4] ss:$48 sps:$4 sm:$0xff]   ;;  %v6050_v30 = vld [vmem:[%s8392_s3 + $0x9e0] ss:$48 sps:$4 sm:$0xff]  }
 0x2bf   :  { %v6058_v14 = vld [vmem:[%s8392_s3 + $0xa44] ss:$48 sps:$4 sm:$0xff]   ;;  %v6056_v15 = vld [vmem:[%s8392_s3 + $0xa40] ss:$48 sps:$4 sm:$0xff]  }
 0x2c0   :  { %3211 = vmatmul.mubr.bf16.vlgmr.msra.gmra.mrb[24].mxu1 %v6847_v62  ;;  %3314 = vmatpush1.bf16.msra.mxu0 %v5978_v34  ;;  %v6061_v34 = vld [vmem:[%s8392_s3 + $0xafc] ss:$48 sps:$4 sm:$0xff]  }
 0x2c1   :  { %3261 = vmatpush1.bf16.msra.mxu1 %v5981_v35  ;;  %3292 = vmatprep.mubr.bf16.mxu1 %v6759_v33  ;;  %v6059_v35 = vld [vmem:[%s8392_s3 + $0xaf8] ss:$48 sps:$4 sm:$0xff]  }
 0x2c2   :  { %3315 = vmatprep.subr.bf16.mxu0 %v5986_v36  ;;  %3262 = vmatprep.subr.bf16.mxu1 %v5989_v38  ;;  %v6064_v36 = vld [vmem:[%s8392_s3 + $0xaa4] ss:$48 sps:$4 sm:$0xff]   ;;  %v6067_v38 = vld [vmem:[%s8392_s3 + $0xb5c] ss:$48 sps:$4 sm:$0xff]  }
 0x2c4   :  { %3316 = vmatpush1.bf16.msra.mxu0 %v5984_v40  ;;  %v6062_v40 = vld [vmem:[%s8392_s3 + $0xaa0] ss:$48 sps:$4 sm:$0xff]  }
 0x2c5   :  { %3263 = vmatpush1.bf16.msra.mxu1 %v5987_v43  ;;  %3383 = vmatprep.subr.bf16.mxu0 %v5992_v44  ;;  %v6065_v43 = vld [vmem:[%s8392_s3 + $0xb58] ss:$48 sps:$4 sm:$0xff]   ;;  %v6070_v44 = vld [vmem:[%s8392_s3 + $0xb04] ss:$48 sps:$4 sm:$0xff]  }
 0x2c6   :  { %3264 = vmatprep.subr.bf16.mxu1 %v5995_v45  ;;  %v6073_v45 = vld [vmem:[%s8392_s3 + $0xbbc] ss:$48 sps:$4 sm:$0xff]  }
 0x2c7   :  { %3334 = vmatmul.mubr.bf16.vlgmr.msra.gmra.mrb[20].mxu0 %v6847_v62 }
 0x2c8   :  { %3384 = vmatpush1.bf16.msra.mxu0 %v5990_v47  ;;  %3415 = vmatprep.mubr.bf16.mxu0 %v6759_v33  ;;  %v6002_v33 = vld [vmem:[%s8392_s3 + $0x6e0] ss:$48 sps:$4 sm:$0xff]  }
 0x2c9   :  { %3265 = vmatpush1.bf16.msra.mxu1 %v5993_v48  ;;  %3385 = vmatprep.subr.bf16.mxu0 %v5998_v49  ;;  %v6068_v47 = vld [vmem:[%s8392_s3 + $0xb00] ss:$48 sps:$4 sm:$0xff]   ;;  %v6071_v48 = vld [vmem:[%s8392_s3 + $0xbb8] ss:$48 sps:$4 sm:$0xff]   ;;  %v6076_v49 = vld [vmem:[%s8392_s3 + $0xb64] ss:$48 sps:$4 sm:$0xff]  }
 0x2ca   :  { %3266 = vmatprep.subr.bf16.mxu1 %v6001_v39 }
 0x2cc   :  { %3386 = vmatpush1.bf16.msra.mxu0 %v5996_v41  ;;  %v6079_v41 = vld [vmem:[%s8392_s3 + $0x24] ss:$48 sps:$4 sm:$0xff]  }
 0x2cd   :  { %3267 = vmatpush1.bf16.msra.mxu1 %v5999_v50  ;;  %3387 = vmatprep.subr.bf16.mxu0 %v6004_v51 }
 0x2ce   :  { %3268 = vmatprep.subr.bf16.mxu1 %v6007_v46  ;;  %v6074_v46 = vld [vmem:[%s8392_s3 + $0xb60] ss:$48 sps:$4 sm:$0xff]  }
 0x2d0   :  { %3388 = vmatpush1.bf16.msra.mxu0 %v6002_v33 }
 0x2d1   :  { %3269 = vmatpush1.bf16.msra.mxu1 %v6005_v52  ;;  %3389 = vmatprep.subr.bf16.mxu0 %v6010_v53  ;;  %v6077_v52 = vld [vmem:[%s8392_s3 + $0x20] ss:$48 sps:$4 sm:$0xff]   ;;  %v6082_v53 = vld [vmem:[%s8392_s3 + $0xbc4] ss:$48 sps:$4 sm:$0xff]  }
 0x2d2   :  { %v2966_v58 = vpop.f32.mrb[8].mxu1  ;;  %3270 = vmatprep.subr.bf16.mxu1 %v6013_v54  ;;  %v6085_v54 = vld [vmem:[%s8392_s3 + $0x84] ss:$48 sps:$4 sm:$0xff]  }
 0x2d3   :  { %v7509_v60 = vadd.f32 %v2966_v58, %v2926_v29  ;;  %v2968_v61 = vpop.f32.mrb[9].mxu1  ;;  %v6055_v29 = vld [vmem:[%s8392_s3 + $0xa9c] ss:$48 sps:$4 sm:$0xff]   ;;  %v6086_v58 = vld [vmem:[%s8392_s3 + $0xe0] ss:$48 sps:$4 sm:$0xff]  }
 0x2d4   :  { %v7511_v42 = vadd.f32 %v2968_v61, %v2928_v31  ;;  %3390 = vmatpush1.bf16.msra.mxu0 %v6008_v55  ;;  %v2970_v17 = vpop.f32.mrb[10].mxu1  ;;  %v6053_v31 = vld [vmem:[%s8392_s3 + $0xa98] ss:$48 sps:$4 sm:$0xff]   ;;  %v6080_v55 = vld [vmem:[%s8392_s3 + $0xbc0] ss:$48 sps:$4 sm:$0xff]  }
 0x2d5   :  { %3271 = vmatpush1.bf16.msra.mxu1 %v6011_v56  ;;  %v2971_v0 = vpop.f32.mrb[11].mxu1  ;;  %3391 = vmatprep.subr.bf16.mxu0 %v6016_v57  ;;  %v6083_v56 = vld [vmem:[%s8392_s3 + $0x80] ss:$48 sps:$4 sm:$0xff]   ;;  %v6088_v57 = vld [vmem:[%s8392_s3 + $0xe4] ss:$48 sps:$4 sm:$0xff]  }
 0x2d6   :  { %3272 = vmatprep.subr.bf16.mxu1 %v6019_v59  ;;  %v6089_v59 = vld [vmem:[%s8392_s3 + $0x140] ss:$48 sps:$4 sm:$0xff]   ;;  %v6094_v61 = vld [vmem:[%s8392_s3 + $0x1a4] ss:$48 sps:$4 sm:$0xff]  }
 0x2d7   :  { %v6092_v17 = vld [vmem:[%s8392_s3 + $0x1a0] ss:$48 sps:$4 sm:$0xff]   ;;  %v6100_v0 = vld [vmem:[%s8392_s3 + $0x264] ss:$48 sps:$4 sm:$0xff]  }
 0x2d8   :  { %3392 = vmatpush1.bf16.msra.mxu0 %v6014_v63  ;;  %v6095_v63 = vld [vmem:[%s8392_s3 + $0x200] ss:$48 sps:$4 sm:$0xff]  }
 0x2d9   :  { %3273 = vmatpush1.bf16.msra.mxu1 %v6017_v1  ;;  %3393 = vmatprep.subr.bf16.mxu0 %v6022_v2 }
 0x2da   :  { %3274 = vmatprep.subr.bf16.mxu1 %v6025_v3 }
 0x2dc   :  { %3394 = vmatpush1.bf16.msra.mxu0 %v6020_v4 }
 0x2dd   :  { %3275 = vmatpush1.bf16.msra.mxu1 %v6023_v6  ;;  %3395 = vmatprep.subr.bf16.mxu0 %v6028_v7  ;;  %v6098_v7 = vld [vmem:[%s8392_s3 + $0x260] ss:$48 sps:$4 sm:$0xff]  }
 0x2de   :  { %3276 = vmatprep.subr.bf16.mxu1 %v6031_v8 }
 0x2e0   :  { %3396 = vmatpush1.bf16.msra.mxu0 %v6026_v9  ;;  %v6103_v9 = vld [vmem:[%s8392_s3 + $0x2c4] ss:$48 sps:$4 sm:$0xff]  }
 0x2e1   :  { %3277 = vmatpush1.bf16.msra.mxu1 %v6029_v10  ;;  %3397 = vmatprep.subr.bf16.mxu0 %v6034_v12  ;;  %v6101_v10 = vld [vmem:[%s8392_s3 + $0x2c0] ss:$48 sps:$4 sm:$0xff]   ;;  %v6106_v12 = vld [vmem:[%s8392_s3 + $0x324] ss:$48 sps:$4 sm:$0xff]  }
 0x2e2   :  { %3278 = vmatprep.subr.bf16.mxu1 %v6037_v13  ;;  %v6104_v13 = vld [vmem:[%s8392_s3 + $0x320] ss:$48 sps:$4 sm:$0xff]  }
 0x2e4   :  { %3398 = vmatpush1.bf16.msra.mxu0 %v6032_v16  ;;  %v6109_v16 = vld [vmem:[%s8392_s3 + $0x384] ss:$48 sps:$4 sm:$0xff]  }
 0x2e5   :  { %3279 = vmatpush1.bf16.msra.mxu1 %v6035_v20  ;;  %3399 = vmatprep.subr.bf16.mxu0 %v6040_v21  ;;  %v6107_v20 = vld [vmem:[%s8392_s3 + $0x380] ss:$48 sps:$4 sm:$0xff]   ;;  %v6112_v21 = vld [vmem:[%s8392_s3 + $0x3e4] ss:$48 sps:$4 sm:$0xff]  }
 0x2e6   :  { %3280 = vmatprep.subr.bf16.mxu1 %v6043_v22  ;;  %v6110_v22 = vld [vmem:[%s8392_s3 + $0x3e0] ss:$48 sps:$4 sm:$0xff]  }
 0x2e8   :  { %3400 = vmatpush1.bf16.msra.mxu0 %v6038_v23  ;;  %v6115_v23 = vld [vmem:[%s8392_s3 + $0x444] ss:$48 sps:$4 sm:$0xff]  }
 0x2e9   :  { %3281 = vmatpush1.bf16.msra.mxu1 %v6041_v24  ;;  %3401 = vmatprep.subr.bf16.mxu0 %v6046_v25  ;;  %v6113_v24 = vld [vmem:[%s8392_s3 + $0x440] ss:$48 sps:$4 sm:$0xff]   ;;  %v6118_v25 = vld [vmem:[%s8392_s3 + $0x4a4] ss:$48 sps:$4 sm:$0xff]  }
 0x2ea   :  { %3282 = vmatprep.subr.bf16.mxu1 %v6049_v26  ;;  %v6116_v26 = vld [vmem:[%s8392_s3 + $0x4a0] ss:$48 sps:$4 sm:$0xff]  }
 0x2ec   :  { %3402 = vmatpush1.bf16.msra.mxu0 %v6044_v27  ;;  %v6121_v27 = vld [vmem:[%s8392_s3 + $0x504] ss:$48 sps:$4 sm:$0xff]  }
 0x2ed   :  { %3283 = vmatpush1.bf16.msra.mxu1 %v6047_v18  ;;  %3403 = vmatprep.subr.bf16.mxu0 %v6052_v19  ;;  %v6119_v18 = vld [vmem:[%s8392_s3 + $0x500] ss:$48 sps:$4 sm:$0xff]   ;;  %v6124_v19 = vld [vmem:[%s8392_s3 + $0x564] ss:$48 sps:$4 sm:$0xff]  }
 0x2ee   :  { %3284 = vmatprep.subr.bf16.mxu1 %v6055_v29 }
 0x2f0   :  { %3404 = vmatpush1.bf16.msra.mxu0 %v6050_v30 }
 0x2f1   :  { %3285 = vmatpush1.bf16.msra.mxu1 %v6053_v31  ;;  %3405 = vmatprep.subr.bf16.mxu0 %v6058_v14 }
 0x2f2   :  { %3286 = vmatprep.subr.bf16.mxu1 %v6061_v34 }
 0x2f4   :  { %3406 = vmatpush1.bf16.msra.mxu0 %v6056_v15  ;;  %v6122_v15 = vld [vmem:[%s8392_s3 + $0x560] ss:$48 sps:$4 sm:$0xff]  }
 0x2f5   :  { %3287 = vmatpush1.bf16.msra.mxu1 %v6059_v35  ;;  %3407 = vmatprep.subr.bf16.mxu0 %v6064_v36  ;;  %v6127_v36 = vld [vmem:[%s8392_s3 + $0x5c4] ss:$48 sps:$4 sm:$0xff]  }
 0x2f6   :  { %3288 = vmatprep.subr.bf16.mxu1 %v6067_v38  ;;  %v6125_v38 = vld [vmem:[%s8392_s3 + $0x5c0] ss:$48 sps:$4 sm:$0xff]  }
 0x2f8   :  { %3408 = vmatpush1.bf16.msra.mxu0 %v6062_v40 }
 0x2f9   :  { %3289 = vmatpush1.bf16.msra.mxu1 %v6065_v43  ;;  %3409 = vmatprep.subr.bf16.mxu0 %v6070_v44  ;;  %v6130_v43 = vld [vmem:[%s8392_s3 + $0xc24] ss:$48 sps:$4 sm:$0xff]  }
 0x2fa   :  { %v3007_v39 = vpop.f32.mrb[8].mxu0  ;;  %3290 = vmatprep.subr.bf16.mxu1 %v6073_v45 }
 0x2fb   :  { %v3009_v50 = vpop.f32.mrb[9].mxu0 }
 0x2fc   :  { %v3011_v51 = vpop.f32.mrb[10].mxu0  ;;  %3410 = vmatpush1.bf16.msra.mxu0 %v6068_v47 }
 0x2fd   :  { %v3012_v33 = vpop.f32.mrb[11].mxu0  ;;  %3291 = vmatpush1.bf16.msra.mxu1 %v6071_v48  ;;  %3411 = vmatprep.subr.bf16.mxu0 %v6076_v49  ;;  %v6128_v48 = vld [vmem:[%s8392_s3 + $0xc20] ss:$48 sps:$4 sm:$0xff]   ;;  %v6133_v49 = vld [vmem:[%s8392_s3 + $0xc84] ss:$48 sps:$4 sm:$0xff]  }
 0x2fe   :  { %3342 = vmatprep.subr.bf16.mxu1 %v6079_v41  ;;  %v6136_v41 = vld [vmem:[%s8392_s3 + $0xce4] ss:$48 sps:$4 sm:$0xff]   ;;  %v6137_v51 = vld [vmem:[%s8392_s3 + $0xd40] ss:$48 sps:$4 sm:$0xff]  }
 0x2ff   :  { %v6140_v33 = vld [vmem:[%s8392_s3 + $0xda0] ss:$48 sps:$4 sm:$0xff]  }
 0x300   :  { %3293 = vmatmul.mubr.bf16.vlgmr.msra.gmra.mrb[28].mxu1 %v6757_v32  ;;  %3412 = vmatpush1.bf16.msra.mxu0 %v6074_v46  ;;  %v6142_v46 = vld [vmem:[%s8392_s3 + $0xda4] ss:$48 sps:$4 sm:$0xff]  }
 0x301   :  { %3343 = vmatpush1.bf16.msra.mxu1 %v6077_v52  ;;  %3374 = vmatprep.mubr.bf16.mxu1 %v6715_v37  ;;  %v6091_v37 = vld [vmem:[%s8392_s3 + $0x144] ss:$48 sps:$4 sm:$0xff]  }
 0x302   :  { %3413 = vmatprep.subr.bf16.mxu0 %v6082_v53  ;;  %3344 = vmatprep.subr.bf16.mxu1 %v6085_v54  ;;  %v6145_v52 = vld [vmem:[%s8392_s3 + $0xe04] ss:$48 sps:$4 sm:$0xff]   ;;  %v6143_v53 = vld [vmem:[%s8392_s3 + $0xe00] ss:$48 sps:$4 sm:$0xff]  }
 0x303   :  { %v6148_v54 = vld [vmem:[%s8392_s3 + $0xe64] ss:$48 sps:$4 sm:$0xff]  }
 0x304   :  { %3414 = vmatpush1.bf16.msra.mxu0 %v6080_v55  ;;  %v6146_v55 = vld [vmem:[%s8392_s3 + $0xe60] ss:$48 sps:$4 sm:$0xff]  }
 0x305   :  { %3345 = vmatpush1.bf16.msra.mxu1 %v6083_v56  ;;  %v6151_v56 = vld [vmem:[%s8392_s3 + $0xec4] ss:$48 sps:$4 sm:$0xff]  }
 0x306   :  { %3346 = vmatprep.subr.bf16.mxu1 %v6088_v57  ;;  %v6149_v57 = vld [vmem:[%s8392_s3 + $0xec0] ss:$48 sps:$4 sm:$0xff]  }
 0x307   :  { %3416 = vmatmul.mubr.bf16.vlgmr.msra.gmra.mrb[24].mxu0 %v6757_v32  ;;  %v6097_v32 = vld [vmem:[%s8392_s3 + $0x204] ss:$48 sps:$4 sm:$0xff]  }
 0x309   :  { %3347 = vmatpush1.bf16.msra.mxu1 %v6086_v58 }
 0x30a   :  { %3348 = vmatprep.subr.bf16.mxu1 %v6091_v37 }
 0x30d   :  { %3349 = vmatpush1.bf16.msra.mxu1 %v6089_v59 }
 0x30e   :  { %3350 = vmatprep.subr.bf16.mxu1 %v6094_v61 }
 0x311   :  { %3351 = vmatpush1.bf16.msra.mxu1 %v6092_v17 }
 0x312   :  { %3352 = vmatprep.subr.bf16.mxu1 %v6097_v32 }
 0x313   :  { %v3048_v1 = vpop.f32.mrb[12].mxu1 }
 0x314   :  { %v3049_v2 = vadd.f32 %v3048_v1, %v3007_v39  ;;  %v3050_v3 = vpop.f32.mrb[13].mxu1  ;;  %v6131_v39 = vld [vmem:[%s8392_s3 + $0xc80] ss:$48 sps:$4 sm:$0xff]  }
 0x315   :  { %v3051_v4 = vadd.f32 %v3050_v3, %v3009_v50  ;;  %v3052_v6 = vpop.f32.mrb[14].mxu1  ;;  %3353 = vmatpush1.bf16.msra.mxu1 %v6095_v63  ;;  %v6134_v50 = vld [vmem:[%s8392_s3 + $0xce0] ss:$48 sps:$4 sm:$0xff]   ;;  %v3465_v63 = vlaneseq }
 0x316   :  { %v3053_v8 = vpop.f32.mrb[15].mxu1  ;;  %3354 = vmatprep.subr.bf16.mxu1 %v6100_v0  ;;  %v5273_v6 = vld [vmem:[%s8389_s2 + $0x28] ss:$8 sm:$0xf] }
 0x319   :  { %3355 = vmatpush1.bf16.msra.mxu1 %v6098_v7 }
 0x31a   :  { %3356 = vmatprep.subr.bf16.mxu1 %v6103_v9 }
 0x31d   :  { %3357 = vmatpush1.bf16.msra.mxu1 %v6101_v10 }
 0x31e   :  { %3358 = vmatprep.subr.bf16.mxu1 %v6106_v12 }
 0x321   :  { %3359 = vmatpush1.bf16.msra.mxu1 %v6104_v13 }
 0x322   :  { %3360 = vmatprep.subr.bf16.mxu1 %v6109_v16 }
 0x325   :  { %3361 = vmatpush1.bf16.msra.mxu1 %v6107_v20 }
 0x326   :  { %3362 = vmatprep.subr.bf16.mxu1 %v6112_v21 }
 0x329   :  { %3363 = vmatpush1.bf16.msra.mxu1 %v6110_v22 }
 0x32a   :  { %3364 = vmatprep.subr.bf16.mxu1 %v6115_v23 }
 0x32d   :  { %3365 = vmatpush1.bf16.msra.mxu1 %v6113_v24 }
 0x32e   :  { %3366 = vmatprep.subr.bf16.mxu1 %v6118_v25 }
 0x331   :  { %3367 = vmatpush1.bf16.msra.mxu1 %v6116_v26 }
 0x332   :  { %3368 = vmatprep.subr.bf16.mxu1 %v6121_v27 }
 0x333   :  { %v3089_v29 = vpop.f32.mrb[16].mxu1 }
 0x334   :  { %v7729_v30 = vadd.f32 %v3089_v29, %v3049_v2  ;;  %v3091_v31 = vpop.f32.mrb[17].mxu1 }
 0x335   :  { %v7731_v14 = vadd.f32 %v3091_v31, %v3051_v4  ;;  %v3093_v34 = vpop.f32.mrb[18].mxu1  ;;  %3369 = vmatpush1.bf16.msra.mxu1 %v6119_v18  ;;  %v3492_v4 = vshrl.u32 %v3465_v63, 7 }
 0x336   :  { %v3094_v35 = vpop.f32.mrb[19].mxu1  ;;  %3370 = vmatprep.subr.bf16.mxu1 %v6124_v19 }
 0x337   :  { %v7799_v8 = vsub.s32 0, %v3492_v4  ;;  %v7801_v9 = vsub.s32 1, %v3492_v4  ;;  %v7803_v10 = vsub.s32 2, %v3492_v4  ;;  %v7808_v20 = vsub.s32 3, %v3492_v4 }
 0x338   :  { %v7816_v27 = vsub.s32 4, %v3492_v4 }
 0x339   :  { %3371 = vmatpush1.bf16.msra.mxu1 %v6122_v15 }
 0x33a   :  { %v3171_v40 = vpop.f32.mrb[12].mxu0  ;;  %3372 = vmatprep.subr.bf16.mxu1 %v6127_v36 }
 0x33b   :  { %v3173_v44 = vpop.f32.mrb[13].mxu0 }
 0x33c   :  { %v3175_v45 = vpop.f32.mrb[14].mxu0 }
 0x33d   :  { %v3176_v47 = vpop.f32.mrb[15].mxu0  ;;  %3373 = vmatpush1.bf16.msra.mxu1 %v6125_v38 }
 0x33e   :  { %3424 = vmatprep.subr.bf16.mxu1 %v6130_v43 }
 0x340   :  { %3375 = vmatmul.mubr.bf16.vlgmr.msra.gmra.mrb[32].mxu1 %v6730_v11  ;;  %v6139_v11 = vld [vmem:[%s8392_s3 + $0xd44] ss:$48 sps:$4 sm:$0xff]  }
 0x341   :  { %3425 = vmatpush1.bf16.msra.mxu1 %v6128_v48  ;;  %3456 = vmatprep.mubr.bf16.mxu1 %v6346_v28 }
 0x342   :  { %3426 = vmatprep.subr.bf16.mxu1 %v6133_v49 }
 0x345   :  { %3427 = vmatpush1.bf16.msra.mxu1 %v6131_v39 }
 0x346   :  { %3428 = vmatprep.subr.bf16.mxu1 %v6136_v41 }
 0x349   :  { %3429 = vmatpush1.bf16.msra.mxu1 %v6134_v50 }
 0x34a   :  { %3430 = vmatprep.subr.bf16.mxu1 %v6139_v11 }
 0x34d   :  { %3431 = vmatpush1.bf16.msra.mxu1 %v6137_v51 }
 0x34e   :  { %3432 = vmatprep.subr.bf16.mxu1 %v6142_v46 }
 0x351   :  { %3433 = vmatpush1.bf16.msra.mxu1 %v6140_v33 }
 0x352   :  { %3434 = vmatprep.subr.bf16.mxu1 %v6145_v52 }
 0x355   :  { %3435 = vmatpush1.bf16.msra.mxu1 %v6143_v53 }
 0x356   :  { %3436 = vmatprep.subr.bf16.mxu1 %v6148_v54 }
 0x359   :  { %3437 = vmatpush1.bf16.msra.mxu1 %v6146_v55 }
 0x35a   :  { %3438 = vmatprep.subr.bf16.mxu1 %v6151_v56 }
 0x35d   :  { %3439 = vmatpush1.bf16.msra.mxu1 %v6149_v57 }
 0x360   :  { %3457 = vmatmul.mubr.bf16.vlgmr.msra.gmra.mrb[36].mxu1 %v6847_v62  ;;  %v5274_v62 = vld [vmem:[%s8389_s2 + $0x28] ss:$8 sm:$0x10] }
 0x361   :  { %v3489_v7 = vor.u32 %v5274_v62, %v5273_v6 }
 0x363   :  { %v3494_v12 = vrot.slane %v3489_v7, %v7799_v8  ;;  %v3498_v13 = vrot.slane %v3489_v7, %v7801_v9  ;;  %v3502_v16 = vrot.slane %v3489_v7, %v7803_v10  ;;  %v3506_v24 = vrot.slane %v3489_v7, %v7808_v20 }
 0x365   :  { %v3516_v21 = vadd.f32 %v3494_v12, %v7509_v60  ;;  %v3517_v22 = vadd.f32 %v3498_v13, %v7511_v42  ;;  %v3518_v23 = vadd.f32 %v3502_v16, %v7729_v30  ;;  %v3519_v19 = vadd.f32 %v3506_v24, %v7731_v14 }
 0x366   :  { %v3510_v60 = vrot.slane %v3489_v7, %v7816_v27 }
 0x367   :  { %v3530_v25 = vsel %vm3529_vm15, %v3516_v21, 0.0  ;;  %v3531_v26 = vsel %vm3529_vm15, %v3517_v22, 0.0  ;;  %v3533_v18 = vsel %vm3529_vm15, %v3518_v23, 0.0  ;;  %v3535_v30 = vsel %vm3529_vm15, %v3519_v19, 0.0 }
 0x368   :  { %v3532_v29 = vadd.f32 %v3531_v26, %v3530_v25 }
 0x36a   :  { %v3534_v42 = vadd.f32 %v3533_v18, %v3532_v29 }
 0x36c   :  { %v3536_v43 = vadd.f32 %v3535_v30, %v3534_v42 }
 0x373   :  { %v3130_v58 = vpop.f32.mrb[20].mxu1 }
 0x374   :  { %v3172_v37 = vadd.f32 %v3171_v40, %v3130_v58  ;;  %v3132_v59 = vpop.f32.mrb[21].mxu1 }
 0x375   :  { %v3174_v61 = vadd.f32 %v3173_v44, %v3132_v59  ;;  %v3134_v17 = vpop.f32.mrb[22].mxu1 }
 0x376   :  { %v3135_v32 = vpop.f32.mrb[23].mxu1 }
 0x377   :  { %v3466_v32 = vand.u32 127, %v3465_v63 }
 0x37a   :  { %v3253_v0 = vpop.f32.mrb[16].mxu0 }
 0x37b   :  { %v3255_v1 = vpop.f32.mrb[17].mxu0 }
 0x37c   :  { %v3257_v2 = vpop.f32.mrb[18].mxu0 }
 0x37d   :  { %v3258_v3 = vpop.f32.mrb[19].mxu0  ;;  %v3470_v2 = vadd.s32 512, %v3466_v32  ;;  %v5276_v32 = vld [vmem:[%s8389_s2 + $0x2a] ss:$8 sm:$0x10] }
 0x37f   :  { %vm3475_vm0 = vcmp.lt.s32.totalorder %v3470_v2, 576 }
 0x380   :  { %v7832_v12 = vsel %vm3475_vm0, 1.0, %v6334_v5 }
 0x393   :  { %v3212_v31 = vpop.f32.mrb[24].mxu1 }
 0x394   :  { %v3213_v34 = vadd.f32 %v3212_v31, %v3172_v37  ;;  %v3214_v15 = vpop.f32.mrb[25].mxu1 }
 0x395   :  { %v3215_v35 = vadd.f32 %v3214_v15, %v3174_v61  ;;  %v3216_v36 = vpop.f32.mrb[26].mxu1 }
 0x396   :  { %v3520_v38 = vadd.f32 %v3510_v60, %v3213_v34  ;;  %v3217_v40 = vpop.f32.mrb[27].mxu1 }
 0x398   :  { %v3537_v44 = vsel %vm3529_vm15, %v3520_v38, 0.0 }
 0x399   :  { %v3538_v45 = vadd.f32 %v3537_v44, %v3536_v43 }
 0x39a   :  { %v3335_v47 = vpop.f32.mrb[20].mxu0 }
 0x39b   :  { %v3337_v48 = vpop.f32.mrb[21].mxu0  ;;  %3539 = vadd.xlane.f32.xlu0 %v3538_v45 }
 0x39c   :  { %v3339_v14 = vpop.f32.mrb[22].mxu0 }
 0x39d   :  { %v3340_v49 = vpop.f32.mrb[23].mxu0 }
 0x3d3   :  { %v3294_v39 = vpop.f32.mrb[28].mxu1 }
 0x3d4   :  { %v3295_v41 = vadd.f32 %v3294_v39, %v3253_v0  ;;  %v3296_v50 = vpop.f32.mrb[29].mxu1  ;;  %v5279_v0 = vld [vmem:[%s8389_s2 + $0x29] ss:$8 sm:$0xf] }
 0x3d5   :  { %v3297_v11 = vadd.f32 %v3296_v50, %v3255_v1  ;;  %v3298_v51 = vpop.f32.mrb[30].mxu1  ;;  %v5280_v1 = vld [vmem:[%s8389_s2 + $0x29] ss:$8 sm:$0x10] }
 0x3d6   :  { %v3336_v46 = vadd.f32 %v3335_v47, %v3295_v41  ;;  %v3299_v33 = vpop.f32.mrb[31].mxu1  ;;  %v3666_v3 = vor.u32 %v5280_v1, %v5279_v0 }
 0x3d7   :  { %v3338_v52 = vadd.f32 %v3337_v48, %v3297_v11 }
 0x3d8   :  { %v3675_v4 = vrot.slane %v3666_v3, %v7801_v9  ;;  %v3671_v7 = vrot.slane %v3666_v3, %v7799_v8  ;;  %v3679_v26 = vrot.slane %v3666_v3, %v7803_v10  ;;  %v3683_v40 = vrot.slane %v3666_v3, %v7808_v20 }
 0x3d9   :  { %v3687_v45 = vrot.slane %v3666_v3, %v7816_v27  ;;  %v5277_v3 = vld [vmem:[%s8389_s2 + $0x2b] ss:$8 sm:$0xf] }
 0x3da   :  { %v3417_v53 = vpop.f32.mrb[24].mxu0  ;;  %v3694_v25 = vadd.f32 %v3675_v4, %v3336_v46  ;;  %v3693_v31 = vadd.f32 %v3671_v7, %v3215_v35  ;;  %v3695_v15 = vadd.f32 %v3679_v26, %v3338_v52  ;;  %v5278_v4 = vld [vmem:[%s8389_s2 + $0x2b] ss:$8 sm:$0x10] }
 0x3db   :  { %v3419_v54 = vpop.f32.mrb[25].mxu0 }
 0x3dc   :  { %v3421_v55 = vpop.f32.mrb[26].mxu0  ;;  %v3707_v34 = vsel %vm3529_vm15, %v3694_v25, 0.0  ;;  %v3706_v35 = vsel %vm3529_vm15, %v3693_v31, 0.0  ;;  %v3709_v41 = vsel %vm3529_vm15, %v3695_v15, 0.0 }
 0x3dd   :  { %v3422_v56 = vpop.f32.mrb[27].mxu0  ;;  %v3708_v48 = vadd.f32 %v3707_v34, %v3706_v35 }
 0x413   :  { %v3376_v57 = vpop.f32.mrb[32].mxu1 }
 0x414   :  { %v3418_v58 = vadd.f32 %v3417_v53, %v3376_v57  ;;  %v3378_v37 = vpop.f32.mrb[33].mxu1 }
 0x415   :  { %v3420_v59 = vadd.f32 %v3419_v54, %v3378_v37  ;;  %v3380_v61 = vpop.f32.mrb[34].mxu1  ;;  %v3710_v54 = vadd.f32 %v3709_v41, %v3708_v48 }
 0x416   :  { %v3381_v17 = vpop.f32.mrb[35].mxu1 }
 0x428   :  { %v3540_v6 = vpop.xlane.xlu0 %3539 }
 0x429   :  { %v3541_v62 = vmul.f32 0.0017361111, %v3540_v6 }
 0x42b   :  { %v7834_v63 = vsub.f32 %v3516_v21, %v3541_v62  ;;  %v7836_v13 = vsub.f32 %v3517_v22, %v3541_v62  ;;  %v7838_v16 = vsub.f32 %v3518_v23, %v3541_v62  ;;  %v7840_v24 = vsub.f32 %v3519_v19, %v3541_v62 }
 0x42c   :  { %v3546_v18 = vsub.f32 %v3520_v38, %v3541_v62 }
 0x42d   :  { %v3552_v29 = vmul.f32 %v7834_v63, %v7834_v63  ;;  %v3553_v60 = vmul.f32 %v7836_v13, %v7836_v13  ;;  %v3554_v21 = vmul.f32 %v7838_v16, %v7838_v16  ;;  %v3555_v23 = vmul.f32 %v7840_v24, %v7840_v24 }
 0x42e   :  { %v7850_v22 = vmul.f32 %v7832_v12, %v3546_v18 }
 0x42f   :  { %v3557_v19 = vsel %vm3529_vm15, %v3552_v29, 0.0  ;;  %v3558_v42 = vsel %vm3529_vm15, %v3553_v60, 0.0  ;;  %v3560_v38 = vsel %vm3529_vm15, %v3554_v21, 0.0  ;;  %v3562_v47 = vsel %vm3529_vm15, %v3555_v23, 0.0 }
 0x430   :  { %v3559_v30 = vadd.f32 %v3558_v42, %v3557_v19  ;;  %v3556_v36 = vmul.f32 %v7850_v22, %v7850_v22  ;;  %v3528_v23 = vor.u32 %v5278_v4, %v5277_v3 }
 0x432   :  { %v3561_v43 = vadd.f32 %v3560_v38, %v3559_v30  ;;  %v3564_v51 = vsel %vm3529_vm15, %v3556_v36, 0.0 }
 0x433   :  { %v3458_v44 = vpop.f32.mrb[36].mxu1 }
 0x434   :  { %v3459_v14 = vadd.f32 %v3458_v44, %v3418_v58  ;;  %v3460_v49 = vpop.f32.mrb[37].mxu1  ;;  %v3563_v39 = vadd.f32 %v3562_v47, %v3561_v43  ;;  %v3611_v43 = vrot.slane %v3528_v23, %v7799_v8  ;;  %v3615_v44 = vrot.slane %v3528_v23, %v7801_v9 }
 0x435   :  { %v3461_v50 = vadd.f32 %v3460_v49, %v3420_v59  ;;  %v3462_v11 = vpop.f32.mrb[38].mxu1  ;;  %v5275_v59 = vld [vmem:[%s8389_s2 + $0x2a] ss:$8 sm:$0xf]  ;;  %v3623_v49 = vrot.slane %v3528_v23, %v7808_v20 }
 0x436   :  { %v3696_v46 = vadd.f32 %v3683_v40, %v3459_v14  ;;  %v3463_v33 = vpop.f32.mrb[39].mxu1  ;;  %v3565_v52 = vadd.f32 %v3564_v51, %v3563_v39  ;;  %v3524_v2 = vor.u32 %v5276_v32, %v5275_v59  ;;  %v3619_v14 = vrot.slane %v3528_v23, %v7803_v10 }
 0x437   :  { %v3697_v53 = vadd.f32 %v3687_v45, %v3461_v50 }
 0x438   :  { %3566 = vadd.xlane.f32.xlu0 %v3565_v52  ;;  %v3711_v55 = vsel %vm3529_vm15, %v3696_v46, 0.0  ;;  %v3580_v34 = vrot.slane %v3524_v2, %v7799_v8  ;;  %v3588_v38 = vrot.slane %v3524_v2, %v7803_v10  ;;  %v3596_v40 = vrot.slane %v3524_v2, %v7816_v27 }
 0x439   :  { %v3712_v56 = vadd.f32 %v3711_v55, %v3710_v54  ;;  %v3713_v57 = vsel %vm3529_vm15, %v3697_v53, 0.0  ;;  %v3627_v52 = vrot.slane %v3528_v23, %v7816_v27 }
 0x43b   :  { %v3714_v58 = vadd.f32 %v3713_v57, %v3712_v56 }
 0x43d   :  { %3715 = vadd.xlane.f32.xlu1 %v3714_v58 }
 0x4c5   :  { %v3567_v37 = vpop.xlane.xlu0 %3566 }
 0x4c6   :  { %v3568_v61 = vmul.f32 0.0017361111, %v3567_v37 }
 0x4c8   :  { %v3569_v17 = vadd.f32 1e-05, %v3568_v61 }
 0x4ca   :  { %6296 = vrsqrt.f32 %v3569_v17  ;;  %v3716_v0 = vpop.xlane.xlu1 %3715 }
 0x4cb   :  { %v3717_v1 = vmul.f32 0.0017361111, %v3716_v0 }
 0x4cd   :  { %v7880_v6 = vsub.f32 %v3693_v31, %v3717_v1  ;;  %v7882_v62 = vsub.f32 %v3694_v25, %v3717_v1  ;;  %v7884_v7 = vsub.f32 %v3695_v15, %v3717_v1  ;;  %v7886_v26 = vsub.f32 %v3696_v46, %v3717_v1 }
 0x4ce   :  { %v3722_v18 = vsub.f32 %v3697_v53, %v3717_v1  ;;  %v3584_v15 = vrot.slane %v3524_v2, %v7801_v9  ;;  %v5286_v1 = vld [vmem:[%s8389_s2 + $0x2e] ss:$8 sm:$0x10] }
 0x4cf   :  { %v3728_v29 = vmul.f32 %v7880_v6, %v7880_v6  ;;  %v3729_v60 = vmul.f32 %v7882_v62, %v7882_v62  ;;  %v3730_v21 = vmul.f32 %v7884_v7, %v7884_v7  ;;  %v3731_v25 = vmul.f32 %v7886_v26, %v7886_v26 }
 0x4d0   :  { %v7895_v31 = vmul.f32 %v7832_v12, %v3722_v18  ;;  %v3592_v12 = vrot.slane %v3524_v2, %v7808_v20 }
 0x4d1   :  { %v3733_v19 = vsel %vm3529_vm15, %v3728_v29, 0.0  ;;  %v3734_v42 = vsel %vm3529_vm15, %v3729_v60, 0.0  ;;  %v3736_v35 = vsel %vm3529_vm15, %v3730_v21, 0.0  ;;  %v3738_v48 = vsel %vm3529_vm15, %v3731_v25, 0.0 }
 0x4d2   :  { %v3732_v30 = vmul.f32 %v7895_v31, %v7895_v31  ;;  %v3735_v36 = vadd.f32 %v3734_v42, %v3733_v19 }
 0x4d4   :  { %v6297_v45 = vpop.eup %6296  ;;  %v3737_v47 = vadd.f32 %v3736_v35, %v3735_v36  ;;  %v3740_v46 = vsel %vm3529_vm15, %v3732_v30, 0.0 }
 0x4d5   :  { %v3571_v39 = vmul.f32 %v6297_v45, %v7834_v63  ;;  %v3572_v41 = vmul.f32 %v6297_v45, %v7836_v13  ;;  %v3573_v50 = vmul.f32 %v6297_v45, %v7838_v16  ;;  %v3574_v11 = vmul.f32 %v6297_v45, %v7840_v24 }
 0x4d6   :  { %v3739_v51 = vadd.f32 %v3738_v48, %v3737_v47  ;;  %v3575_v33 = vmul.f32 %v6297_v45, %v7850_v22  ;;  %v5285_v22 = vld [vmem:[%s8389_s2 + $0x2e] ss:$8 sm:$0xf] }
 0x4d7   :  { %v3602_v53 = vmul.f32 %v3580_v34, %v3571_v39  ;;  %v3603_v54 = vmul.f32 %v3584_v15, %v3572_v41  ;;  %v3604_v55 = vmul.f32 %v3588_v38, %v3573_v50  ;;  %v3605_v56 = vmul.f32 %v3592_v12, %v3574_v11 }
 0x4d8   :  { %v3741_v57 = vadd.f32 %v3740_v46, %v3739_v51  ;;  %v3606_v58 = vmul.f32 %v3596_v40, %v3575_v33  ;;  %v3842_v2 = vor.u32 %v5286_v1, %v5285_v22 }
 0x4d9   :  { %v3633_v63 = vadd.f32 %v3611_v43, %v3602_v53  ;;  %v3634_v37 = vadd.f32 %v3615_v44, %v3603_v54  ;;  %v3635_v13 = vadd.f32 %v3619_v14, %v3604_v55  ;;  %v3636_v61 = vadd.f32 %v3623_v49, %v3605_v56 }
 0x4da   :  { %3742 = vadd.xlane.f32.xlu0 %v3741_v57  ;;  %v3637_v16 = vadd.f32 %v3627_v52, %v3606_v58  ;;  %v7928_v60 = vrot.slane %v3842_v2, %v7799_v8  ;;  %v7931_v19 = vrot.slane %v3842_v2, %v7801_v9  ;;  %v7936_v36 = vrot.slane %v3842_v2, %v7803_v10 }
 0x4db   :  { %v3643_v24 = vmul.f32 0.70710677, %v3633_v63  ;;  %v3644_v17 = vmul.f32 0.70710677, %v3634_v37  ;;  %v3645_v59 = vmul.f32 0.70710677, %v3635_v13  ;;  %v7941_v43 = vrot.slane %v3842_v2, %v7808_v20 }
 0x4dc   :  { %v3646_v32 = vmul.f32 0.70710677, %v3636_v61  ;;  %v3647_v0 = vmul.f32 0.70710677, %v3637_v16  ;;  %v3638_v18 = vmul.f32 0.5, %v3633_v63  ;;  %v3639_v23 = vmul.f32 0.5, %v3634_v37 }
 0x4dd   :  { %6298 = verf.f32 %v3643_v24  ;;  %v3640_v34 = vmul.f32 0.5, %v3635_v13  ;;  %v3641_v12 = vmul.f32 0.5, %v3636_v61  ;;  %v3642_v44 = vmul.f32 0.5, %v3637_v16  ;;  %v5281_v61 = vld [vmem:[%s8389_s2 + $0x2c] ss:$8 sm:$0xf] }
 0x4de   :  { %6300 = verf.f32 %v3644_v17  ;;  %v7950_v49 = vrot.slane %v3842_v2, %v7816_v27  ;;  %v5282_v16 = vld [vmem:[%s8389_s2 + $0x2c] ss:$8 sm:$0x10]  ;;  %v5283_v24 = vld [vmem:[%s8389_s2 + $0x2d] ss:$8 sm:$0xf] }
 0x4df   :  { %6302 = verf.f32 %v3645_v59  ;;  %v5284_v17 = vld [vmem:[%s8389_s2 + $0x2d] ss:$8 sm:$0x10]  ;;  %v3701_v59 = vor.u32 %v5282_v16, %v5281_v61 }
 0x4e0   :  { %6304 = verf.f32 %v3646_v32  ;;  %v3705_v32 = vor.u32 %v5284_v17, %v5283_v24 }
 0x4e1   :  { %6306 = verf.f32 %v3647_v0  ;;  %v3756_v0 = vrot.slane %v3701_v59, %v7799_v8  ;;  %v3760_v22 = vrot.slane %v3701_v59, %v7801_v9  ;;  %v3764_v1 = vrot.slane %v3701_v59, %v7803_v10 }
 0x4e2   :  { %v3768_v2 = vrot.slane %v3701_v59, %v7808_v20 }
 0x4e7   :  { %v6299_v3 = vpop.eup %6298 }
 0x4e8   :  { %v6301_v4 = vpop.eup %6300  ;;  %v3653_v29 = vadd.f32 1.0, %v6299_v3  ;;  %v3772_v3 = vrot.slane %v3701_v59, %v7816_v27 }
 0x4e9   :  { %v6303_v21 = vpop.eup %6302  ;;  %v3654_v25 = vadd.f32 1.0, %v6301_v4 }
 0x4ea   :  { %v6305_v42 = vpop.eup %6304  ;;  %v3655_v15 = vadd.f32 1.0, %v6303_v21  ;;  %v7933_v30 = vmul.f32 %v3653_v29, %v3638_v18  ;;  %v3787_v18 = vrot.slane %v3705_v32, %v7799_v8  ;;  %v3791_v29 = vrot.slane %v3705_v32, %v7801_v9 }
 0x4eb   :  { %v6307_v38 = vpop.eup %6306  ;;  %v3656_v35 = vadd.f32 1.0, %v6305_v42  ;;  %v7938_v40 = vmul.f32 %v3654_v25, %v3639_v23  ;;  %v3795_v21 = vrot.slane %v3705_v32, %v7803_v10  ;;  %v3799_v23 = vrot.slane %v3705_v32, %v7808_v20 }
 0x4ec   :  { %v3657_v45 = vadd.f32 1.0, %v6307_v38  ;;  %v7943_v47 = vmul.f32 %v3655_v15, %v3640_v34  ;;  %v3870_v48 = vmul.f32 %v7928_v60, %v7933_v30 }
 0x4ed   :  { %v7947_v14 = vmul.f32 %v3656_v35, %v3641_v12  ;;  %v3871_v39 = vmul.f32 %v7931_v19, %v7938_v40  ;;  %v3803_v12 = vrot.slane %v3705_v32, %v7816_v27 }
 0x4ee   :  { %v7954_v41 = vmul.f32 %v3657_v45, %v3642_v44  ;;  %v3872_v50 = vmul.f32 %v7936_v36, %v7943_v47  ;;  %v3875_v11 = vsel %vm3529_vm15, %v3870_v48, 0.0 }
 0x4ef   :  { %v3873_v51 = vmul.f32 %v7941_v43, %v7947_v14  ;;  %v3876_v46 = vsel %vm3529_vm15, %v3871_v39, 0.0 }
 0x4f0   :  { %v3877_v33 = vadd.f32 %v3876_v46, %v3875_v11  ;;  %v3874_v52 = vmul.f32 %v7950_v49, %v7954_v41  ;;  %v3878_v53 = vsel %vm3529_vm15, %v3872_v50, 0.0 }
 0x4f1   :  { %v3880_v55 = vsel %vm3529_vm15, %v3873_v51, 0.0 }
 0x4f2   :  { %v3879_v54 = vadd.f32 %v3878_v53, %v3877_v33  ;;  %v3882_v57 = vsel %vm3529_vm15, %v3874_v52, 0.0 }
 0x4f4   :  { %v3881_v56 = vadd.f32 %v3880_v55, %v3879_v54 }
 0x4f6   :  { %v3883_v58 = vadd.f32 %v3882_v57, %v3881_v56 }
 0x4f8   :  { %3884 = vadd.xlane.f32.xlu1 %v3883_v58 }
 0x567   :  { %v3743_v63 = vpop.xlane.xlu0 %3742 }
 0x568   :  { %v3744_v37 = vmul.f32 0.0017361111, %v3743_v63 }
 0x56a   :  { %v3745_v13 = vadd.f32 1e-05, %v3744_v37 }
 0x56c   :  { %6308 = vrsqrt.f32 %v3745_v13 }
 0x576   :  { %v6309_v4 = vpop.eup %6308 }
 0x577   :  { %v3747_v25 = vmul.f32 %v6309_v4, %v7880_v6  ;;  %v3748_v42 = vmul.f32 %v6309_v4, %v7882_v62  ;;  %v3749_v34 = vmul.f32 %v6309_v4, %v7884_v7  ;;  %v3750_v15 = vmul.f32 %v6309_v4, %v7886_v26 }
 0x578   :  { %v3751_v38 = vmul.f32 %v6309_v4, %v7895_v31 }
 0x579   :  { %v3778_v35 = vmul.f32 %v3756_v0, %v3747_v25  ;;  %v3779_v44 = vmul.f32 %v3760_v22, %v3748_v42  ;;  %v3780_v45 = vmul.f32 %v3764_v1, %v3749_v34  ;;  %v3781_v48 = vmul.f32 %v3768_v2, %v3750_v15  ;;  %v6157_v15 = vld [vmem:[%s8392_s3 + $0x8c] ss:$48 sps:$4 sm:$0xff]  }
 0x57a   :  { %v3782_v39 = vmul.f32 %v3772_v3, %v3751_v38  ;;  %v6347_v34 = vmov 96   ;;  %v6155_v38 = vld [vmem:[%s8392_s3 + $0x88] ss:$48 sps:$4 sm:$0xff]  }
 0x57b   :  { %v3809_v10 = vadd.f32 %v3787_v18, %v3778_v35  ;;  %v3810_v50 = vadd.f32 %v3791_v29, %v3779_v44  ;;  %v3811_v20 = vadd.f32 %v3795_v21, %v3780_v45  ;;  %v3812_v11 = vadd.f32 %v3799_v23, %v3781_v48  ;;  %5550 = vset.pattern.permute.xlu1 %v6347_v34  ;;  %v6158_v35 = vld [vmem:[%s8392_s3 + $0xe8] ss:$48 sps:$4 sm:$0xff]   ;;  %v6163_v44 = vld [vmem:[%s8392_s3 + $0x14c] ss:$48 sps:$4 sm:$0xff]  }
 0x57c   :  { %v3813_v6 = vadd.f32 %v3803_v12, %v3782_v39  ;;  %5551 = vset.pattern.permute.xlu0 %v6347_v34  ;;  %v6160_v12 = vld [vmem:[%s8392_s3 + $0xec] ss:$48 sps:$4 sm:$0xff]   ;;  %v6161_v45 = vld [vmem:[%s8392_s3 + $0x148] ss:$48 sps:$4 sm:$0xff]  }
 0x57d   :  { %v3819_v51 = vmul.f32 0.70710677, %v3809_v10  ;;  %v3820_v62 = vmul.f32 0.70710677, %v3810_v50  ;;  %v3821_v46 = vmul.f32 0.70710677, %v3811_v20 }
 0x57e   :  { %v3822_v7 = vmul.f32 0.70710677, %v3812_v11  ;;  %v3823_v33 = vmul.f32 0.70710677, %v3813_v6  ;;  %v3814_v31 = vmul.f32 0.5, %v3809_v10  ;;  %v3815_v54 = vmul.f32 0.5, %v3810_v50 }
 0x57f   :  { %6310 = verf.f32 %v3819_v51  ;;  %v3816_v57 = vmul.f32 0.5, %v3811_v20  ;;  %v3817_v13 = vmul.f32 0.5, %v3812_v11  ;;  %v3818_v24 = vmul.f32 0.5, %v3813_v6  ;;  %v6166_v48 = vld [vmem:[%s8392_s3 + $0x1ac] ss:$48 sps:$4 sm:$0xff]  }
 0x580   :  { %6312 = verf.f32 %v3820_v62  ;;  %v6164_v39 = vld [vmem:[%s8392_s3 + $0x1a8] ss:$48 sps:$4 sm:$0xff]   ;;  %v6169_v10 = vld [vmem:[%s8392_s3 + $0x20c] ss:$48 sps:$4 sm:$0xff]  }
 0x581   :  { %6314 = verf.f32 %v3821_v46  ;;  %v6167_v50 = vld [vmem:[%s8392_s3 + $0x208] ss:$48 sps:$4 sm:$0xff]   ;;  %v6172_v20 = vld [vmem:[%s8392_s3 + $0x26c] ss:$48 sps:$4 sm:$0xff]  }
 0x582   :  { %6316 = verf.f32 %v3822_v7  ;;  %v6170_v11 = vld [vmem:[%s8392_s3 + $0x268] ss:$48 sps:$4 sm:$0xff]   ;;  %v6175_v6 = vld [vmem:[%s8392_s3 + $0x2cc] ss:$48 sps:$4 sm:$0xff]  }
 0x583   :  { %6318 = verf.f32 %v3823_v33  ;;  %v6173_v51 = vld [vmem:[%s8392_s3 + $0x2c8] ss:$48 sps:$4 sm:$0xff]   ;;  %v6178_v62 = vld [vmem:[%s8392_s3 + $0x32c] ss:$48 sps:$4 sm:$0xff]  }
 0x584   :  { %v6176_v46 = vld [vmem:[%s8392_s3 + $0x328] ss:$48 sps:$4 sm:$0xff]   ;;  %v6181_v7 = vld [vmem:[%s8392_s3 + $0x38c] ss:$48 sps:$4 sm:$0xff]  }
 0x585   :  { %v6179_v33 = vld [vmem:[%s8392_s3 + $0x388] ss:$48 sps:$4 sm:$0xff]  }
 0x586   :  { %v6272_v34 = vld [vmem:[%s8393_s4 + $0x80] ss:$8 sps:$4 sm:$0xff]  }
 0x587   :  { %5396 = vmatprep.subr.bf16.mxu1 %v6272_v34 }
 0x589   :  { %v6311_v27 = vpop.eup %6310 }
 0x58a   :  { %v6313_v26 = vpop.eup %6312  ;;  %v3829_v52 = vadd.f32 1.0, %v6311_v27  ;;  %v6184_v27 = vld [vmem:[%s8392_s3 + $0x3ec] ss:$48 sps:$4 sm:$0xff]  }
 0x58b   :  { %v6315_v53 = vpop.eup %6314  ;;  %v3830_v55 = vadd.f32 1.0, %v6313_v26  ;;  %v6182_v26 = vld [vmem:[%s8392_s3 + $0x3e8] ss:$48 sps:$4 sm:$0xff]  }
 0x58c   :  { %v6317_v56 = vpop.eup %6316  ;;  %v3831_v58 = vadd.f32 1.0, %v6315_v53  ;;  %v7994_v63 = vmul.f32 %v3829_v52, %v3814_v31  ;;  %v6187_v31 = vld [vmem:[%s8392_s3 + $0x44c] ss:$48 sps:$4 sm:$0xff]   ;;  %v6185_v52 = vld [vmem:[%s8392_s3 + $0x448] ss:$48 sps:$4 sm:$0xff]  }
 0x58d   :  { %v6319_v37 = vpop.eup %6318  ;;  %v3832_v61 = vadd.f32 1.0, %v6317_v56  ;;  %v7996_v16 = vmul.f32 %v3830_v55, %v3815_v54  ;;  %v6190_v53 = vld [vmem:[%s8392_s3 + $0x4ac] ss:$48 sps:$4 sm:$0xff]   ;;  %v6188_v54 = vld [vmem:[%s8392_s3 + $0x4a8] ss:$48 sps:$4 sm:$0xff]  }
 0x58e   :  { %v3833_v17 = vadd.f32 1.0, %v6319_v37  ;;  %v7998_v59 = vmul.f32 %v3831_v58, %v3816_v57  ;;  %v3887_v32 = vmul.f32 %v7928_v60, %v7994_v63  ;;  %v6193_v55 = vld [vmem:[%s8392_s3 + $0x50c] ss:$48 sps:$4 sm:$0xff]   ;;  %v6191_v56 = vld [vmem:[%s8392_s3 + $0x508] ss:$48 sps:$4 sm:$0xff]  }
 0x58f   :  { %v8002_v0 = vmul.f32 %v3832_v61, %v3817_v13  ;;  %v3888_v22 = vmul.f32 %v7931_v19, %v7996_v16  ;;  %v6196_v57 = vld [vmem:[%s8392_s3 + $0x56c] ss:$48 sps:$4 sm:$0xff]   ;;  %v6194_v58 = vld [vmem:[%s8392_s3 + $0x568] ss:$48 sps:$4 sm:$0xff]   ;;  %v3885_v13 = vpop.xlane.xlu1 %3884 }
 0x590   :  { %v8006_v1 = vmul.f32 %v3833_v17, %v3818_v24  ;;  %v3889_v2 = vmul.f32 %v7936_v36, %v7998_v59  ;;  %v3892_v3 = vsel %vm3529_vm15, %v3887_v32, 0.0  ;;  %v8112_v37 = vld [vmem:[%s8389_s2 + $0x4f] ss:$0 sm:$0xff] }
 0x591   :  { %v3890_v4 = vmul.f32 %v7941_v43, %v8002_v0  ;;  %v3893_v18 = vsel %vm3529_vm15, %v3888_v22, 0.0  ;;  %v6152_v43 = vld [vmem:[%s8392_s3 + $0x28] ss:$48 sps:$4 sm:$0xff]   ;;  %v3886_v24 = vadd.f32 %v3885_v13, %v8112_v37  ;;  %v6220_v13 = vld [vmem:[%s8392_s3 + $0x86c] ss:$48 sps:$4 sm:$0xff]  }
 0x592   :  { %v3894_v29 = vadd.f32 %v3893_v18, %v3892_v3  ;;  %v3891_v60 = vmul.f32 %v7950_v49, %v8006_v1  ;;  %v3895_v21 = vsel %vm3529_vm15, %v3889_v2, 0.0  ;;  %v6154_v49 = vld [vmem:[%s8392_s3 + $0x2c] ss:$48 sps:$4 sm:$0xff]  }
 0x593   :  { %v3897_v19 = vsel %vm3529_vm15, %v3890_v4, 0.0  ;;  %4438 = vmatprep.subr.bf16.mxu0 %v6154_v49  ;;  %v6274_v49 = vld [vmem:[%s8393_s4 + $0x90] ss:$8 sps:$4 sm:$0xff]  }
 0x594   :  { %v3896_v23 = vadd.f32 %v3895_v21, %v3894_v29  ;;  %v3899_v42 = vsel %vm3529_vm15, %v3891_v60, 0.0  ;;  %4439 = vmatpush1.bf16.msra.mxu0 %v6152_v43  ;;  %v6273_v43 = vld [vmem:[%s8393_s4] ss:$8 sps:$4 sm:$0xff]  }
 0x595   :  { %4440 = vmatprep.subr.bf16.mxu0 %v6157_v15  ;;  %5397 = vmatpush3.bf16.msra.mxu1 %v6273_v43  ;;  %v6275_v15 = vld [vmem:[%s8393_s4 + $0x10] ss:$8 sps:$4 sm:$0xff]  }
 0x596   :  { %v3898_v25 = vadd.f32 %v3897_v19, %v3896_v23  ;;  %5398 = vmatprep.subr.bf16.mxu1 %v6274_v49  ;;  %v6247_v49 = vld [vmem:[%s8392_s3 + $0xbcc] ss:$48 sps:$4 sm:$0xff]  }
 0x598   :  { %v3900_v36 = vadd.f32 %v3899_v42, %v3898_v25  ;;  %4441 = vmatpush1.bf16.msra.mxu0 %v6155_v38  ;;  %v6197_v25 = vld [vmem:[%s8392_s3 + $0x5c8] ss:$48 sps:$4 sm:$0xff]   ;;  %v6199_v42 = vld [vmem:[%s8392_s3 + $0x5cc] ss:$48 sps:$4 sm:$0xff]  }
 0x599   :  { %4442 = vmatprep.subr.bf16.mxu0 %v6160_v12  ;;  %v6276_v38 = vld [vmem:[%s8393_s4 + $0xa0] ss:$8 sps:$4 sm:$0xff]   ;;  %5399 = vmatpush3.bf16.msra.mxu1 %v6275_v15 }
 0x59a   :  { %3901 = vadd.xlane.f32.xlu0 %v3900_v36  ;;  %v6202_v36 = vld [vmem:[%s8392_s3 + $0x62c] ss:$48 sps:$4 sm:$0xff]   ;;  %v6277_v12 = vld [vmem:[%s8393_s4 + $0x20] ss:$8 sps:$4 sm:$0xff]   ;;  %5400 = vmatprep.subr.bf16.mxu1 %v6276_v38 }
 0x59b   :  { %v6245_v15 = vld [vmem:[%s8392_s3 + $0xbc8] ss:$48 sps:$4 sm:$0xff]  }
 0x59c   :  { %4443 = vmatpush1.bf16.msra.mxu0 %v6158_v35  ;;  %v6278_v35 = vld [vmem:[%s8393_s4 + $0xb0] ss:$8 sps:$4 sm:$0xff]  }
 0x59d   :  { %4444 = vmatprep.subr.bf16.mxu0 %v6163_v44  ;;  %v6279_v44 = vld [vmem:[%s8393_s4 + $0x30] ss:$8 sps:$4 sm:$0xff]   ;;  %5401 = vmatpush3.bf16.msra.mxu1 %v6277_v12  ;;  %v6250_v12 = vld [vmem:[%s8392_s3 + $0xc2c] ss:$48 sps:$4 sm:$0xff]  }
 0x59e   :  { %5402 = vmatprep.subr.bf16.mxu1 %v6278_v35  ;;  %v6253_v35 = vld [vmem:[%s8392_s3 + $0xc8c] ss:$48 sps:$4 sm:$0xff]  }
 0x5a0   :  { %4445 = vmatpush1.bf16.msra.mxu0 %v6161_v45  ;;  %v6280_v45 = vld [vmem:[%s8393_s4 + $0xc0] ss:$8 sps:$4 sm:$0xff]  }
 0x5a1   :  { %4446 = vmatprep.subr.bf16.mxu0 %v6166_v48  ;;  %v6281_v48 = vld [vmem:[%s8393_s4 + $0x40] ss:$8 sps:$4 sm:$0xff]   ;;  %5403 = vmatpush3.bf16.msra.mxu1 %v6279_v44 }
 0x5a2   :  { %5404 = vmatprep.subr.bf16.mxu1 %v6280_v45  ;;  %v6251_v44 = vld [vmem:[%s8392_s3 + $0xc88] ss:$48 sps:$4 sm:$0xff]   ;;  %v6256_v45 = vld [vmem:[%s8392_s3 + $0xcec] ss:$48 sps:$4 sm:$0xff]  }
 0x5a4   :  { %4447 = vmatpush1.bf16.msra.mxu0 %v6164_v39  ;;  %v6282_v39 = vld [vmem:[%s8393_s4 + $0xd0] ss:$8 sps:$4 sm:$0xff]  }
 0x5a5   :  { %4448 = vmatprep.subr.bf16.mxu0 %v6169_v10  ;;  %v6283_v10 = vld [vmem:[%s8393_s4 + $0x50] ss:$8 sps:$4 sm:$0xff]   ;;  %5405 = vmatpush3.bf16.msra.mxu1 %v6281_v48 }
 0x5a6   :  { %5406 = vmatprep.subr.bf16.mxu1 %v6282_v39  ;;  %v6254_v48 = vld [vmem:[%s8392_s3 + $0xce8] ss:$48 sps:$4 sm:$0xff]   ;;  %v6259_v39 = vld [vmem:[%s8392_s3 + $0xd4c] ss:$48 sps:$4 sm:$0xff]  }
 0x5a8   :  { %4449 = vmatpush1.bf16.msra.mxu0 %v6167_v50 }
 0x5a9   :  { %4450 = vmatprep.subr.bf16.mxu0 %v6172_v20  ;;  %5407 = vmatpush3.bf16.msra.mxu1 %v6283_v10  ;;  %v6262_v10 = vld [vmem:[%s8392_s3 + $0xdac] ss:$48 sps:$4 sm:$0xff]  }
 0x5ac   :  { %4451 = vmatpush1.bf16.msra.mxu0 %v6170_v11 }
 0x5ad   :  { %4452 = vmatprep.subr.bf16.mxu0 %v6175_v6 }
 0x5b0   :  { %4453 = vmatpush1.bf16.msra.mxu0 %v6173_v51 }
 0x5b1   :  { %4454 = vmatprep.subr.bf16.mxu0 %v6178_v62 }
 0x5b4   :  { %4455 = vmatpush1.bf16.msra.mxu0 %v6176_v46 }
 0x5b5   :  { %4456 = vmatprep.subr.bf16.mxu0 %v6181_v7 }
 0x5b8   :  { %4457 = vmatpush1.bf16.msra.mxu0 %v6179_v33 }
 0x5b9   :  { %4458 = vmatprep.subr.bf16.mxu0 %v6184_v27 }
 0x5bc   :  { %4459 = vmatpush1.bf16.msra.mxu0 %v6182_v26 }
 0x5bd   :  { %4460 = vmatprep.subr.bf16.mxu0 %v6187_v31 }
 0x5c0   :  { %4461 = vmatpush1.bf16.msra.mxu0 %v6185_v52  ;;  %v6206_v52 = vld [vmem:[%s8392_s3 + $0x6e8] ss:$48 sps:$4 sm:$0xff]  }
 0x5c1   :  { %4462 = vmatprep.subr.bf16.mxu0 %v6190_v53  ;;  %v6211_v53 = vld [vmem:[%s8392_s3 + $0x74c] ss:$48 sps:$4 sm:$0xff]  }
 0x5c4   :  { %4463 = vmatpush1.bf16.msra.mxu0 %v6188_v54  ;;  %v6209_v54 = vld [vmem:[%s8392_s3 + $0x748] ss:$48 sps:$4 sm:$0xff]  }
 0x5c5   :  { %4464 = vmatprep.subr.bf16.mxu0 %v6193_v55  ;;  %v6214_v55 = vld [vmem:[%s8392_s3 + $0x7ac] ss:$48 sps:$4 sm:$0xff]  }
 0x5c8   :  { %4465 = vmatpush1.bf16.msra.mxu0 %v6191_v56  ;;  %v6212_v56 = vld [vmem:[%s8392_s3 + $0x7a8] ss:$48 sps:$4 sm:$0xff]  }
 0x5c9   :  { %4466 = vmatprep.subr.bf16.mxu0 %v6196_v57  ;;  %v6217_v57 = vld [vmem:[%s8392_s3 + $0x80c] ss:$48 sps:$4 sm:$0xff]  }
 0x5cc   :  { %4467 = vmatpush1.bf16.msra.mxu0 %v6194_v58  ;;  %v6215_v58 = vld [vmem:[%s8392_s3 + $0x808] ss:$48 sps:$4 sm:$0xff]  }
 0x5cd   :  { %4468 = vmatprep.subr.bf16.mxu0 %v6199_v42  ;;  %v6244_v42 = vld [vmem:[%s8392_s3 + $0xb6c] ss:$48 sps:$4 sm:$0xff]  }
 0x5d0   :  { %4469 = vmatpush1.bf16.msra.mxu0 %v6197_v25  ;;  %v6239_v25 = vld [vmem:[%s8392_s3 + $0xb08] ss:$48 sps:$4 sm:$0xff]  }
 0x5d1   :  { %4479 = vmatprep.subr.bf16.mxu0 %v6202_v36  ;;  %v6242_v36 = vld [vmem:[%s8392_s3 + $0xb68] ss:$48 sps:$4 sm:$0xff]  }
 0x627   :  { %v3902_v61 = vpop.xlane.xlu0 %3901 }
 0x628   :  { %v3903_v17 = vadd.f32 %v3902_v61, %v8112_v37  ;;  %v6218_v61 = vld [vmem:[%s8392_s3 + $0x868] ss:$48 sps:$4 sm:$0xff]  }
 0x62a   :  { %v3904_v32 = vmax.f32 %v3886_v24, %v3903_v17 }
 0x62c   :  { %v3905_v22 = vsub.f32 %v3886_v24, %v3904_v32  ;;  %v3908_v2 = vsub.f32 %v3903_v17, %v3904_v32  ;;  %v6223_v24 = vld [vmem:[%s8392_s3 + $0x8cc] ss:$48 sps:$4 sm:$0xff]   ;;  %v6221_v17 = vld [vmem:[%s8392_s3 + $0x8c8] ss:$48 sps:$4 sm:$0xff]  }
 0x62d   :  { %v6226_v32 = vld [vmem:[%s8392_s3 + $0x92c] ss:$48 sps:$4 sm:$0xff]  }
 0x62e   :  { %v3906_v3 = vmul.f32 1.442695, %v3905_v22  ;;  %v3909_v4 = vmul.f32 1.442695, %v3908_v2  ;;  %v6224_v22 = vld [vmem:[%s8392_s3 + $0x928] ss:$48 sps:$4 sm:$0xff]  }
 0x62f   :  { %v6229_v2 = vld [vmem:[%s8392_s3 + $0x98c] ss:$48 sps:$4 sm:$0xff]  }
 0x630   :  { %6320 = vpow2.f32 %v3906_v3  ;;  %v6227_v3 = vld [vmem:[%s8392_s3 + $0x988] ss:$48 sps:$4 sm:$0xff]  }
 0x631   :  { %6322 = vpow2.f32 %v3909_v4  ;;  %v6232_v4 = vld [vmem:[%s8392_s3 + $0x9ec] ss:$48 sps:$4 sm:$0xff]  }
 0x63a   :  { %v6321_v18 = vpop.eup %6320 }
 0x63b   :  { %v6323_v29 = vpop.eup %6322 }
 0x63c   :  { %v3911_v60 = vadd.f32 %v6323_v29, %v6321_v18 }
 0x63e   :  { %6324 = vrcp.f32 %v3911_v60  ;;  %v6233_v60 = vld [vmem:[%s8392_s3 + $0xa48] ss:$48 sps:$4 sm:$0xff]  }
 0x648   :  { %v6325_v21 = vpop.eup %6324 }
 0x649   :  { %v3924_v23 = vmul.f32 %v6325_v21, %v6323_v29  ;;  %v3913_v19 = vmul.f32 %v6325_v21, %v6321_v18  ;;  %v6230_v18 = vld [vmem:[%s8392_s3 + $0x9e8] ss:$48 sps:$4 sm:$0xff]   ;;  %v6235_v29 = vld [vmem:[%s8392_s3 + $0xa4c] ss:$48 sps:$4 sm:$0xff]  }
 0x64a   :  { %v6238_v21 = vld [vmem:[%s8392_s3 + $0xaac] ss:$48 sps:$4 sm:$0xff]  }
 0x64b   :  { %3927 = vperm.xlu0 %5551, %v3924_v23   ;;  %3916 = vperm.xlu1 %5550, %v3913_v19   ;;  %v6236_v23 = vld [vmem:[%s8392_s3 + $0xaa8] ss:$48 sps:$4 sm:$0xff]   ;;  %v6241_v19 = vld [vmem:[%s8392_s3 + $0xb0c] ss:$48 sps:$4 sm:$0xff]  }
 0x6ca   :  { %v8161_v50 = vpop.permute.xlu0 %3927  ;;  %v8163_v20 = vpop.permute.xlu1 %3916 }
 0x6cb   :  { %v3930_v11 = vmul.f32 %v8161_v50, %v7994_v63  ;;  %v3919_v6 = vmul.f32 %v8163_v20, %v7933_v30  ;;  %v3920_v51 = vmul.f32 %v8163_v20, %v7938_v40  ;;  %v3931_v62 = vmul.f32 %v8161_v50, %v7996_v16  ;;  %v6200_v30 = vld [vmem:[%s8392_s3 + $0x628] ss:$48 sps:$4 sm:$0xff]   ;;  %v6205_v40 = vld [vmem:[%s8392_s3 + $0x68c] ss:$48 sps:$4 sm:$0xff]  }
 0x6cc   :  { %v3922_v7 = vmul.f32 %v8163_v20, %v7947_v14  ;;  %v3933_v33 = vmul.f32 %v8161_v50, %v8002_v0  ;;  %v6203_v14 = vld [vmem:[%s8392_s3 + $0x688] ss:$48 sps:$4 sm:$0xff]   ;;  %v6208_v0 = vld [vmem:[%s8392_s3 + $0x6ec] ss:$48 sps:$4 sm:$0xff]   ;;  %v3932_v34 = vmul.f32 %v8161_v50, %v7998_v59  ;;  %v3921_v43 = vmul.f32 %v8163_v20, %v7943_v47 }
 0x6cd   :  { %v3935_v46 = vadd.f32 %v3930_v11, %v3919_v6  ;;  %v3936_v27 = vadd.f32 %v3931_v62, %v3920_v51  ;;  %v6248_v47 = vld [vmem:[%s8392_s3 + $0xc28] ss:$48 sps:$4 sm:$0xff]   ;;  %v6265_v6 = vld [vmem:[%s8392_s3 + $0xe0c] ss:$48 sps:$4 sm:$0xff]  }
 0x6ce   :  { %v3938_v63 = vadd.f32 %v3933_v33, %v3922_v7  ;;  %v3937_v38 = vadd.f32 %v3932_v34, %v3921_v43  ;;  %v6260_v11 = vld [vmem:[%s8392_s3 + $0xda8] ss:$48 sps:$4 sm:$0xff]   ;;  %v6268_v62 = vld [vmem:[%s8392_s3 + $0xe6c] ss:$48 sps:$4 sm:$0xff]   ;;  %v3934_v7 = vmul.f32 %v8161_v50, %v8006_v1  ;;  %v3923_v33 = vmul.f32 %v8163_v20, %v7954_v41 }
 0x6cf   :  { %v3940_v26 = vpack.c.bf16 %v3935_v46, %v3935_v46  ;;  %v3941_v31 = vpack.c.bf16 %v3936_v27, %v3936_v27  ;;  %v6263_v51 = vld [vmem:[%s8392_s3 + $0xe08] ss:$48 sps:$4 sm:$0xff]   ;;  %v6271_v27 = vld [vmem:[%s8392_s3 + $0xecc] ss:$48 sps:$4 sm:$0xff]  }
 0x6d0   :  { %v3943_v16 = vpack.c.bf16 %v3938_v63, %v3938_v63  ;;  %v3942_v59 = vpack.c.bf16 %v3937_v38, %v3937_v38  ;;  %v6266_v46 = vld [vmem:[%s8392_s3 + $0xe68] ss:$48 sps:$4 sm:$0xff]   ;;  %v3939_v63 = vadd.f32 %v3934_v7, %v3923_v33 }
 0x6d1   :  { %4470 = vmatprep.mubr.bf16.mxu0 %v3941_v31  ;;  %v6284_v1 = vld [vmem:[%s8393_s4 + $0xe0] ss:$8 sps:$4 sm:$0xff]   ;;  %v6286_v50 = vld [vmem:[%s8393_s4 + $0xf0] ss:$8 sps:$4 sm:$0xff]  }
 0x6d2   :  { %4471 = vmatmul.mubr.bf16.vlgmr.msra.gmra.mrb[28].mxu0 %v3940_v26  ;;  %v6269_v26 = vld [vmem:[%s8392_s3 + $0xec8] ss:$48 sps:$4 sm:$0xff]   ;;  %v3944_v31 = vpack.c.bf16 %v3939_v63, %v3939_v63  ;;  %5408 = vmatprep.subr.bf16.mxu1 %v6284_v1 }
 0x6d3   :  { %4480 = vmatpush1.bf16.msra.mxu0 %v6200_v30  ;;  %4511 = vmatprep.mubr.bf16.mxu0 %v3943_v16  ;;  %v6285_v41 = vld [vmem:[%s8393_s4 + $0x60] ss:$8 sps:$4 sm:$0xff]   ;;  %v6287_v20 = vld [vmem:[%s8393_s4 + $0x70] ss:$8 sps:$4 sm:$0xff]  }
 0x6d4   :  { %4481 = vmatprep.subr.bf16.mxu0 %v6205_v40  ;;  %5409 = vmatpush3.bf16.msra.mxu1 %v6285_v41  ;;  %v5287_v30 = vld [vmem:[%s8389_s2 + $0x2f] ss:$8 sm:$0x3] }
 0x6d5   :  { %5410 = vmatprep.subr.bf16.mxu1 %v6286_v50  ;;  %v4031_v40 = vrot.slane %v5287_v30, %v7799_v8  ;;  %v4035_v16 = vrot.slane %v5287_v30, %v7801_v9  ;;  %v6289_v8 = vld [vmem:[%s8393_s4 + $0x14] ss:$8 sps:$4 sm:$0xff]   ;;  %v6290_v9 = vld [vmem:[%s8393_s4 + $0x24] ss:$8 sps:$4 sm:$0xff]  }
 0x6d7   :  { %4482 = vmatpush1.bf16.msra.mxu0 %v6203_v14 }
 0x6d8   :  { %4483 = vmatprep.subr.bf16.mxu0 %v6208_v0  ;;  %5411 = vmatpush3.bf16.msra.mxu1 %v6287_v20 }
 0x6d9   :  { %5434 = vmatprep.subr.bf16.mxu1 %v6334_v5 }
 0x6db   :  { %4484 = vmatpush1.bf16.msra.mxu0 %v6206_v52 }
 0x6dc   :  { %4485 = vmatprep.subr.bf16.mxu0 %v6211_v53 }
 0x6df   :  { %4486 = vmatpush1.bf16.msra.mxu0 %v6209_v54 }
 0x6e0   :  { %4487 = vmatprep.subr.bf16.mxu0 %v6214_v55 }
 0x6e3   :  { %4488 = vmatpush1.bf16.msra.mxu0 %v6212_v56 }
 0x6e4   :  { %4489 = vmatprep.subr.bf16.mxu0 %v6217_v57 }
 0x6e7   :  { %4490 = vmatpush1.bf16.msra.mxu0 %v6215_v58 }
 0x6e8   :  { %4491 = vmatprep.subr.bf16.mxu0 %v6220_v13  ;;  %v6288_v13 = vld [vmem:[%s8393_s4 + $0x4] ss:$8 sps:$4 sm:$0xff]  }
 0x6eb   :  { %4492 = vmatpush1.bf16.msra.mxu0 %v6218_v61 }
 0x6ec   :  { %4493 = vmatprep.subr.bf16.mxu0 %v6223_v24  ;;  %v6291_v24 = vld [vmem:[%s8393_s4 + $0x34] ss:$8 sps:$4 sm:$0xff]  }
 0x6ef   :  { %4494 = vmatpush1.bf16.msra.mxu0 %v6221_v17  ;;  %v6292_v17 = vld [vmem:[%s8393_s4 + $0x44] ss:$8 sps:$4 sm:$0xff]  }
 0x6f0   :  { %4495 = vmatprep.subr.bf16.mxu0 %v6226_v32  ;;  %v6293_v32 = vld [vmem:[%s8393_s4 + $0x54] ss:$8 sps:$4 sm:$0xff]  }
 0x6f3   :  { %4496 = vmatpush1.bf16.msra.mxu0 %v6224_v22  ;;  %v6294_v22 = vld [vmem:[%s8393_s4 + $0x64] ss:$8 sps:$4 sm:$0xff]  }
 0x6f4   :  { %4497 = vmatprep.subr.bf16.mxu0 %v6229_v2  ;;  %v6295_v2 = vld [vmem:[%s8393_s4 + $0x74] ss:$8 sps:$4 sm:$0xff]  }
 0x6f7   :  { %4498 = vmatpush1.bf16.msra.mxu0 %v6227_v3 }
 0x6f8   :  { %4499 = vmatprep.subr.bf16.mxu0 %v6232_v4  ;;  %v4597_v4 = vld [vmem:[%s8389_s2 + $0x3f] ss:$0 sm:$0xff] }
 0x6fb   :  { %4500 = vmatpush1.bf16.msra.mxu0 %v6230_v18 }
 0x6fc   :  { %4501 = vmatprep.subr.bf16.mxu0 %v6235_v29 }
 0x6ff   :  { %4502 = vmatpush1.bf16.msra.mxu0 %v6233_v60 }
 0x700   :  { %4503 = vmatprep.subr.bf16.mxu0 %v6238_v21 }
 0x703   :  { %4504 = vmatpush1.bf16.msra.mxu0 %v6236_v23 }
 0x704   :  { %4505 = vmatprep.subr.bf16.mxu0 %v6241_v19 }
 0x707   :  { %4506 = vmatpush1.bf16.msra.mxu0 %v6239_v25 }
 0x708   :  { %4507 = vmatprep.subr.bf16.mxu0 %v6244_v42 }
 0x70b   :  { %4508 = vmatpush1.bf16.msra.mxu0 %v6242_v36 }
 0x70c   :  { %4509 = vmatprep.subr.bf16.mxu0 %v6247_v49 }
 0x70f   :  { %4510 = vmatpush1.bf16.msra.mxu0 %v6245_v15 }
 0x710   :  { %4520 = vmatprep.subr.bf16.mxu0 %v6250_v12 }
 0x712   :  { %4512 = vmatmul.mubr.bf16.vlgmr.msra.gmra.mrb[28].mxu0 %v3942_v59 }
 0x713   :  { %4521 = vmatpush1.bf16.msra.mxu0 %v6248_v47  ;;  %4552 = vmatprep.mubr.bf16.mxu0 %v6346_v28  ;;  %v6257_v28 = vld [vmem:[%s8392_s3 + $0xd48] ss:$48 sps:$4 sm:$0xff]  }
 0x714   :  { %4522 = vmatprep.subr.bf16.mxu0 %v6253_v35 }
 0x717   :  { %4523 = vmatpush1.bf16.msra.mxu0 %v6251_v44 }
 0x718   :  { %4524 = vmatprep.subr.bf16.mxu0 %v6256_v45 }
 0x71b   :  { %4525 = vmatpush1.bf16.msra.mxu0 %v6254_v48 }
 0x71c   :  { %4526 = vmatprep.subr.bf16.mxu0 %v6259_v39 }
 0x71f   :  { %4527 = vmatpush1.bf16.msra.mxu0 %v6257_v28 }
 0x720   :  { %4528 = vmatprep.subr.bf16.mxu0 %v6262_v10 }
 0x723   :  { %4529 = vmatpush1.bf16.msra.mxu0 %v6260_v11 }
 0x724   :  { %4530 = vmatprep.subr.bf16.mxu0 %v6265_v6 }
 0x727   :  { %4531 = vmatpush1.bf16.msra.mxu0 %v6263_v51 }
 0x728   :  { %4532 = vmatprep.subr.bf16.mxu0 %v6268_v62 }
 0x72b   :  { %4533 = vmatpush1.bf16.msra.mxu0 %v6266_v46 }
 0x72c   :  { %4534 = vmatprep.subr.bf16.mxu0 %v6271_v27 }
 0x72f   :  { %4535 = vmatpush1.bf16.msra.mxu0 %v6269_v26 }
 0x732   :  { %4553 = vmatmul.mubr.bf16.vlgmr.msra.gmra.mrb[28].mxu0 %v3944_v31 }
 0x805   :  { %v4554_v14 = vpop.f32.mrb[28].mxu0 }
 0x806   :  { %v5474_v0 = vadd.f32 %v4554_v14, %v4031_v40  ;;  %v4556_v52 = vpop.f32.mrb[29].mxu0 }
 0x807   :  { %v5475_v53 = vadd.f32 %v4556_v52, %v4035_v16  ;;  %v4558_v54 = vpop.f32.mrb[30].mxu0 }
 0x808   :  { %v4561_v55 = vmax.f32 %v5474_v0, 0.0  ;;  %v4559_v56 = vpop.f32.mrb[31].mxu0 }
 0x809   :  { %v4562_v57 = vmax.f32 %v5475_v53, 0.0 }
 0x80a   :  { %v4563_v61 = vpack.c.bf16 %v4561_v55, %v4561_v55 }
 0x80b   :  { %v4564_v58 = vpack.c.bf16 %v4562_v57, %v4562_v57 }
 0x80d   :  { %4726 = vmatprep.mubr.bf16.mxu1 %v4564_v58 }
 0x80e   :  { %4727 = vmatmul.mubr.bf16.vlgmr.msra.gmra.mrb[40].mxu1 %v4563_v61 }
 0x80f   :  { %5435 = vmatpush3.bf16.msra.mxu1 %v6288_v13  ;;  %5450 = vmatprep.mubr.msk.bf16.mxu1 %vm6333_vm3, %v6334_v5 }
 0x810   :  { %5436 = vmatprep.subr.bf16.mxu1 %v6334_v5 }
 0x813   :  { %5437 = vmatpush3.bf16.msra.mxu1 %v6289_v8 }
 0x814   :  { %5438 = vmatprep.subr.bf16.mxu1 %v6334_v5 }
 0x817   :  { %5439 = vmatpush3.bf16.msra.mxu1 %v6290_v9 }
 0x818   :  { %5440 = vmatprep.subr.bf16.mxu1 %v6334_v5 }
 0x81b   :  { %5441 = vmatpush3.bf16.msra.mxu1 %v6291_v24 }
 0x81c   :  { %5442 = vmatprep.subr.bf16.mxu1 %v6334_v5 }
 0x81f   :  { %5443 = vmatpush3.bf16.msra.mxu1 %v6292_v17 }
 0x820   :  { %5444 = vmatprep.subr.bf16.mxu1 %v6334_v5 }
 0x823   :  { %5445 = vmatpush3.bf16.msra.mxu1 %v6293_v32 }
 0x824   :  { %5446 = vmatprep.subr.bf16.mxu1 %v6334_v5 }
 0x827   :  { %5447 = vmatpush3.bf16.msra.mxu1 %v6294_v22 }
 0x828   :  { %5448 = vmatprep.subr.bf16.mxu1 %v6334_v5  ;;  %v4752_v5 = vld [vmem:[%s8389_s2 + $0x47] ss:$0 sm:$0xff]  ;;  %s6348_s2 = smov 31  }
 0x82b   :  { %5449 = vmatpush3.bf16.msra.mxu1 %v6295_v2 }
 0x8e1   :  { %v5412_v3 = vpop.f32.mrb[40].mxu1 }
 0x8e2   :  { %v5413_v18 = vpop.f32.mrb[41].mxu1 }
 0x8e3   :  { %v5414_v29 = vadd.f32 %v5413_v18, %v5412_v3  ;;  %v5415_v60 = vpop.f32.mrb[42].mxu1 }
 0x8e4   :  { %v5416_v21 = vpop.f32.mrb[43].mxu1 }
 0x8e5   :  { %v4729_v23 = vadd.f32 %v5414_v29, %v4597_v4 }
 0x8e7   :  { %v4734_v19 = vmax.f32 %v4729_v23, 0.0 }
 0x8e9   :  { %v4735_v25 = vpack.c.bf16 %v4734_v19, %v4734_v19 }
 0x8eb   :  { %5451 = vmatmul.mubr.bf16.vlgmr.msra.gmra.mrb[44].mxu1 %v4735_v25 }
 0x9be   :  { %v4835_v42 = vpop.f32.mrb[44].mxu1 }
 0x9bf   :  { %v4836_v36 = vadd.f32 %v4835_v42, %v4752_v5  ;;  %v5452_v34 = vpop.f32.mrb[45].mxu1 }
 0x9c0   :  { %v4838_v43 = vpop.f32.mrb[46].mxu1 }
 0x9c1   :  { %v4841_v49 = vmax.f32 %v4836_v36, 0.0  ;;  %v5453_v15 = vpop.f32.mrb[47].mxu1 }
 0x9c3   :  { %v4842_v38 = vmul.f32 %v4841_v49, %v8112_v37 }
 0x9c5   :  { %v4844_v12 = vsel %vm4843_vm1, %v4842_v38, 0.0 }
 0x9c6   :  { %4845 = vadd.xlane.f32.xlu1 %v4844_v12 }
 0xa53   :  { %v4846_v47 = vpop.xlane.xlu1 %4845 }
 0xa54   :  { %v4847_v59 = vadd.f32 %v4846_v47, %v8112_v37 }
 0xa56   :  { %v5392_v35 = vmul.f32 -1.442695, %v4847_v59 }
 0xa58   :  { %6326 = vpow2.f32 %v5392_v35 }
 0xa62   :  { %v6327_v44 = vpop.eup %6326 }
 0xa63   :  { %v4851_v45 = vadd.f32 1.0, %v6327_v44 }
 0xa65   :  { %6328 = vrcp.f32 %v4851_v45 }
 0xa6f   :  { %v6329_v48 = vpop.eup %6328 }
 0xa70   :  { %4855 = vrot.lane.b32.xlu0 %v6329_v48, %s6348_s2 }
 0xae2   :  { %v4856_v39 = vpop.permute.xlu0 %4855 }
 0xae3   :  { %4859 = vst.msk [vmem:[%s8394_s5] sm:$0x3] %vm4858_vm2, %v4856_v39 }

</bundles_post_ra>
